<compile_context>
chip_gen: v7x
topology: tpu7x:2x2x1
jax: 0.10.0
libtpu: 0.0.40
codegen_flags: <defaults>
</compile_context>

<pallas_src>
import functools

import numpy as np

import jax
import jax.numpy as jnp
from jax import lax
from jax.experimental import pallas as pl
from jax.experimental.pallas import tpu as pltpu


# ----------------------------------------------------------------------------
# Fused kernel
# ----------------------------------------------------------------------------
def _lenet_kernel(xe_ref, xo_ref, m1_ref, b1_ref, m2_ref, b2_ref,
                  wf1_ref, bf1_ref, wf2_ref, bf2_ref, wf3_ref, bf3_ref,
                  o_ref, q_ref, s2_ref, *, BT):
    bias1 = b1_ref[...]            # (1, 512) f32
    bias2 = b2_ref[...]            # (1, 512) f32
    fb1 = bf1_ref[...]             # (1, 128) f32
    fb2 = bf2_ref[...]
    fb3 = bf3_ref[...]

    n1 = 14 * BT                   # conv1 rows == pool1 rows (14 per image)
    n2 = 10 * BT                   # conv2 rows (10 per image)
    x_refs = (xe_ref, xo_ref)      # even / odd input-row parity planes

    # ---- conv1 + ReLU + 2x2 max-pool, all fused.  For output-row parity p,
    # tap ki reads input row 2j+p+ki, i.e. parity (p+ki)%2 at index
    # j + (p+ki)//2 -> a contiguous slab in the parity-split layout.  Pool-W
    # is the max of the two shifted column halves (baked into m1), pool-H the
    # max over the two output parities, so q lands directly on the pooled grid.
    pooled = None
    for p in range(2):
        acc = None
        for ki in range(5):
            src = x_refs[(p + ki) % 2]
            off = ((p + ki) // 2) * BT
            slab = src[0, off:off + n1, :]                        # (14BT,128) bf16
            part = jnp.dot(slab, m1_ref[ki],
                           preferred_element_type=jnp.float32)    # (14BT,512) f32
            acc = part if acc is None else acc + part
        r = jnp.maximum(acc + bias1, 0.0)
        v = jnp.maximum(r[:, 0:256], r[:, 256:512])               # pool (W)
        pooled = v if pooled is None else jnp.maximum(pooled, v)  # pool (H)
    q_ref[...] = pooled                                           # (14BT, 256)

    # ---- conv2 + ReLU + pool-W.  Rows are the conv2 output grid (10/img);
    # every row is a valid output (no wasted MXU work).
    acc = None
    for ki in range(5):
        slab = q_ref[ki * BT: ki * BT + n2, :].astype(jnp.bfloat16)
        part = jnp.dot(slab, m2_ref[ki], preferred_element_type=jnp.float32)
        acc = part if acc is None else acc + part                 # (10BT, 512)
    r2 = jnp.maximum(acc + bias2, 0.0)
    s2_ref[...] = jnp.maximum(r2[:, 0:256], r2[:, 256:512])       # (10BT, 256)

    # ---- pool2 (H) + PyTorch-order flatten + fc1 (flatten order and the
    # strided lane layout are baked into wf1), then fc2 and the classifier.
    z = None
    for h in range(5):
        pa = s2_ref[(2 * h) * BT:(2 * h + 1) * BT, :]             # (BT, 256)
        pb = s2_ref[(2 * h + 1) * BT:(2 * h + 2) * BT, :]
        p = jnp.maximum(pa, pb).astype(jnp.bfloat16)
        part = jnp.dot(p, wf1_ref[h], preferred_element_type=jnp.float32)
        z = part if z is None else z + part                       # (BT, 128)
    z = jnp.maximum(z + fb1, 0.0)                                 # fc1 + ReLU
    z = jnp.maximum(jnp.dot(z.astype(jnp.bfloat16), wf2_ref[...],
                            preferred_element_type=jnp.float32) + fb2, 0.0)
    logits = jnp.dot(z.astype(jnp.bfloat16), wf3_ref[...],
                     preferred_element_type=jnp.float32) + fb3
    o_ref[0, :, :] = logits                                       # (BT, 128)


# ----------------------------------------------------------------------------
# One-time weight packing (plain numpy; folds im2col, pooling shifts, NCHW
# flatten order, transposes, lane padding and the bf16 cast into the weights).
# ----------------------------------------------------------------------------
def pack_params(params, n_classes=10):
    assert n_classes <= 128
    w1 = np.asarray(params["conv1_w"], np.float32)    # (6, 3, 5, 5)
    b1 = np.asarray(params["conv1_b"], np.float32)    # (6,)
    w2 = np.asarray(params["conv2_w"], np.float32)    # (16, 6, 5, 5)
    b2 = np.asarray(params["conv2_b"], np.float32)    # (16,)
    f1w = np.asarray(params["fc1_w"], np.float32)     # (120, 400)
    f1b = np.asarray(params["fc1_b"], np.float32)
    f2w = np.asarray(params["fc2_w"], np.float32)     # (84, 120)
    f2b = np.asarray(params["fc2_b"], np.float32)
    f3w = np.asarray(params["cls_w"], np.float32)     # (n_classes, 84)
    f3b = np.asarray(params["cls_b"], np.float32)

    # conv1: rows = input lane (x, c), x in [0,32), c in [0,3), padded to 128;
    # cols = output lane (x', o), x' in [0,32), o padded 6->8.  `shift` makes
    # the matmul emit the output at x'+shift; only valid outputs (<=27) kept.
    def pack_c1(shift):
        m = np.zeros((5, 32, 3, 32, 8), np.float32)
        for ki in range(5):
            for kj in range(5):
                for xp in range(32):
                    x = xp + shift + kj
                    if x < 32 and xp + shift <= 27:
                        m[ki, x, :, xp, :6] = w1[:, :, ki, kj].T   # (3, 6) [c, o]
        return m.reshape(5, 96, 256)

    m1 = np.concatenate([pack_c1(0), pack_c1(1)], axis=2)          # (5, 96, 512)
    m1 = np.pad(m1, ((0, 0), (0, 32), (0, 0)))                     # (5, 128, 512)
    b1h = np.zeros((32, 8), np.float32)
    b1h[:, :6] = b1[None, :]
    b1cat = np.concatenate([b1h.reshape(1, 256)] * 2, axis=1)      # (1, 512)

    # conv2: rows = pool1 lane (x', c) (x' on the conv1 grid, c padded 6->8);
    # cols = output lane (t, o) (t = conv2 W position, o in [0,16)).  Only
    # valid output positions (t+shift <= 9) are packed, so no garbage columns.
    def pack_c2(shift):
        m = np.zeros((5, 32, 8, 16, 16), np.float32)
        for ki in range(5):
            for kj in range(5):
                for t in range(10):
                    if t + shift <= 9:
                        x = 2 * (t + shift + kj)                   # pooled w lane
                        m[ki, x, :6, t, :] = w2[:, :, ki, kj].T    # (6, 16) [c, o]
        return m.reshape(5, 256, 256)

    m2 = np.concatenate([pack_c2(0), pack_c2(1)], axis=2)          # (5, 256, 512)
    b2h = np.tile(b2[None, :], (16, 1))                            # (16, 16)
    b2cat = np.concatenate([b2h.reshape(1, 256)] * 2, axis=1)      # (1, 512)

    # fc1: rows = pooled conv2 lane (t, c) at spatial row h; cols padded to 128.
    # PyTorch flatten order flat = c*25 + h*5 + w, with valid columns t = 2w.
    wf1 = np.zeros((5, 256, 128), np.float32)
    for h in range(5):
        for w in range(5):
            cols = np.arange(16) * 25 + h * 5 + w
            wf1[h, (2 * w) * 16:(2 * w) * 16 + 16, :120] = f1w[:, cols].T
    bf1 = np.zeros((1, 128), np.float32)
    bf1[0, :120] = f1b

    wf2 = np.zeros((128, 128), np.float32)
    wf2[:120, :84] = f2w.T
    bf2 = np.zeros((1, 128), np.float32)
    bf2[0, :84] = f2b
    wf3 = np.zeros((128, 128), np.float32)
    wf3[:84, :n_classes] = f3w.T
    bf3 = np.zeros((1, 128), np.float32)
    bf3[0, :n_classes] = f3b

    packed = dict(
        m1=jnp.asarray(m1, jnp.bfloat16), b1=jnp.asarray(b1cat),
        m2=jnp.asarray(m2, jnp.bfloat16), b2=jnp.asarray(b2cat),
        wf1=jnp.asarray(wf1, jnp.bfloat16), bf1=jnp.asarray(bf1),
        wf2=jnp.asarray(wf2, jnp.bfloat16), bf2=jnp.asarray(bf2),
        wf3=jnp.asarray(wf3, jnp.bfloat16), bf3=jnp.asarray(bf3),
    )
    return packed


_W_ORDER = ("m1", "b1", "m2", "b2", "wf1", "bf1", "wf2", "bf2", "wf3", "bf3")


def _pick_bt(batch):
    """Largest per-step batch tile that still leaves >= 2 grid steps (v7x)."""
    for bt in (16, 8, 4, 2):
        if batch % bt == 0 and batch // bt >= 2:
            return bt
    return 1


# ----------------------------------------------------------------------------
# Forward pass
# ----------------------------------------------------------------------------
@functools.partial(jax.jit, static_argnames=("n_classes",))
def lenet_forward(packed, x_nchw, n_classes=10):
    B = x_nchw.shape[0]
    BT = _pick_bt(B)
    G = B // BT

    # NCHW -> lanes (x*3 + c) padded to 128; split rows into even/odd parity
    # planes and interleave batch into sublanes: row index inside a grid block
    # is j*BT + b (spatial-major), which keeps every in-kernel read contiguous.
    xt = jnp.transpose(x_nchw, (0, 2, 3, 1)).reshape(B, 32, 96)
    xt = jnp.pad(xt, ((0, 0), (0, 0), (0, 32))).astype(jnp.bfloat16)  # (B,32,128)

    def split(par):
        xs = xt[:, par::2, :]                                   # (B, 16, 128)
        xs = xs.reshape(G, BT, 16, 128).transpose(0, 2, 1, 3)   # (G, 16, BT, 128)
        return xs.reshape(G, 16 * BT, 128)

    xe, xo = split(0), split(1)

    w_args = [packed[k] for k in _W_ORDER]

    def full_spec(a):
        zeros = (0,) * a.ndim
        return pl.BlockSpec(a.shape, lambda i, _z=zeros: _z)

    flops = int(B * 2 * (10 * 14 * 128 * 512 + 5 * 10 * 256 * 512
                         + 5 * 256 * 128 + 2 * 128 * 128))
    bytes_accessed = int(2 * B * 32 * 128 * 2
                         + sum(a.size * a.dtype.itemsize for a in w_args)
                         + B * 128 * 4)

    out = pl.pallas_call(
        functools.partial(_lenet_kernel, BT=BT),
        out_shape=jax.ShapeDtypeStruct((G, BT, 128), jnp.float32),
        grid_spec=pltpu.PrefetchScalarGridSpec(
            num_scalar_prefetch=0,
            grid=(G,),
            in_specs=[pl.BlockSpec((1, 16 * BT, 128), lambda i: (i, 0, 0)),
                      pl.BlockSpec((1, 16 * BT, 128), lambda i: (i, 0, 0))]
                     + [full_spec(a) for a in w_args],
            out_specs=pl.BlockSpec((1, BT, 128), lambda i: (i, 0, 0)),
            scratch_shapes=[pltpu.VMEM((14 * BT, 256), jnp.float32),   # pool1 out
                            pltpu.VMEM((10 * BT, 256), jnp.float32)],  # conv2 out
        ),
        compiler_params=pltpu.CompilerParams(
            dimension_semantics=("parallel",),
            vmem_limit_bytes=32 * 1024 * 1024,
        ),
        cost_estimate=pl.CostEstimate(flops=flops, transcendentals=0,
                                      bytes_accessed=bytes_accessed),
    )(xe, xo, *w_args)
    return out.reshape(B, 128)[:, :n_classes]


# ----------------------------------------------------------------------------
# Parameters (deterministic, synthetic) and pure-JAX reference
# ----------------------------------------------------------------------------
def init_params(key, n_classes=10):
    ks = jax.random.split(key, 10)
    s = 0.05
    return dict(
        conv1_w=jax.random.normal(ks[0], (6, 3, 5, 5), jnp.float32) * s,
        conv1_b=jax.random.normal(ks[1], (6,), jnp.float32) * s,
        conv2_w=jax.random.normal(ks[2], (16, 6, 5, 5), jnp.float32) * s,
        conv2_b=jax.random.normal(ks[3], (16,), jnp.float32) * s,
        fc1_w=jax.random.normal(ks[4], (120, 16 * 5 * 5), jnp.float32) * s,
        fc1_b=jax.random.normal(ks[5], (120,), jnp.float32) * s,
        fc2_w=jax.random.normal(ks[6], (84, 120), jnp.float32) * s,
        fc2_b=jax.random.normal(ks[7], (84,), jnp.float32) * s,
        cls_w=jax.random.normal(ks[8], (n_classes, 84), jnp.float32) * s,
        cls_b=jax.random.normal(ks[9], (n_classes,), jnp.float32) * s,
    )


def lenet_reference(params, x_nchw):
    """Pure-JAX reference matching the PyTorch forward (NCHW)."""
    def conv(x, w, b):
        y = lax.conv_general_dilated(
            x, w, window_strides=(1, 1), padding="VALID",
            dimension_numbers=("NCHW", "OIHW", "NCHW"))
        return jax.nn.relu(y + b.reshape(1, -1, 1, 1))

    def pool(x):
        return lax.reduce_window(
            x, -jnp.inf, lax.max, (1, 1, 2, 2), (1, 1, 2, 2), "VALID")

    out = pool(conv(x_nchw, params["conv1_w"], params["conv1_b"]))
    out = pool(conv(out, params["conv2_w"], params["conv2_b"]))
    out = out.reshape(out.shape[0], -1)
    out = jax.nn.relu(out @ params["fc1_w"].T + params["fc1_b"])
    out = jax.nn.relu(out @ params["fc2_w"].T + params["fc2_b"])
    return out @ params["cls_w"].T + params["cls_b"]


if __name__ == "__main__":
    key = jax.random.PRNGKey(0)
    k_x, k_p = jax.random.split(key)
    # LeNet expects 32x32 RGB inputs (CIFAR-style): batch=2.
    x = jax.random.normal(k_x, (2, 3, 32, 32), jnp.float32)
    params = init_params(k_p, n_classes=10)
    packed = pack_params(params, n_classes=10)

    logits = lenet_forward(packed, x, n_classes=10)
    logits = jax.block_until_ready(logits)

    ref = lenet_reference(params, x)
    assert logits.shape == (2, 10)
    # bf16 MXU operands (weights + activations) with f32 accumulation: tolerance
    # loosened vs. a pure-f32 reference per the review's correctness note.
    assert jnp.allclose(logits, ref, rtol=5e-2, atol=1e-2), (
        "mismatch vs reference: max abs err = %f"
        % float(jnp.max(jnp.abs(logits - ref))))

    print("KERNEL_OK")
</pallas_src>

<mosaic_0001>
module attributes {stable_mosaic.version = 11 : i64} {
  func.func @_lenet_kernel(%arg0: i32, %arg1: memref<1x16x128xbf16, #tpu.memory_space<vmem>>, %arg2: memref<1x16x128xbf16, #tpu.memory_space<vmem>>, %arg3: memref<5x128x512xbf16, #tpu.memory_space<vmem>>, %arg4: memref<1x512xf32, #tpu.memory_space<vmem>>, %arg5: memref<5x256x512xbf16, #tpu.memory_space<vmem>>, %arg6: memref<1x512xf32, #tpu.memory_space<vmem>>, %arg7: memref<5x256x128xbf16, #tpu.memory_space<vmem>>, %arg8: memref<1x128xf32, #tpu.memory_space<vmem>>, %arg9: memref<128x128xbf16, #tpu.memory_space<vmem>>, %arg10: memref<1x128xf32, #tpu.memory_space<vmem>>, %arg11: memref<128x128xbf16, #tpu.memory_space<vmem>>, %arg12: memref<1x128xf32, #tpu.memory_space<vmem>>, %arg13: memref<1x1x128xf32, #tpu.memory_space<vmem>>, %arg14: memref<14x256xf32, #tpu.memory_space<vmem>>, %arg15: memref<10x256xf32, #tpu.memory_space<vmem>>) attributes {dimension_semantics = [#tpu.dimension_semantics<parallel>], iteration_bounds = array<i64: 2>, scalar_prefetch = 0 : i64, scratch_operands = 2 : i64, tpu.core_type = #tpu.core_type<tc>, window_params = [{transform_indices = @transform_0, window_bounds = array<i64: 1, 16, 128>}, {transform_indices = @transform_1, window_bounds = array<i64: 1, 16, 128>}, {pipeline_mode = #tpu.pipeline_mode<synchronous>, transform_indices = @transform_2, window_bounds = array<i64: 5, 128, 512>}, {pipeline_mode = #tpu.pipeline_mode<synchronous>, transform_indices = @transform_3, window_bounds = array<i64: 1, 512>}, {pipeline_mode = #tpu.pipeline_mode<synchronous>, transform_indices = @transform_4, window_bounds = array<i64: 5, 256, 512>}, {pipeline_mode = #tpu.pipeline_mode<synchronous>, transform_indices = @transform_5, window_bounds = array<i64: 1, 512>}, {pipeline_mode = #tpu.pipeline_mode<synchronous>, transform_indices = @transform_6, window_bounds = array<i64: 5, 256, 128>}, {pipeline_mode = #tpu.pipeline_mode<synchronous>, transform_indices = @transform_7, window_bounds = array<i64: 1, 128>}, {pipeline_mode = #tpu.pipeline_mode<synchronous>, transform_indices = @transform_8, window_bounds = array<i64: 128, 128>}, {pipeline_mode = #tpu.pipeline_mode<synchronous>, transform_indices = @transform_9, window_bounds = array<i64: 1, 128>}, {pipeline_mode = #tpu.pipeline_mode<synchronous>, transform_indices = @transform_10, window_bounds = array<i64: 128, 128>}, {pipeline_mode = #tpu.pipeline_mode<synchronous>, transform_indices = @transform_11, window_bounds = array<i64: 1, 128>}, {transform_indices = @transform_12, window_bounds = array<i64: 1, 1, 128>}]} {
    %c0 = arith.constant 0 : index
    %c0_0 = arith.constant 0 : index
    %0 = vector.load %arg4[%c0, %c0_0] : memref<1x512xf32, #tpu.memory_space<vmem>>, vector<1x512xf32>
    %c0_1 = arith.constant 0 : index
    %c0_2 = arith.constant 0 : index
    %1 = vector.load %arg6[%c0_1, %c0_2] : memref<1x512xf32, #tpu.memory_space<vmem>>, vector<1x512xf32>
    %c0_3 = arith.constant 0 : index
    %c0_4 = arith.constant 0 : index
    %2 = vector.load %arg8[%c0_3, %c0_4] : memref<1x128xf32, #tpu.memory_space<vmem>>, vector<1x128xf32>
    %c0_5 = arith.constant 0 : index
    %c0_6 = arith.constant 0 : index
    %3 = vector.load %arg10[%c0_5, %c0_6] : memref<1x128xf32, #tpu.memory_space<vmem>>, vector<1x128xf32>
    %c0_7 = arith.constant 0 : index
    %c0_8 = arith.constant 0 : index
    %4 = vector.load %arg12[%c0_7, %c0_8] : memref<1x128xf32, #tpu.memory_space<vmem>>, vector<1x128xf32>
    %c0_9 = arith.constant 0 : index
    %c0_10 = arith.constant 0 : index
    %c0_11 = arith.constant 0 : index
    %5 = vector.load %arg1[%c0_9, %c0_10, %c0_11] : memref<1x16x128xbf16, #tpu.memory_space<vmem>>, vector<1x14x128xbf16>
    %6 = vector.shape_cast %5 : vector<1x14x128xbf16> to vector<14x128xbf16>
    %c0_12 = arith.constant 0 : index
    %c0_13 = arith.constant 0 : index
    %c0_14 = arith.constant 0 : index
    %7 = vector.load %arg3[%c0_12, %c0_13, %c0_14] : memref<5x128x512xbf16, #tpu.memory_space<vmem>>, vector<1x128x512xbf16>
    %8 = vector.shape_cast %7 : vector<1x128x512xbf16> to vector<128x512xbf16>
    %cst = arith.constant dense<0.000000e+00> : vector<14x512xf32>
    %9 = tpu.matmul %6, %8, %cst {dimension_numbers = #tpu.dot_dimension_numbers<[1], [0], [0], [1], [0, 0, 1, 1], [], []>} : vector<14x128xbf16>, vector<128x512xbf16>, vector<14x512xf32> -> vector<14x512xf32>
    %c0_15 = arith.constant 0 : index
    %c0_16 = arith.constant 0 : index
    %c0_17 = arith.constant 0 : index
    %10 = vector.load %arg2[%c0_15, %c0_16, %c0_17] : memref<1x16x128xbf16, #tpu.memory_space<vmem>>, vector<1x14x128xbf16>
    %11 = vector.shape_cast %10 : vector<1x14x128xbf16> to vector<14x128xbf16>
    %c1 = arith.constant 1 : index
    %c0_18 = arith.constant 0 : index
    %c0_19 = arith.constant 0 : index
    %12 = vector.load %arg3[%c1, %c0_18, %c0_19] : memref<5x128x512xbf16, #tpu.memory_space<vmem>>, vector<1x128x512xbf16>
    %13 = vector.shape_cast %12 : vector<1x128x512xbf16> to vector<128x512xbf16>
    %cst_20 = arith.constant dense<0.000000e+00> : vector<14x512xf32>
    %14 = tpu.matmul %11, %13, %cst_20 {dimension_numbers = #tpu.dot_dimension_numbers<[1], [0], [0], [1], [0, 0, 1, 1], [], []>} : vector<14x128xbf16>, vector<128x512xbf16>, vector<14x512xf32> -> vector<14x512xf32>
    %15 = arith.addf %9, %14 : vector<14x512xf32>
    %c0_21 = arith.constant 0 : index
    %c1_22 = arith.constant 1 : index
    %c0_23 = arith.constant 0 : index
    %16 = vector.load %arg1[%c0_21, %c1_22, %c0_23] : memref<1x16x128xbf16, #tpu.memory_space<vmem>>, vector<1x14x128xbf16>
    %17 = vector.shape_cast %16 : vector<1x14x128xbf16> to vector<14x128xbf16>
    %c2 = arith.constant 2 : index
    %c0_24 = arith.constant 0 : index
    %c0_25 = arith.constant 0 : index
    %18 = vector.load %arg3[%c2, %c0_24, %c0_25] : memref<5x128x512xbf16, #tpu.memory_space<vmem>>, vector<1x128x512xbf16>
    %19 = vector.shape_cast %18 : vector<1x128x512xbf16> to vector<128x512xbf16>
    %cst_26 = arith.constant dense<0.000000e+00> : vector<14x512xf32>
    %20 = tpu.matmul %17, %19, %cst_26 {dimension_numbers = #tpu.dot_dimension_numbers<[1], [0], [0], [1], [0, 0, 1, 1], [], []>} : vector<14x128xbf16>, vector<128x512xbf16>, vector<14x512xf32> -> vector<14x512xf32>
    %21 = arith.addf %15, %20 : vector<14x512xf32>
    %c0_27 = arith.constant 0 : index
    %c1_28 = arith.constant 1 : index
    %c0_29 = arith.constant 0 : index
    %22 = vector.load %arg2[%c0_27, %c1_28, %c0_29] : memref<1x16x128xbf16, #tpu.memory_space<vmem>>, vector<1x14x128xbf16>
    %23 = vector.shape_cast %22 : vector<1x14x128xbf16> to vector<14x128xbf16>
    %c3 = arith.constant 3 : index
    %c0_30 = arith.constant 0 : index
    %c0_31 = arith.constant 0 : index
    %24 = vector.load %arg3[%c3, %c0_30, %c0_31] : memref<5x128x512xbf16, #tpu.memory_space<vmem>>, vector<1x128x512xbf16>
    %25 = vector.shape_cast %24 : vector<1x128x512xbf16> to vector<128x512xbf16>
    %cst_32 = arith.constant dense<0.000000e+00> : vector<14x512xf32>
    %26 = tpu.matmul %23, %25, %cst_32 {dimension_numbers = #tpu.dot_dimension_numbers<[1], [0], [0], [1], [0, 0, 1, 1], [], []>} : vector<14x128xbf16>, vector<128x512xbf16>, vector<14x512xf32> -> vector<14x512xf32>
    %27 = arith.addf %21, %26 : vector<14x512xf32>
    %c0_33 = arith.constant 0 : index
    %c2_34 = arith.constant 2 : index
    %c0_35 = arith.constant 0 : index
    %28 = vector.load %arg1[%c0_33, %c2_34, %c0_35] : memref<1x16x128xbf16, #tpu.memory_space<vmem>>, vector<1x14x128xbf16>
    %29 = vector.shape_cast %28 : vector<1x14x128xbf16> to vector<14x128xbf16>
    %c4 = arith.constant 4 : index
    %c0_36 = arith.constant 0 : index
    %c0_37 = arith.constant 0 : index
    %30 = vector.load %arg3[%c4, %c0_36, %c0_37] : memref<5x128x512xbf16, #tpu.memory_space<vmem>>, vector<1x128x512xbf16>
    %31 = vector.shape_cast %30 : vector<1x128x512xbf16> to vector<128x512xbf16>
    %cst_38 = arith.constant dense<0.000000e+00> : vector<14x512xf32>
    %32 = tpu.matmul %29, %31, %cst_38 {dimension_numbers = #tpu.dot_dimension_numbers<[1], [0], [0], [1], [0, 0, 1, 1], [], []>} : vector<14x128xbf16>, vector<128x512xbf16>, vector<14x512xf32> -> vector<14x512xf32>
    %33 = arith.addf %27, %32 : vector<14x512xf32>
    %34 = vector.broadcast %0 : vector<1x512xf32> to vector<14x512xf32>
    %35 = arith.addf %33, %34 : vector<14x512xf32>
    %cst_39 = arith.constant 0.000000e+00 : f32
    %36 = vector.broadcast %cst_39 : f32 to vector<14x512xf32>
    %37 = arith.maximumf %35, %36 : vector<14x512xf32>
    %38 = vector.extract_strided_slice %37 {offsets = [0, 0], sizes = [14, 256], strides = [1, 1]} : vector<14x512xf32> to vector<14x256xf32>
    %39 = vector.extract_strided_slice %37 {offsets = [0, 256], sizes = [14, 256], strides = [1, 1]} : vector<14x512xf32> to vector<14x256xf32>
    %40 = arith.maximumf %38, %39 : vector<14x256xf32>
    %c0_40 = arith.constant 0 : index
    %c0_41 = arith.constant 0 : index
    %c0_42 = arith.constant 0 : index
    %41 = vector.load %arg2[%c0_40, %c0_41, %c0_42] : memref<1x16x128xbf16, #tpu.memory_space<vmem>>, vector<1x14x128xbf16>
    %42 = vector.shape_cast %41 : vector<1x14x128xbf16> to vector<14x128xbf16>
    %c0_43 = arith.constant 0 : index
    %c0_44 = arith.constant 0 : index
    %c0_45 = arith.constant 0 : index
    %43 = vector.load %arg3[%c0_43, %c0_44, %c0_45] : memref<5x128x512xbf16, #tpu.memory_space<vmem>>, vector<1x128x512xbf16>
    %44 = vector.shape_cast %43 : vector<1x128x512xbf16> to vector<128x512xbf16>
    %cst_46 = arith.constant dense<0.000000e+00> : vector<14x512xf32>
    %45 = tpu.matmul %42, %44, %cst_46 {dimension_numbers = #tpu.dot_dimension_numbers<[1], [0], [0], [1], [0, 0, 1, 1], [], []>} : vector<14x128xbf16>, vector<128x512xbf16>, vector<14x512xf32> -> vector<14x512xf32>
    %c0_47 = arith.constant 0 : index
    %c1_48 = arith.constant 1 : index
    %c0_49 = arith.constant 0 : index
    %46 = vector.load %arg1[%c0_47, %c1_48, %c0_49] : memref<1x16x128xbf16, #tpu.memory_space<vmem>>, vector<1x14x128xbf16>
    %47 = vector.shape_cast %46 : vector<1x14x128xbf16> to vector<14x128xbf16>
    %c1_50 = arith.constant 1 : index
    %c0_51 = arith.constant 0 : index
    %c0_52 = arith.constant 0 : index
    %48 = vector.load %arg3[%c1_50, %c0_51, %c0_52] : memref<5x128x512xbf16, #tpu.memory_space<vmem>>, vector<1x128x512xbf16>
    %49 = vector.shape_cast %48 : vector<1x128x512xbf16> to vector<128x512xbf16>
    %cst_53 = arith.constant dense<0.000000e+00> : vector<14x512xf32>
    %50 = tpu.matmul %47, %49, %cst_53 {dimension_numbers = #tpu.dot_dimension_numbers<[1], [0], [0], [1], [0, 0, 1, 1], [], []>} : vector<14x128xbf16>, vector<128x512xbf16>, vector<14x512xf32> -> vector<14x512xf32>
    %51 = arith.addf %45, %50 : vector<14x512xf32>
    %c0_54 = arith.constant 0 : index
    %c1_55 = arith.constant 1 : index
    %c0_56 = arith.constant 0 : index
    %52 = vector.load %arg2[%c0_54, %c1_55, %c0_56] : memref<1x16x128xbf16, #tpu.memory_space<vmem>>, vector<1x14x128xbf16>
    %53 = vector.shape_cast %52 : vector<1x14x128xbf16> to vector<14x128xbf16>
    %c2_57 = arith.constant 2 : index
    %c0_58 = arith.constant 0 : index
    %c0_59 = arith.constant 0 : index
    %54 = vector.load %arg3[%c2_57, %c0_58, %c0_59] : memref<5x128x512xbf16, #tpu.memory_space<vmem>>, vector<1x128x512xbf16>
    %55 = vector.shape_cast %54 : vector<1x128x512xbf16> to vector<128x512xbf16>
    %cst_60 = arith.constant dense<0.000000e+00> : vector<14x512xf32>
    %56 = tpu.matmul %53, %55, %cst_60 {dimension_numbers = #tpu.dot_dimension_numbers<[1], [0], [0], [1], [0, 0, 1, 1], [], []>} : vector<14x128xbf16>, vector<128x512xbf16>, vector<14x512xf32> -> vector<14x512xf32>
    %57 = arith.addf %51, %56 : vector<14x512xf32>
    %c0_61 = arith.constant 0 : index
    %c2_62 = arith.constant 2 : index
    %c0_63 = arith.constant 0 : index
    %58 = vector.load %arg1[%c0_61, %c2_62, %c0_63] : memref<1x16x128xbf16, #tpu.memory_space<vmem>>, vector<1x14x128xbf16>
    %59 = vector.shape_cast %58 : vector<1x14x128xbf16> to vector<14x128xbf16>
    %c3_64 = arith.constant 3 : index
    %c0_65 = arith.constant 0 : index
    %c0_66 = arith.constant 0 : index
    %60 = vector.load %arg3[%c3_64, %c0_65, %c0_66] : memref<5x128x512xbf16, #tpu.memory_space<vmem>>, vector<1x128x512xbf16>
    %61 = vector.shape_cast %60 : vector<1x128x512xbf16> to vector<128x512xbf16>
    %cst_67 = arith.constant dense<0.000000e+00> : vector<14x512xf32>
    %62 = tpu.matmul %59, %61, %cst_67 {dimension_numbers = #tpu.dot_dimension_numbers<[1], [0], [0], [1], [0, 0, 1, 1], [], []>} : vector<14x128xbf16>, vector<128x512xbf16>, vector<14x512xf32> -> vector<14x512xf32>
    %63 = arith.addf %57, %62 : vector<14x512xf32>
    %c0_68 = arith.constant 0 : index
    %c2_69 = arith.constant 2 : index
    %c0_70 = arith.constant 0 : index
    %64 = vector.load %arg2[%c0_68, %c2_69, %c0_70] : memref<1x16x128xbf16, #tpu.memory_space<vmem>>, vector<1x14x128xbf16>
    %65 = vector.shape_cast %64 : vector<1x14x128xbf16> to vector<14x128xbf16>
    %c4_71 = arith.constant 4 : index
    %c0_72 = arith.constant 0 : index
    %c0_73 = arith.constant 0 : index
    %66 = vector.load %arg3[%c4_71, %c0_72, %c0_73] : memref<5x128x512xbf16, #tpu.memory_space<vmem>>, vector<1x128x512xbf16>
    %67 = vector.shape_cast %66 : vector<1x128x512xbf16> to vector<128x512xbf16>
    %cst_74 = arith.constant dense<0.000000e+00> : vector<14x512xf32>
    %68 = tpu.matmul %65, %67, %cst_74 {dimension_numbers = #tpu.dot_dimension_numbers<[1], [0], [0], [1], [0, 0, 1, 1], [], []>} : vector<14x128xbf16>, vector<128x512xbf16>, vector<14x512xf32> -> vector<14x512xf32>
    %69 = arith.addf %63, %68 : vector<14x512xf32>
    %70 = vector.broadcast %0 : vector<1x512xf32> to vector<14x512xf32>
    %71 = arith.addf %69, %70 : vector<14x512xf32>
    %cst_75 = arith.constant 0.000000e+00 : f32
    %72 = vector.broadcast %cst_75 : f32 to vector<14x512xf32>
    %73 = arith.maximumf %71, %72 : vector<14x512xf32>
    %74 = vector.extract_strided_slice %73 {offsets = [0, 0], sizes = [14, 256], strides = [1, 1]} : vector<14x512xf32> to vector<14x256xf32>
    %75 = vector.extract_strided_slice %73 {offsets = [0, 256], sizes = [14, 256], strides = [1, 1]} : vector<14x512xf32> to vector<14x256xf32>
    %76 = arith.maximumf %74, %75 : vector<14x256xf32>
    %77 = arith.maximumf %40, %76 : vector<14x256xf32>
    %c0_76 = arith.constant 0 : index
    %c0_77 = arith.constant 0 : index
    %78 = vector.load %arg14[%c0_76, %c0_77] : memref<14x256xf32, #tpu.memory_space<vmem>>, vector<14x256xf32>
    tpu.vector_store %arg14[%c0_76, %c0_77], %77 {strides = array<i32>} : memref<14x256xf32, #tpu.memory_space<vmem>>, vector<14x256xf32>,
    %c0_78 = arith.constant 0 : index
    %c0_79 = arith.constant 0 : index
    %79 = vector.load %arg14[%c0_78, %c0_79] : memref<14x256xf32, #tpu.memory_space<vmem>>, vector<10x256xf32>
    %80 = arith.truncf %79 : vector<10x256xf32> to vector<10x256xbf16>
    %c0_80 = arith.constant 0 : index
    %c0_81 = arith.constant 0 : index
    %c0_82 = arith.constant 0 : index
    %81 = vector.load %arg5[%c0_80, %c0_81, %c0_82] : memref<5x256x512xbf16, #tpu.memory_space<vmem>>, vector<1x256x512xbf16>
    %82 = vector.shape_cast %81 : vector<1x256x512xbf16> to vector<256x512xbf16>
    %cst_83 = arith.constant dense<0.000000e+00> : vector<10x512xf32>
    %83 = tpu.matmul %80, %82, %cst_83 {dimension_numbers = #tpu.dot_dimension_numbers<[1], [0], [0], [1], [0, 0, 1, 1], [], []>} : vector<10x256xbf16>, vector<256x512xbf16>, vector<10x512xf32> -> vector<10x512xf32>
    %c1_84 = arith.constant 1 : index
    %c0_85 = arith.constant 0 : index
    %84 = vector.load %arg14[%c1_84, %c0_85] : memref<14x256xf32, #tpu.memory_space<vmem>>, vector<10x256xf32>
    %85 = arith.truncf %84 : vector<10x256xf32> to vector<10x256xbf16>
    %c1_86 = arith.constant 1 : index
    %c0_87 = arith.constant 0 : index
    %c0_88 = arith.constant 0 : index
    %86 = vector.load %arg5[%c1_86, %c0_87, %c0_88] : memref<5x256x512xbf16, #tpu.memory_space<vmem>>, vector<1x256x512xbf16>
    %87 = vector.shape_cast %86 : vector<1x256x512xbf16> to vector<256x512xbf16>
    %cst_89 = arith.constant dense<0.000000e+00> : vector<10x512xf32>
    %88 = tpu.matmul %85, %87, %cst_89 {dimension_numbers = #tpu.dot_dimension_numbers<[1], [0], [0], [1], [0, 0, 1, 1], [], []>} : vector<10x256xbf16>, vector<256x512xbf16>, vector<10x512xf32> -> vector<10x512xf32>
    %89 = arith.addf %83, %88 : vector<10x512xf32>
    %c2_90 = arith.constant 2 : index
    %c0_91 = arith.constant 0 : index
    %90 = vector.load %arg14[%c2_90, %c0_91] : memref<14x256xf32, #tpu.memory_space<vmem>>, vector<10x256xf32>
    %91 = arith.truncf %90 : vector<10x256xf32> to vector<10x256xbf16>
    %c2_92 = arith.constant 2 : index
    %c0_93 = arith.constant 0 : index
    %c0_94 = arith.constant 0 : index
    %92 = vector.load %arg5[%c2_92, %c0_93, %c0_94] : memref<5x256x512xbf16, #tpu.memory_space<vmem>>, vector<1x256x512xbf16>
    %93 = vector.shape_cast %92 : vector<1x256x512xbf16> to vector<256x512xbf16>
    %cst_95 = arith.constant dense<0.000000e+00> : vector<10x512xf32>
    %94 = tpu.matmul %91, %93, %cst_95 {dimension_numbers = #tpu.dot_dimension_numbers<[1], [0], [0], [1], [0, 0, 1, 1], [], []>} : vector<10x256xbf16>, vector<256x512xbf16>, vector<10x512xf32> -> vector<10x512xf32>
    %95 = arith.addf %89, %94 : vector<10x512xf32>
    %c3_96 = arith.constant 3 : index
    %c0_97 = arith.constant 0 : index
    %96 = vector.load %arg14[%c3_96, %c0_97] : memref<14x256xf32, #tpu.memory_space<vmem>>, vector<10x256xf32>
    %97 = arith.truncf %96 : vector<10x256xf32> to vector<10x256xbf16>
    %c3_98 = arith.constant 3 : index
    %c0_99 = arith.constant 0 : index
    %c0_100 = arith.constant 0 : index
    %98 = vector.load %arg5[%c3_98, %c0_99, %c0_100] : memref<5x256x512xbf16, #tpu.memory_space<vmem>>, vector<1x256x512xbf16>
    %99 = vector.shape_cast %98 : vector<1x256x512xbf16> to vector<256x512xbf16>
    %cst_101 = arith.constant dense<0.000000e+00> : vector<10x512xf32>
    %100 = tpu.matmul %97, %99, %cst_101 {dimension_numbers = #tpu.dot_dimension_numbers<[1], [0], [0], [1], [0, 0, 1, 1], [], []>} : vector<10x256xbf16>, vector<256x512xbf16>, vector<10x512xf32> -> vector<10x512xf32>
    %101 = arith.addf %95, %100 : vector<10x512xf32>
    %c4_102 = arith.constant 4 : index
    %c0_103 = arith.constant 0 : index
    %102 = vector.load %arg14[%c4_102, %c0_103] : memref<14x256xf32, #tpu.memory_space<vmem>>, vector<10x256xf32>
    %103 = arith.truncf %102 : vector<10x256xf32> to vector<10x256xbf16>
    %c4_104 = arith.constant 4 : index
    %c0_105 = arith.constant 0 : index
    %c0_106 = arith.constant 0 : index
    %104 = vector.load %arg5[%c4_104, %c0_105, %c0_106] : memref<5x256x512xbf16, #tpu.memory_space<vmem>>, vector<1x256x512xbf16>
    %105 = vector.shape_cast %104 : vector<1x256x512xbf16> to vector<256x512xbf16>
    %cst_107 = arith.constant dense<0.000000e+00> : vector<10x512xf32>
    %106 = tpu.matmul %103, %105, %cst_107 {dimension_numbers = #tpu.dot_dimension_numbers<[1], [0], [0], [1], [0, 0, 1, 1], [], []>} : vector<10x256xbf16>, vector<256x512xbf16>, vector<10x512xf32> -> vector<10x512xf32>
    %107 = arith.addf %101, %106 : vector<10x512xf32>
    %108 = vector.broadcast %1 : vector<1x512xf32> to vector<10x512xf32>
    %109 = arith.addf %107, %108 : vector<10x512xf32>
    %cst_108 = arith.constant 0.000000e+00 : f32
    %110 = vector.broadcast %cst_108 : f32 to vector<10x512xf32>
    %111 = arith.maximumf %109, %110 : vector<10x512xf32>
    %112 = vector.extract_strided_slice %111 {offsets = [0, 0], sizes = [10, 256], strides = [1, 1]} : vector<10x512xf32> to vector<10x256xf32>
    %113 = vector.extract_strided_slice %111 {offsets = [0, 256], sizes = [10, 256], strides = [1, 1]} : vector<10x512xf32> to vector<10x256xf32>
    %114 = arith.maximumf %112, %113 : vector<10x256xf32>
    %c0_109 = arith.constant 0 : index
    %c0_110 = arith.constant 0 : index
    %115 = vector.load %arg15[%c0_109, %c0_110] : memref<10x256xf32, #tpu.memory_space<vmem>>, vector<10x256xf32>
    tpu.vector_store %arg15[%c0_109, %c0_110], %114 {strides = array<i32>} : memref<10x256xf32, #tpu.memory_space<vmem>>, vector<10x256xf32>,
    %c0_111 = arith.constant 0 : index
    %c0_112 = arith.constant 0 : index
    %116 = vector.load %arg15[%c0_111, %c0_112] : memref<10x256xf32, #tpu.memory_space<vmem>>, vector<1x256xf32>
    %c1_113 = arith.constant 1 : index
    %c0_114 = arith.constant 0 : index
    %117 = vector.load %arg15[%c1_113, %c0_114] : memref<10x256xf32, #tpu.memory_space<vmem>>, vector<1x256xf32>
    %118 = arith.maximumf %116, %117 : vector<1x256xf32>
    %119 = arith.truncf %118 : vector<1x256xf32> to vector<1x256xbf16>
    %c0_115 = arith.constant 0 : index
    %c0_116 = arith.constant 0 : index
    %c0_117 = arith.constant 0 : index
    %120 = vector.load %arg7[%c0_115, %c0_116, %c0_117] : memref<5x256x128xbf16, #tpu.memory_space<vmem>>, vector<1x256x128xbf16>
    %121 = vector.shape_cast %120 : vector<1x256x128xbf16> to vector<256x128xbf16>
    %cst_118 = arith.constant dense<0.000000e+00> : vector<1x128xf32>
    %122 = tpu.matmul %119, %121, %cst_118 {dimension_numbers = #tpu.dot_dimension_numbers<[1], [0], [0], [1], [0, 0, 1, 1], [], []>} : vector<1x256xbf16>, vector<256x128xbf16>, vector<1x128xf32> -> vector<1x128xf32>
    %c2_119 = arith.constant 2 : index
    %c0_120 = arith.constant 0 : index
    %123 = vector.load %arg15[%c2_119, %c0_120] : memref<10x256xf32, #tpu.memory_space<vmem>>, vector<1x256xf32>
    %c3_121 = arith.constant 3 : index
    %c0_122 = arith.constant 0 : index
    %124 = vector.load %arg15[%c3_121, %c0_122] : memref<10x256xf32, #tpu.memory_space<vmem>>, vector<1x256xf32>
    %125 = arith.maximumf %123, %124 : vector<1x256xf32>
    %126 = arith.truncf %125 : vector<1x256xf32> to vector<1x256xbf16>
    %c1_123 = arith.constant 1 : index
    %c0_124 = arith.constant 0 : index
    %c0_125 = arith.constant 0 : index
    %127 = vector.load %arg7[%c1_123, %c0_124, %c0_125] : memref<5x256x128xbf16, #tpu.memory_space<vmem>>, vector<1x256x128xbf16>
    %128 = vector.shape_cast %127 : vector<1x256x128xbf16> to vector<256x128xbf16>
    %cst_126 = arith.constant dense<0.000000e+00> : vector<1x128xf32>
    %129 = tpu.matmul %126, %128, %cst_126 {dimension_numbers = #tpu.dot_dimension_numbers<[1], [0], [0], [1], [0, 0, 1, 1], [], []>} : vector<1x256xbf16>, vector<256x128xbf16>, vector<1x128xf32> -> vector<1x128xf32>
    %130 = arith.addf %122, %129 : vector<1x128xf32>
    %c4_127 = arith.constant 4 : index
    %c0_128 = arith.constant 0 : index
    %131 = vector.load %arg15[%c4_127, %c0_128] : memref<10x256xf32, #tpu.memory_space<vmem>>, vector<1x256xf32>
    %c5 = arith.constant 5 : index
    %c0_129 = arith.constant 0 : index
    %132 = vector.load %arg15[%c5, %c0_129] : memref<10x256xf32, #tpu.memory_space<vmem>>, vector<1x256xf32>
    %133 = arith.maximumf %131, %132 : vector<1x256xf32>
    %134 = arith.truncf %133 : vector<1x256xf32> to vector<1x256xbf16>
    %c2_130 = arith.constant 2 : index
    %c0_131 = arith.constant 0 : index
    %c0_132 = arith.constant 0 : index
    %135 = vector.load %arg7[%c2_130, %c0_131, %c0_132] : memref<5x256x128xbf16, #tpu.memory_space<vmem>>, vector<1x256x128xbf16>
    %136 = vector.shape_cast %135 : vector<1x256x128xbf16> to vector<256x128xbf16>
    %cst_133 = arith.constant dense<0.000000e+00> : vector<1x128xf32>
    %137 = tpu.matmul %134, %136, %cst_133 {dimension_numbers = #tpu.dot_dimension_numbers<[1], [0], [0], [1], [0, 0, 1, 1], [], []>} : vector<1x256xbf16>, vector<256x128xbf16>, vector<1x128xf32> -> vector<1x128xf32>
    %138 = arith.addf %130, %137 : vector<1x128xf32>
    %c6 = arith.constant 6 : index
    %c0_134 = arith.constant 0 : index
    %139 = vector.load %arg15[%c6, %c0_134] : memref<10x256xf32, #tpu.memory_space<vmem>>, vector<1x256xf32>
    %c7 = arith.constant 7 : index
    %c0_135 = arith.constant 0 : index
    %140 = vector.load %arg15[%c7, %c0_135] : memref<10x256xf32, #tpu.memory_space<vmem>>, vector<1x256xf32>
    %141 = arith.maximumf %139, %140 : vector<1x256xf32>
    %142 = arith.truncf %141 : vector<1x256xf32> to vector<1x256xbf16>
    %c3_136 = arith.constant 3 : index
    %c0_137 = arith.constant 0 : index
    %c0_138 = arith.constant 0 : index
    %143 = vector.load %arg7[%c3_136, %c0_137, %c0_138] : memref<5x256x128xbf16, #tpu.memory_space<vmem>>, vector<1x256x128xbf16>
    %144 = vector.shape_cast %143 : vector<1x256x128xbf16> to vector<256x128xbf16>
    %cst_139 = arith.constant dense<0.000000e+00> : vector<1x128xf32>
    %145 = tpu.matmul %142, %144, %cst_139 {dimension_numbers = #tpu.dot_dimension_numbers<[1], [0], [0], [1], [0, 0, 1, 1], [], []>} : vector<1x256xbf16>, vector<256x128xbf16>, vector<1x128xf32> -> vector<1x128xf32>
    %146 = arith.addf %138, %145 : vector<1x128xf32>
    %c8 = arith.constant 8 : index
    %c0_140 = arith.constant 0 : index
    %147 = vector.load %arg15[%c8, %c0_140] : memref<10x256xf32, #tpu.memory_space<vmem>>, vector<1x256xf32>
    %c9 = arith.constant 9 : index
    %c0_141 = arith.constant 0 : index
    %148 = vector.load %arg15[%c9, %c0_141] : memref<10x256xf32, #tpu.memory_space<vmem>>, vector<1x256xf32>
    %149 = arith.maximumf %147, %148 : vector<1x256xf32>
    %150 = arith.truncf %149 : vector<1x256xf32> to vector<1x256xbf16>
    %c4_142 = arith.constant 4 : index
    %c0_143 = arith.constant 0 : index
    %c0_144 = arith.constant 0 : index
    %151 = vector.load %arg7[%c4_142, %c0_143, %c0_144] : memref<5x256x128xbf16, #tpu.memory_space<vmem>>, vector<1x256x128xbf16>
    %152 = vector.shape_cast %151 : vector<1x256x128xbf16> to vector<256x128xbf16>
    %cst_145 = arith.constant dense<0.000000e+00> : vector<1x128xf32>
    %153 = tpu.matmul %150, %152, %cst_145 {dimension_numbers = #tpu.dot_dimension_numbers<[1], [0], [0], [1], [0, 0, 1, 1], [], []>} : vector<1x256xbf16>, vector<256x128xbf16>, vector<1x128xf32> -> vector<1x128xf32>
    %154 = arith.addf %146, %153 : vector<1x128xf32>
    %155 = arith.addf %154, %2 : vector<1x128xf32>
    %cst_146 = arith.constant 0.000000e+00 : f32
    %156 = vector.broadcast %cst_146 : f32 to vector<1x128xf32>
    %157 = arith.maximumf %155, %156 : vector<1x128xf32>
    %158 = arith.truncf %157 : vector<1x128xf32> to vector<1x128xbf16>
    %c0_147 = arith.constant 0 : index
    %c0_148 = arith.constant 0 : index
    %159 = vector.load %arg9[%c0_147, %c0_148] : memref<128x128xbf16, #tpu.memory_space<vmem>>, vector<128x128xbf16>
    %cst_149 = arith.constant dense<0.000000e+00> : vector<1x128xf32>
    %160 = tpu.matmul %158, %159, %cst_149 {dimension_numbers = #tpu.dot_dimension_numbers<[1], [0], [0], [1], [0, 0, 1, 1], [], []>} : vector<1x128xbf16>, vector<128x128xbf16>, vector<1x128xf32> -> vector<1x128xf32>
    %161 = arith.addf %160, %3 : vector<1x128xf32>
    %cst_150 = arith.constant 0.000000e+00 : f32
    %162 = vector.broadcast %cst_150 : f32 to vector<1x128xf32>
    %163 = arith.maximumf %161, %162 : vector<1x128xf32>
    %164 = arith.truncf %163 : vector<1x128xf32> to vector<1x128xbf16>
    %c0_151 = arith.constant 0 : index
    %c0_152 = arith.constant 0 : index
    %165 = vector.load %arg11[%c0_151, %c0_152] : memref<128x128xbf16, #tpu.memory_space<vmem>>, vector<128x128xbf16>
    %cst_153 = arith.constant dense<0.000000e+00> : vector<1x128xf32>
    %166 = tpu.matmul %164, %165, %cst_153 {dimension_numbers = #tpu.dot_dimension_numbers<[1], [0], [0], [1], [0, 0, 1, 1], [], []>} : vector<1x128xbf16>, vector<128x128xbf16>, vector<1x128xf32> -> vector<1x128xf32>
    %167 = arith.addf %166, %4 : vector<1x128xf32>
    %c0_154 = arith.constant 0 : index
    %c0_155 = arith.constant 0 : index
    %c0_156 = arith.constant 0 : index
    %168 = vector.load %arg13[%c0_154, %c0_155, %c0_156] : memref<1x1x128xf32, #tpu.memory_space<vmem>>, vector<1x1x128xf32>
    %169 = vector.shape_cast %168 : vector<1x1x128xf32> to vector<1x128xf32>
    %170 = vector.shape_cast %167 : vector<1x128xf32> to vector<1x1x128xf32>
    tpu.vector_store %arg13[%c0_154, %c0_155, %c0_156], %170 {strides = array<i32>} : memref<1x1x128xf32, #tpu.memory_space<vmem>>, vector<1x1x128xf32>,
    return
  }
  func.func @transform_0(%arg0: i32) -> (i32, i32, i32) {
    %c0_i32 = arith.constant 0 : i32
    %c0_i32_0 = arith.constant 0 : i32
    %c0_i32_1 = arith.constant 0 : i32
    return %arg0, %c0_i32, %c0_i32_0 : i32, i32, i32
  }
  func.func @transform_1(%arg0: i32) -> (i32, i32, i32) {
    %c0_i32 = arith.constant 0 : i32
    %c0_i32_0 = arith.constant 0 : i32
    %c0_i32_1 = arith.constant 0 : i32
    return %arg0, %c0_i32, %c0_i32_0 : i32, i32, i32
  }
  func.func @transform_2(%arg0: i32) -> (i32, i32, i32) {
    %c0_i32 = arith.constant 0 : i32
    %c0_i32_0 = arith.constant 0 : i32
    %c0_i32_1 = arith.constant 0 : i32
    %c0_i32_2 = arith.constant 0 : i32
    return %c0_i32, %c0_i32_0, %c0_i32_1 : i32, i32, i32
  }
  func.func @transform_3(%arg0: i32) -> (i32, i32) {
    %c0_i32 = arith.constant 0 : i32
    %c0_i32_0 = arith.constant 0 : i32
    %c0_i32_1 = arith.constant 0 : i32
    return %c0_i32, %c0_i32_0 : i32, i32
  }
  func.func @transform_4(%arg0: i32) -> (i32, i32, i32) {
    %c0_i32 = arith.constant 0 : i32
    %c0_i32_0 = arith.constant 0 : i32
    %c0_i32_1 = arith.constant 0 : i32
    %c0_i32_2 = arith.constant 0 : i32
    return %c0_i32, %c0_i32_0, %c0_i32_1 : i32, i32, i32
  }
  func.func @transform_5(%arg0: i32) -> (i32, i32) {
    %c0_i32 = arith.constant 0 : i32
    %c0_i32_0 = arith.constant 0 : i32
    %c0_i32_1 = arith.constant 0 : i32
    return %c0_i32, %c0_i32_0 : i32, i32
  }
  func.func @transform_6(%arg0: i32) -> (i32, i32, i32) {
    %c0_i32 = arith.constant 0 : i32
    %c0_i32_0 = arith.constant 0 : i32
    %c0_i32_1 = arith.constant 0 : i32
    %c0_i32_2 = arith.constant 0 : i32
    return %c0_i32, %c0_i32_0, %c0_i32_1 : i32, i32, i32
  }
  func.func @transform_7(%arg0: i32) -> (i32, i32) {
    %c0_i32 = arith.constant 0 : i32
    %c0_i32_0 = arith.constant 0 : i32
    %c0_i32_1 = arith.constant 0 : i32
    return %c0_i32, %c0_i32_0 : i32, i32
  }
  func.func @transform_8(%arg0: i32) -> (i32, i32) {
    %c0_i32 = arith.constant 0 : i32
    %c0_i32_0 = arith.constant 0 : i32
    %c0_i32_1 = arith.constant 0 : i32
    return %c0_i32, %c0_i32_0 : i32, i32
  }
  func.func @transform_9(%arg0: i32) -> (i32, i32) {
    %c0_i32 = arith.constant 0 : i32
    %c0_i32_0 = arith.constant 0 : i32
    %c0_i32_1 = arith.constant 0 : i32
    return %c0_i32, %c0_i32_0 : i32, i32
  }
  func.func @transform_10(%arg0: i32) -> (i32, i32) {
    %c0_i32 = arith.constant 0 : i32
    %c0_i32_0 = arith.constant 0 : i32
    %c0_i32_1 = arith.constant 0 : i32
    return %c0_i32, %c0_i32_0 : i32, i32
  }
  func.func @transform_11(%arg0: i32) -> (i32, i32) {
    %c0_i32 = arith.constant 0 : i32
    %c0_i32_0 = arith.constant 0 : i32
    %c0_i32_1 = arith.constant 0 : i32
    return %c0_i32, %c0_i32_0 : i32, i32
  }
  func.func @transform_12(%arg0: i32) -> (i32, i32, i32) {
    %c0_i32 = arith.constant 0 : i32
    %c0_i32_0 = arith.constant 0 : i32
    %c0_i32_1 = arith.constant 0 : i32
    return %arg0, %c0_i32, %c0_i32_0 : i32, i32, i32
  }
}

</mosaic_0001>

<bundles_post_ra>
// kernel: lenet_forward.1
= control target key start
LH: loop header
LB: loop body
LE: loop exit
PB: predicated region body
PF: predicated region fallthrough
CT: control target
= control target key end

     0   :  { %s9381_s0 = inlined_call_operand.vmem [shape: bf16[2,16,128], index: 0, kind: input, shape index: {}]   ;;  %s9382_s1 = inlined_call_operand.vmem [shape: bf16[2,16,128], index: 1, kind: input, shape index: {}]   ;;  %s9383_s2 = inlined_call_operand.hbm [shape: bf16[5,128,512], index: 2, kind: input, shape index: {}]   ;;  %s9384_s3 = inlined_call_operand.hbm [shape: f32[1,512], index: 3, kind: input, shape index: {}]   ;;  %s9385_s4 = inlined_call_operand.hbm [shape: bf16[5,256,512], index: 4, kind: input, shape index: {}]   ;;  %s9386_s5 = inlined_call_operand.hbm [shape: f32[1,512], index: 5, kind: input, shape index: {}]   ;;  %s9387_s6 = inlined_call_operand.hbm [shape: bf16[5,256,128], index: 6, kind: input, shape index: {}]   ;;  %s9388_s7 = inlined_call_operand.hbm [shape: f32[1,128], index: 7, kind: input, shape index: {}]   ;;  %s9389_s8 = inlined_call_operand.hbm [shape: bf16[128,128], index: 8, kind: input, shape index: {}]   ;;  %s9390_s9 = inlined_call_operand.hbm [shape: f32[1,128], index: 9, kind: input, shape index: {}]   ;;  %s9391_s10 = inlined_call_operand.hbm [shape: bf16[128,128], index: 10, kind: input, shape index: {}]   ;;  %s9392_s11 = inlined_call_operand.hbm [shape: f32[1,128], index: 11, kind: input, shape index: {}]   ;;  %s9393_s12 = inlined_call_operand.hbm [shape: f32[2,1,128], index: 12, kind: output, shape index: {}]  }
   0x1   :  { %9403 = sst [smem:[#allocation35_spill]] %s9384_s3 }
   0x2   :  { %9404 = sst [smem:[#allocation36_spill]] %s9386_s5 }
   0x3   :  { %9405 = sst [smem:[#allocation37_spill]] %s9388_s7 }
   0x4   :  { %9406 = sst [smem:[#allocation38_spill]] %s9390_s9 }
   0x5   :  { %17 = vsyncpa [#allocation5], 0 }
   0x6   :  { %18 = vsyncpa [#allocation8], 0 }
   0x7   :  { %19 = vsyncpa [#allocation11], 0 }
   0x8   :  { %20 = vsyncpa [#allocation14], 0 }
   0x9   :  { %21 = vsyncpa [#allocation17], 0 }
   0xa   :  { %22 = vsyncpa [#allocation20], 0 }
   0xb   :  { %23 = vsyncpa [#allocation6], 0 }
   0xc   :  { %25 = vsyncpa [#allocation6 + $0x1], 0  ;;  %s8853_s21 = smov 0   ;;  %s8855_s22 = smov 0  }
   0xd   :  { %s8857_s23 = smov 0   ;;  %s8859_s24 = smov 0  }
   0xe LB: > { %9407 = sst [smem:[#allocation29_spill]] %s8756_s21  ;;  %s8874_s25 = sadd.s32 4294967295, %s8768_s24   ;;  %s8768_s24 = sphi %s8859_s24, %s9440_s24   ;;  %s8764_s23 = sphi %s8857_s23, %s9442_s23   ;;  %s8760_s22 = sphi %s8855_s22, %s9444_s22   ;;  %s8756_s21 = sphi %s8853_s21, %s9443_s21  }
   0xf   : > { %9408 = sst [smem:[#allocation30_spill]] %s8764_s23  ;;  %s6393_s26 = sadd.s32 4294967294, %s8768_s24  }
  0x10   : > { %9409 = sst [smem:[#allocation31_spill]] %s8768_s24  ;;  %s8878_s27 = sadd.s32 1, %s8768_s24  }
  0x11   : > { %9410 = sst [smem:[#allocation32_spill]] %s8878_s27  ;;  %s300_s28 = sadd.s32 1, %s8764_s23 }
  0x12   : > { %s297_s29 = ssub.s32 %s8768_s24, %s8878_s27  ;;  %p310_p0 = scmp.ne.s32.totalorder %s8764_s23, %s8760_s22 }
  0x13   : > { %p298_p1 = scmp.eq.s32.totalorder %s297_s29, 0  ;;  %p311_p2 = scmp.eq.s32.totalorder %s8874_s25, 1 }
  0x14   : > { %p316_p3 = scmp.ne.s32.totalorder %s8760_s22, %s8756_s21  ;;  %p317_p4 = scmp.eq.s32.totalorder %s6393_s26, 1 }
  0x15   : > { %s8889_s30 = scalar_select %p298_p1, %s8764_s23, %s300_s28  }
  0x16   : > { %p8891_p5 = por %p311_p2, %p310_p0  ;;  %p8895_p6 = por %p317_p4, %p316_p3 }
  0x17   : > { %9411 = sst [smem:[#allocation33_spill]] %s8889_s30  ;;  %p6394_p7 = scmp.ge.s32.totalorder %s8768_s24, 1 }
  0x18   : > { %s9412_s13 = scalar_select %p8891_p5, 1, 0 }
  0x19   : > { %s9413_s14 = scalar_select %p8895_p6, 1, 0 }
  0x1a   : > { %p324_p8 = scmp.lt.s32.totalorder %s8768_s24, 3  ;;  %p9398_p9 = scmp.eq.s32.totalorder %s8874_s25, 0 }
  0x1b   : > { %9414 = sst [smem:[#allocation34_spill]] %s9413_s14  ;;  %s8770_s16 = smov [#allocation7]  }
  0x1c   : > { %p8902_p10 = pnand %p6394_p7, %p324_p8  ;;  %s350_s17 = sshll.u32 %s8770_s16, 4  ;;  %s351_s17 = int_to_ptr.vmem [resolvable:$true] %s350_s17 }
  0x1d   : > { %s8771_s18 = smov [#allocation10]   ;;  %s8772_s26 = smov [#allocation13]  }
  0x1e   : > { %s9415_s15 = scalar_select %p8902_p10, 1, 0 }
  0x1f   : > { %p7314_p11 = pneg %p8902_p10  ;;  %s374_s19 = sshll.u32 %s8771_s18, 4  ;;  %s8914_s19 = int_to_ptr.vmem [resolvable:$true] %s374_s19 }
  0x20   : > { %s398_s28 = sshll.u32 %s8772_s26, 4  ;;  %s9417_s3 = sld [smem:[#allocation35_spill]]  ;;  %s8916_s28 = int_to_ptr.vmem [resolvable:$true] %s398_s28 }
  0x21   : > { %p8910_p12 = pnand %p9398_p9, %p7314_p11 }
  0x23   : > { %p8926_p0 = pneg %p8910_p12 }
  0x26   : > { %s8402_s16 = scalar_lea.hbm %s9417_s3, 64 }
  0x27   : > { %p8403_p13 = scmp.ne.s32.totalorder %s9417_s3, %s8402_s16  ;;  %p8409_p3 = scmp.lt.u32.totalorder %s8402_s16, %s9417_s3 }
  0x29   : > { %p8405_p1 = pnand %p8926_p0, %p8403_p13 }
  0x2b   : > { %p8406_p2 = pneg %p8405_p1 }
  0x2d   : > { %p8411_p4 = pnand %p8409_p3, %p8406_p2 }
  0x2f   : > { %8414 = shalt.err (!%p8411_p4)
}
  0x30   : > { %s8415_s30 = scalar_lea.vmem %s351_s17, 64  ;;  %p8423_p9 = scmp.lt.s32.totalorder %s351_s17, %s351_s17 }
  0x31   : > { %p8416_p7 = scmp.ne.s32.totalorder %s351_s17, %s8415_s30  ;;  %p8424_p6 = scmp.lt.s32.totalorder %s8415_s30, %s8415_s30 }
  0x33   : > { %p8418_p8 = pnand %p8416_p7, %p8926_p0  ;;  %p8425_p5 = por %p8424_p6, %p8423_p9 }
  0x35   : > { %p8419_p11 = pneg %p8418_p8 }
  0x37   : > { %p8426_p10 = pnand %p8425_p5, %p8419_p11 }
  0x39   : > { %8429 = shalt.err (!%p8426_p10)
}
  0x3a   : > { %7320 = dma.hbm_to_vmem [thread:$0]  (!%p8910_p12), %s9417_s3, 64, %s351_s17, [#allocation8]  }
  0x3b   : > { %s9419_s5 = sld [smem:[#allocation36_spill]] }
  0x41   : > { %s8430_s16 = scalar_lea.hbm %s9419_s5, 64 }
  0x42   : > { %p8431_p13 = scmp.ne.s32.totalorder %s9419_s5, %s8430_s16  ;;  %p8437_p5 = scmp.lt.u32.totalorder %s8430_s16, %s9419_s5 }
  0x44   : > { %p8433_p1 = pnand %p8431_p13, %p8926_p0 }
  0x46   : > { %p8434_p6 = pneg %p8433_p1 }
  0x48   : > { %p8439_p9 = pnand %p8437_p5, %p8434_p6 }
  0x4a   : > { %8442 = shalt.err (!%p8439_p9)
}
  0x4b   : > { %s8443_s17 = scalar_lea.vmem %s8914_s19, 64  ;;  %p8451_p4 = scmp.lt.s32.totalorder %s8914_s19, %s8914_s19 }
  0x4c   : > { %p8444_p10 = scmp.ne.s32.totalorder %s8914_s19, %s8443_s17  ;;  %p8452_p7 = scmp.lt.s32.totalorder %s8443_s17, %s8443_s17 }
  0x4e   : > { %p8446_p2 = pnand %p8444_p10, %p8926_p0  ;;  %p8453_p8 = por %p8452_p7, %p8451_p4 }
  0x50   : > { %p8447_p3 = pneg %p8446_p2 }
  0x52   : > { %p8454_p11 = pnand %p8453_p8, %p8447_p3 }
  0x54   : > { %8457 = shalt.err (!%p8454_p11)
}
  0x55   : > { %7326 = dma.hbm_to_vmem [thread:$0]  (!%p8910_p12), %s9419_s5, 64, %s8914_s19, [#allocation11]  }
  0x56   : > { %s9420_s7 = sld [smem:[#allocation37_spill]] }
  0x5c   : > { %s8458_s14 = scalar_lea.hbm %s9420_s7, 16 }
  0x5d   : > { %p8459_p13 = scmp.ne.s32.totalorder %s9420_s7, %s8458_s14  ;;  %p8465_p5 = scmp.lt.u32.totalorder %s8458_s14, %s9420_s7 }
  0x5f   : > { %p8461_p1 = pnand %p8459_p13, %p8926_p0 }
  0x61   : > { %p8462_p6 = pneg %p8461_p1 }
  0x63   : > { %p8467_p9 = pnand %p8465_p5, %p8462_p6 }
  0x65   : > { %8470 = shalt.err (!%p8467_p9)
}
  0x66   : > { %s8471_s19 = scalar_lea.vmem %s8916_s28, 16  ;;  %s8478_s17 = scalar_lea.vmem %s8916_s28, 32 }
  0x67   : > { %p8472_p10 = scmp.ne.s32.totalorder %s8916_s28, %s8471_s19  ;;  %p8479_p4 = scmp.lt.s32.totalorder %s8916_s28, %s8916_s28 }
  0x68   : > { %p8480_p7 = scmp.lt.s32.totalorder %s8478_s17, %s8471_s19 }
  0x69   : > { %p8474_p2 = pnand %p8472_p10, %p8926_p0 }
  0x6a   : > { %p8481_p8 = por %p8480_p7, %p8479_p4 }
  0x6b   : > { %p8475_p3 = pneg %p8474_p2 }
  0x6d   : > { %p8482_p11 = pnand %p8481_p8, %p8475_p3 }
  0x6f   : > { %8485 = shalt.err (!%p8482_p11)
}
  0x70   : > { %7332 = dma.hbm_to_vmem [thread:$0]  (!%p8910_p12), %s9420_s7, 16, %s8916_s28, [#allocation14]  }
  0x71   : > { %s8773_s23 = smov [#allocation16]   ;;  %s8774_s14 = smov [#allocation4]  }
  0x72   : > { %s422_s27 = sshll.u32 %s8773_s23, 4  ;;  %s336_s29 = sshll.u32 %s8774_s14, 4  ;;  %s423_s27 = int_to_ptr.vmem [resolvable:$true] %s422_s27  ;;  %s337_s29 = int_to_ptr.vmem [resolvable:$true] %s336_s29 }
  0x73   : > { %s9421_s9 = sld [smem:[#allocation38_spill]] }
  0x79   : > { %s8486_s30 = scalar_lea.hbm %s9421_s9, 16 }
  0x7a   : > { %p8487_p13 = scmp.ne.s32.totalorder %s9421_s9, %s8486_s30  ;;  %p8493_p5 = scmp.lt.u32.totalorder %s8486_s30, %s9421_s9 }
  0x7c   : > { %p8489_p1 = pnand %p8487_p13, %p8926_p0 }
  0x7e   : > { %p8490_p6 = pneg %p8489_p1 }
  0x80   : > { %p8495_p9 = pnand %p8493_p5, %p8490_p6 }
  0x82   : > { %8498 = shalt.err (!%p8495_p9)
}
  0x83   : > { %s8499_s28 = scalar_lea.vmem %s423_s27, 16  ;;  %s8506_s24 = scalar_lea.vmem %s423_s27, 32 }
  0x84   : > { %p8500_p10 = scmp.ne.s32.totalorder %s423_s27, %s8499_s28  ;;  %p8507_p4 = scmp.lt.s32.totalorder %s423_s27, %s423_s27 }
  0x85   : > { %p8508_p7 = scmp.lt.s32.totalorder %s8506_s24, %s8499_s28 }
  0x86   : > { %p8502_p2 = pnand %p8500_p10, %p8926_p0 }
  0x87   : > { %p8509_p8 = por %p8508_p7, %p8507_p4 }
  0x88   : > { %p8503_p3 = pneg %p8502_p2 }
  0x8a   : > { %p8510_p11 = pnand %p8509_p8, %p8503_p3 }
  0x8c   : > { %8513 = shalt.err (!%p8510_p11)
}
  0x8d   : > { %7338 = dma.hbm_to_vmem [thread:$0]  (!%p8910_p12), %s9421_s9, 16, %s423_s27, [#allocation17]  }
  0x8e   : > { %s8514_s26 = scalar_lea.hbm %s9383_s2, 20480 }
  0x8f   : > { %p8515_p13 = scmp.ne.s32.totalorder %s9383_s2, %s8514_s26  ;;  %p8521_p5 = scmp.lt.u32.totalorder %s8514_s26, %s9383_s2 }
  0x91   : > { %p8517_p1 = pnand %p8515_p13, %p8926_p0 }
  0x93   : > { %p8518_p6 = pneg %p8517_p1 }
  0x95   : > { %p8523_p9 = pnand %p8521_p5, %p8518_p6 }
  0x97   : > { %8526 = shalt.err (!%p8523_p9)
}
  0x98   : > { %s8527_s28 = scalar_lea.vmem %s337_s29, 20480  ;;  %p8535_p4 = scmp.lt.s32.totalorder %s337_s29, %s337_s29 }
  0x99   : > { %p8528_p10 = scmp.ne.s32.totalorder %s337_s29, %s8527_s28  ;;  %p8536_p7 = scmp.lt.s32.totalorder %s8527_s28, %s8527_s28 }
  0x9b   : > { %p8530_p2 = pnand %p8528_p10, %p8926_p0  ;;  %p8537_p8 = por %p8536_p7, %p8535_p4 }
  0x9d   : > { %p8531_p3 = pneg %p8530_p2 }
  0x9f   : > { %p8538_p11 = pnand %p8537_p8, %p8531_p3 }
  0xa1   : > { %8541 = shalt.err (!%p8538_p11)
}
  0xa2   : > { %s8775_s27 = smov 256   ;;  %s8776_s24 = smov 16  }
  0xa3   : > { %7317 = dma.hbm_to_vmem [thread:$0]  (!%p8910_p12), %s9383_s2, 20480, %s337_s29, [#allocation5], %s8775_s27, %s8775_s27, %s8776_s24  }
  0xa4   : > { %s8777_s3 = smov [#allocation9]   ;;  %s8778_s26 = smov [#allocation12]  }
  0xa5   : > { %s360_s16 = sshll.u32 %s8777_s3, 4  ;;  %s384_s30 = sshll.u32 %s8778_s26, 4  ;;  %s361_s16 = int_to_ptr.vmem [resolvable:$true] %s360_s16  ;;  %s385_s30 = int_to_ptr.vmem [resolvable:$true] %s384_s30 }
  0xa6   : > { %s8542_s21 = scalar_lea.hbm %s9385_s4, 40960 }
  0xa7   : > { %p8543_p13 = scmp.ne.s32.totalorder %s9385_s4, %s8542_s21  ;;  %p8549_p5 = scmp.lt.u32.totalorder %s8542_s21, %s9385_s4 }
  0xa9   : > { %p8545_p1 = pnand %p8543_p13, %p8926_p0 }
  0xab   : > { %p8546_p6 = pneg %p8545_p1 }
  0xad   : > { %p8551_p9 = pnand %p8549_p5, %p8546_p6 }
  0xaf   : > { %8554 = shalt.err (!%p8551_p9)
}
  0xb0   : > { %s8555_s29 = scalar_lea.vmem %s361_s16, 40960  ;;  %p8563_p4 = scmp.lt.s32.totalorder %s361_s16, %s361_s16 }
  0xb1   : > { %p8556_p10 = scmp.ne.s32.totalorder %s361_s16, %s8555_s29  ;;  %p8564_p7 = scmp.lt.s32.totalorder %s8555_s29, %s8555_s29 }
  0xb3   : > { %p8558_p2 = pnand %p8556_p10, %p8926_p0  ;;  %p8565_p8 = por %p8564_p7, %p8563_p4 }
  0xb5   : > { %p8559_p3 = pneg %p8558_p2 }
  0xb7   : > { %p8566_p11 = pnand %p8565_p8, %p8559_p3 }
  0xb9   : > { %8569 = shalt.err (!%p8566_p11)
}
  0xba   : > { %7323 = dma.hbm_to_vmem [thread:$0]  (!%p8910_p12), %s9385_s4, 40960, %s361_s16, [#allocation8], %s8775_s27, %s8775_s27, %s8776_s24  }
  0xbb   : > { %s8570_s14 = scalar_lea.hbm %s9387_s6, 10240 }
  0xbc   : > { %p8571_p13 = scmp.ne.s32.totalorder %s9387_s6, %s8570_s14  ;;  %p8577_p5 = scmp.lt.u32.totalorder %s8570_s14, %s9387_s6 }
  0xbe   : > { %p8573_p1 = pnand %p8571_p13, %p8926_p0 }
  0xc0   : > { %p8574_p6 = pneg %p8573_p1 }
  0xc2   : > { %p8579_p9 = pnand %p8577_p5, %p8574_p6 }
  0xc4   : > { %8582 = shalt.err (!%p8579_p9)
}
  0xc5   : > { %s8583_s21 = scalar_lea.vmem %s385_s30, 10240  ;;  %p8591_p4 = scmp.lt.s32.totalorder %s385_s30, %s385_s30 }
  0xc6   : > { %p8584_p10 = scmp.ne.s32.totalorder %s385_s30, %s8583_s21  ;;  %p8592_p7 = scmp.lt.s32.totalorder %s8583_s21, %s8583_s21 }
  0xc8   : > { %p8586_p2 = pnand %p8584_p10, %p8926_p0  ;;  %p8593_p8 = por %p8592_p7, %p8591_p4 }
  0xca   : > { %p8587_p3 = pneg %p8586_p2 }
  0xcc   : > { %p8594_p11 = pnand %p8593_p8, %p8587_p3 }
  0xce   : > { %8597 = shalt.err (!%p8594_p11)
}
  0xcf   : > { %s8779_s27 = smov 64   ;;  %s8780_s24 = smov 4  }
  0xd0   : > { %7329 = dma.hbm_to_vmem [thread:$0]  (!%p8910_p12), %s9387_s6, 10240, %s385_s30, [#allocation11], %s8779_s27, %s8779_s27, %s8780_s24  }
  0xd1   : > { %s8781_s29 = smov [#allocation15]   ;;  %s8782_s23 = smov [#allocation18]  }
  0xd2   : > { %s408_s5 = sshll.u32 %s8781_s29, 4  ;;  %s432_s7 = sshll.u32 %s8782_s23, 4  ;;  %s409_s5 = int_to_ptr.vmem [resolvable:$true] %s408_s5  ;;  %s433_s7 = int_to_ptr.vmem [resolvable:$true] %s432_s7 }
  0xd3   : > { %s8598_s3 = scalar_lea.hbm %s9389_s8, 1024 }
  0xd4   : > { %p8599_p13 = scmp.ne.s32.totalorder %s9389_s8, %s8598_s3  ;;  %p8605_p5 = scmp.lt.u32.totalorder %s8598_s3, %s9389_s8 }
  0xd6   : > { %p8601_p1 = pnand %p8599_p13, %p8926_p0 }
  0xd8   : > { %p8602_p6 = pneg %p8601_p1 }
  0xda   : > { %p8607_p9 = pnand %p8605_p5, %p8602_p6 }
  0xdc   : > { %8610 = shalt.err (!%p8607_p9)
}
  0xdd   : > { %s8611_s30 = scalar_lea.vmem %s409_s5, 1024  ;;  %p8619_p4 = scmp.lt.s32.totalorder %s409_s5, %s409_s5 }
  0xde   : > { %p8612_p10 = scmp.ne.s32.totalorder %s409_s5, %s8611_s30  ;;  %p8620_p7 = scmp.lt.s32.totalorder %s8611_s30, %s8611_s30 }
  0xe0   : > { %p8614_p2 = pnand %p8612_p10, %p8926_p0  ;;  %p8621_p8 = por %p8620_p7, %p8619_p4 }
  0xe2   : > { %p8615_p3 = pneg %p8614_p2 }
  0xe4   : > { %p8622_p11 = pnand %p8621_p8, %p8615_p3 }
  0xe6   : > { %8625 = shalt.err (!%p8622_p11)
}
  0xe7   : > { %7335 = dma.hbm_to_vmem [thread:$0]  (!%p8910_p12), %s9389_s8, 1024, %s409_s5, [#allocation14], %s8779_s27, %s8779_s27, %s8780_s24  }
  0xe8   : > { %s8626_s9 = scalar_lea.hbm %s9391_s10, 1024 }
  0xe9   : > { %p8627_p13 = scmp.ne.s32.totalorder %s9391_s10, %s8626_s9  ;;  %p8633_p5 = scmp.lt.u32.totalorder %s8626_s9, %s9391_s10 }
  0xeb   : > { %p8629_p1 = pnand %p8627_p13, %p8926_p0 }
  0xed   : > { %p8630_p6 = pneg %p8629_p1 }
  0xef   : > { %p8635_p9 = pnand %p8633_p5, %p8630_p6 }
  0xf1   : > { %8638 = shalt.err (!%p8635_p9)
}
  0xf2   : > { %s8639_s17 = scalar_lea.vmem %s433_s7, 1024  ;;  %p8647_p4 = scmp.lt.s32.totalorder %s433_s7, %s433_s7 }
  0xf3   : > { %p8640_p10 = scmp.ne.s32.totalorder %s433_s7, %s8639_s17  ;;  %p8648_p7 = scmp.lt.s32.totalorder %s8639_s17, %s8639_s17 }
  0xf5   : > { %p8642_p2 = pnand %p8640_p10, %p8926_p0  ;;  %p8649_p8 = por %p8648_p7, %p8647_p4 }
  0xf7   : > { %p8643_p3 = pneg %p8642_p2 }
  0xf9   : > { %p8650_p11 = pnand %p8649_p8, %p8643_p3 }
  0xfb   : > { %8653 = shalt.err (!%p8650_p11)
}
  0xfc   : > { %7341 = dma.hbm_to_vmem [thread:$0]  (!%p8910_p12), %s9391_s10, 1024, %s433_s7, [#allocation17], %s8779_s27, %s8779_s27, %s8780_s24  }
  0xfd   : > { %s8783_s30 = smov [#allocation19]   ;;  %s8654_s23 = scalar_lea.hbm %s9392_s11, 16 }
  0xfe   : > { %s446_s16 = sshll.u32 %s8783_s30, 4  ;;  %p8655_p13 = scmp.ne.s32.totalorder %s9392_s11, %s8654_s23  ;;  %s447_s16 = int_to_ptr.vmem [resolvable:$true] %s446_s16 }
  0xff   : > { %p8661_p5 = scmp.lt.u32.totalorder %s8654_s23, %s9392_s11 }
 0x100   : > { %p8657_p1 = pnand %p8655_p13, %p8926_p0 }
 0x102   : > { %p8658_p6 = pneg %p8657_p1 }
 0x104   : > { %p8663_p9 = pnand %p8661_p5, %p8658_p6 }
 0x106   : > { %8666 = shalt.err (!%p8663_p9)
}
 0x107   : > { %s8667_s27 = scalar_lea.vmem %s447_s16, 16  ;;  %s8674_s24 = scalar_lea.vmem %s447_s16, 32 }
 0x108   : > { %p8668_p10 = scmp.ne.s32.totalorder %s447_s16, %s8667_s27  ;;  %p8675_p4 = scmp.lt.s32.totalorder %s447_s16, %s447_s16 }
 0x109   : > { %p8676_p7 = scmp.lt.s32.totalorder %s8674_s24, %s8667_s27 }
 0x10a   : > { %p8670_p2 = pnand %p8668_p10, %p8926_p0 }
 0x10b   : > { %p8677_p8 = por %p8676_p7, %p8675_p4 }
 0x10c   : > { %p8671_p3 = pneg %p8670_p2 }
 0x10e   : > { %p8678_p11 = pnand %p8677_p8, %p8671_p3 }
 0x110   : > { %8681 = shalt.err (!%p8678_p11)
}
 0x111   : > { %7344 = dma.hbm_to_vmem [thread:$0]  (!%p8910_p12), %s9392_s11, 16, %s447_s16, [#allocation20]  }
 0x112   : > { %p9422_p13 = scmp.ne.s32.totalorder %s9415_s15, 0 }
 0x113   : > { %p9423_p1 = scmp.eq.s32.totalorder (!%p9422_p13), %s8874_s25, 0 }
 0x114   : > { %475 = sbr.rel (%p9422_p13) target bundleno = 2086 (0x826), region = 68 }
 0x11b   : > { %8727 = dma.done.wait (%p9423_p1), [#allocation5], 20480   ;;  %p9424_p0 = pmov %p9423_p1 }
 0x11d   : > { %8729 = vsyncadd (%p9424_p0), [#allocation5], 4294946816  ;;  %p9425_p6 = pmov %p9424_p0 }
 0x11e   : > { %p9426_p5 = pmov %p9424_p0 }
 0x11f   : > { %8731 = dma.done.wait (%p9425_p6), [#allocation8], 41024  }
 0x120   : > { %8733 = vsyncadd (%p9426_p5), [#allocation8], 4294926272  ;;  %p9427_p9 = pmov %p9424_p0 }
 0x121   : > { %p9428_p12 = pmov %p9424_p0 }
 0x122   : > { %8735 = dma.done.wait (%p9427_p9), [#allocation11], 10304  }
 0x123   : > { %8737 = vsyncadd (%p9428_p12), [#allocation11], 4294956992  ;;  %p9429_p10 = pmov %p9424_p0 }
 0x124   : > { %p9430_p2 = pmov %p9424_p0 }
 0x125   : > { %8739 = dma.done.wait (%p9429_p10), [#allocation14], 1040  }
 0x126   : > { %8741 = vsyncadd (%p9430_p2), [#allocation14], 4294966256  ;;  %p9431_p3 = pmov %p9424_p0 }
 0x127   : > { %p9432_p4 = pmov %p9424_p0 }
 0x128   : > { %8743 = dma.done.wait (%p9431_p3), [#allocation17], 1040  }
 0x129   : > { %8745 = vsyncadd (%p9432_p4), [#allocation17], 4294966256  ;;  %p9433_p7 = pmov %p9424_p0 }
 0x12a   : > { %p9434_p8 = pmov %p9424_p0 }
 0x12b   : > { %8747 = dma.done.wait (%p9433_p7), [#allocation20], 16  }
 0x12c   : > { %8749 = vsyncadd (%p9434_p8), [#allocation20], 4294967280  ;;  %v8784_v0 = vmov 0   ;;  %v7419_v1 = vld [vmem:[#allocation4 + $0x104] ss:$16 sps:$4 sm:$0xff]   ;;  %p557_p11 = scmp.lt.s32.totalorder %s8874_s25, 1 }
 0x12d   : > { %840 = vmatprep.mubr.bf16.mxu0 %v8784_v0  ;;  %883 = vmatprep.mubr.bf16.mxu1 %v8784_v0  ;;  %v7421_v2 = vld [vmem:[#allocation4 + $0x10c] ss:$16 sps:$4 sm:$0xff]   ;;  %v7423_v3 = vld [vmem:[#allocation4 + $0x100] ss:$16 sps:$4 sm:$0xff]   ;;  %v7424_v4 = vld [vmem:[#allocation4 + $0x108] ss:$16 sps:$4 sm:$0xff]  }
 0x12e   : > { %808 = vmatprep.subr.bf16.mxu0 %v7419_v1  ;;  %851 = vmatprep.subr.bf16.mxu1 %v7421_v2  ;;  %v7425_v5 = vld [vmem:[#allocation4 + $0x124] ss:$16 sps:$4 sm:$0xff]   ;;  %v7427_v6 = vld [vmem:[#allocation4 + $0x12c] ss:$16 sps:$4 sm:$0xff]   ;;  %v7429_v7 = vld [vmem:[#allocation4 + $0x120] ss:$16 sps:$4 sm:$0xff]  }
 0x12f   : > { %809 = vmatpush1.bf16.msra.mxu0 %v7423_v3  ;;  %852 = vmatpush1.bf16.msra.mxu1 %v7424_v4  ;;  %v7430_v8 = vld [vmem:[#allocation4 + $0x128] ss:$16 sps:$4 sm:$0xff]   ;;  %v7431_v9 = vld [vmem:[#allocation4 + $0x144] ss:$16 sps:$4 sm:$0xff]   ;;  %v7433_v10 = vld [vmem:[#allocation4 + $0x14c] ss:$16 sps:$4 sm:$0xff]  }
 0x130   : > { %810 = vmatprep.subr.bf16.mxu0 %v7425_v5  ;;  %853 = vmatprep.subr.bf16.mxu1 %v7427_v6  ;;  %v7435_v11 = vld [vmem:[#allocation4 + $0x140] ss:$16 sps:$4 sm:$0xff]   ;;  %v7436_v12 = vld [vmem:[#allocation4 + $0x148] ss:$16 sps:$4 sm:$0xff]   ;;  %v7437_v13 = vld [vmem:[#allocation4 + $0x164] ss:$16 sps:$4 sm:$0xff]  }
 0x131   : > { %v7439_v14 = vld [vmem:[#allocation4 + $0x16c] ss:$16 sps:$4 sm:$0xff]   ;;  %v7441_v15 = vld [vmem:[#allocation4 + $0x160] ss:$16 sps:$4 sm:$0xff]   ;;  %v7442_v16 = vld [vmem:[#allocation4 + $0x168] ss:$16 sps:$4 sm:$0xff]  }
 0x132   : > { %v7443_v17 = vld [vmem:[#allocation4 + $0x184] ss:$16 sps:$4 sm:$0xff]   ;;  %v7445_v18 = vld [vmem:[#allocation4 + $0x18c] ss:$16 sps:$4 sm:$0xff]   ;;  %v7447_v19 = vld [vmem:[#allocation4 + $0x180] ss:$16 sps:$4 sm:$0xff]  }
 0x133   : > { %811 = vmatpush1.bf16.msra.mxu0 %v7429_v7  ;;  %854 = vmatpush1.bf16.msra.mxu1 %v7430_v8  ;;  %v7448_v20 = vld [vmem:[#allocation4 + $0x188] ss:$16 sps:$4 sm:$0xff]   ;;  %v7449_v21 = vld [vmem:[#allocation4 + $0x1a4] ss:$16 sps:$4 sm:$0xff]   ;;  %v7451_v22 = vld [vmem:[#allocation4 + $0x1ac] ss:$16 sps:$4 sm:$0xff]  }
 0x134   : > { %812 = vmatprep.subr.bf16.mxu0 %v7431_v9  ;;  %855 = vmatprep.subr.bf16.mxu1 %v7433_v10  ;;  %s9154_s15 = scalar_select %p557_p11, %s8874_s25, 1  ;;  %v7453_v23 = vld [vmem:[#allocation4 + $0x1a0] ss:$16 sps:$4 sm:$0xff]   ;;  %v7454_v24 = vld [vmem:[#allocation4 + $0x1a8] ss:$16 sps:$4 sm:$0xff]   ;;  %vm8786_vm0 = vmmov 0  }
 0x135   : > { %v7455_v25 = vld [vmem:[#allocation4 + $0x1c4] ss:$16 sps:$4 sm:$0xff]   ;;  %v7457_v26 = vld [vmem:[#allocation4 + $0x1cc] ss:$16 sps:$4 sm:$0xff]   ;;  %v7459_v27 = vld [vmem:[#allocation4 + $0x1c0] ss:$16 sps:$4 sm:$0xff]  }
 0x136   : > { %s7006_s20 = sshll.u32 %s9154_s15, 3  ;;  %v7460_v28 = vld [vmem:[#allocation4 + $0x1c8] ss:$16 sps:$4 sm:$0xff]   ;;  %v7461_v29 = vld [vmem:[#allocation4 + $0x1e4] ss:$16 sps:$4 sm:$0xff]   ;;  %s555_s28 = sand.u32 1, %s8760_s22  }
 0x137   : > { %813 = vmatpush1.bf16.msra.mxu0 %v7435_v11  ;;  %856 = vmatpush1.bf16.msra.mxu1 %v7436_v12  ;;  %v7463_v30 = vld [vmem:[#allocation4 + $0x1ec] ss:$16 sps:$4 sm:$0xff]   ;;  %s9162_s5 = scalar_lea.vmem %s9382_s1, %s7006_s20  ;;  %v7465_v31 = vld [vmem:[#allocation4 + $0x1e0] ss:$16 sps:$4 sm:$0xff]   ;;  %v7466_v32 = vld [vmem:[#allocation4 + $0x1e8] ss:$16 sps:$4 sm:$0xff]   ;;  %s9180_s16 = scalar_lea.vmem %s9381_s0, %s7006_s20 }
 0x138   : > { %814 = vmatprep.subr.bf16.mxu0 %v7437_v13  ;;  %857 = vmatprep.subr.bf16.mxu1 %v7439_v14  ;;  %v7469_v33 = vld [vmem:[#allocation4 + $0x4] ss:$16 sps:$4 sm:$0xff]   ;;  %v9165_v34 = vld [vmem:[%s9162_s5] sm:$0xf]  ;;  %v7472_v36 = vld [vmem:[#allocation4 + $0xc] ss:$16 sps:$4 sm:$0xff]  }
 0x139   : > { %v608_v35 = vld [vmem:[%s9162_s5 + $0x4] sm:$0x7]  ;;  %v7467_v37 = vld [vmem:[#allocation4] ss:$16 sps:$4 sm:$0xff]   ;;  %v7470_v39 = vld [vmem:[#allocation4 + $0x8] ss:$16 sps:$4 sm:$0xff]  }
 0x13a   : > { %v9169_v38 = vcombine.low %v9165_v34, %v608_v35  ;;  %v7477_v40 = vld [vmem:[#allocation4 + $0x24] ss:$16 sps:$4 sm:$0xff]   ;;  %v7480_v41 = vld [vmem:[#allocation4 + $0x2c] ss:$16 sps:$4 sm:$0xff]   ;;  %v7475_v42 = vld [vmem:[#allocation4 + $0x20] ss:$16 sps:$4 sm:$0xff]  }
 0x13b   : > { %815 = vmatpush1.bf16.msra.mxu0 %v7441_v15  ;;  %858 = vmatpush1.bf16.msra.mxu1 %v7442_v16  ;;  %v7478_v43 = vld [vmem:[#allocation4 + $0x28] ss:$16 sps:$4 sm:$0xff]   ;;  %v7483_v44 = vld [vmem:[#allocation4 + $0x44] ss:$16 sps:$4 sm:$0xff]   ;;  %v7486_v45 = vld [vmem:[#allocation4 + $0x4c] ss:$16 sps:$4 sm:$0xff]  }
 0x13c   : > { %816 = vmatprep.subr.bf16.mxu0 %v7443_v17  ;;  %859 = vmatprep.subr.bf16.mxu1 %v7445_v18  ;;  %v7481_v46 = vld [vmem:[#allocation4 + $0x40] ss:$16 sps:$4 sm:$0xff]   ;;  %v7484_v47 = vld [vmem:[#allocation4 + $0x48] ss:$16 sps:$4 sm:$0xff]   ;;  %v7489_v48 = vld [vmem:[#allocation4 + $0x64] ss:$16 sps:$4 sm:$0xff]  }
 0x13d   : > { %v7492_v49 = vld [vmem:[#allocation4 + $0x6c] ss:$16 sps:$4 sm:$0xff]   ;;  %v7487_v50 = vld [vmem:[#allocation4 + $0x60] ss:$16 sps:$4 sm:$0xff]   ;;  %v7490_v51 = vld [vmem:[#allocation4 + $0x68] ss:$16 sps:$4 sm:$0xff]  }
 0x13e   : > { %v7495_v52 = vld [vmem:[#allocation4 + $0x84] ss:$16 sps:$4 sm:$0xff]   ;;  %v7498_v53 = vld [vmem:[#allocation4 + $0x8c] ss:$16 sps:$4 sm:$0xff]   ;;  %v7493_v54 = vld [vmem:[#allocation4 + $0x80] ss:$16 sps:$4 sm:$0xff]  }
 0x13f   : > { %817 = vmatpush1.bf16.msra.mxu0 %v7447_v19  ;;  %860 = vmatpush1.bf16.msra.mxu1 %v7448_v20  ;;  %v7496_v55 = vld [vmem:[#allocation4 + $0x88] ss:$16 sps:$4 sm:$0xff]   ;;  %v7501_v56 = vld [vmem:[#allocation4 + $0xa4] ss:$16 sps:$4 sm:$0xff]   ;;  %v7504_v57 = vld [vmem:[#allocation4 + $0xac] ss:$16 sps:$4 sm:$0xff]  }
 0x140   : > { %818 = vmatprep.subr.bf16.mxu0 %v7449_v21  ;;  %861 = vmatprep.subr.bf16.mxu1 %v7451_v22  ;;  %v7499_v58 = vld [vmem:[#allocation4 + $0xa0] ss:$16 sps:$4 sm:$0xff]   ;;  %v7502_v59 = vld [vmem:[#allocation4 + $0xa8] ss:$16 sps:$4 sm:$0xff]   ;;  %v7507_v60 = vld [vmem:[#allocation4 + $0xc4] ss:$16 sps:$4 sm:$0xff]  }
 0x141   : > { %v7510_v61 = vld [vmem:[#allocation4 + $0xcc] ss:$16 sps:$4 sm:$0xff]   ;;  %v7505_v62 = vld [vmem:[#allocation4 + $0xc0] ss:$16 sps:$4 sm:$0xff]   ;;  %v7508_v63 = vld [vmem:[#allocation4 + $0xc8] ss:$16 sps:$4 sm:$0xff]  }
 0x142   : > { %v7513_v1 = vld [vmem:[#allocation4 + $0xe4] ss:$16 sps:$4 sm:$0xff]   ;;  %v7516_v2 = vld [vmem:[#allocation4 + $0xec] ss:$16 sps:$4 sm:$0xff]   ;;  %v7511_v3 = vld [vmem:[#allocation4 + $0xe0] ss:$16 sps:$4 sm:$0xff]  }
 0x143   : > { %819 = vmatpush1.bf16.msra.mxu0 %v7453_v23  ;;  %862 = vmatpush1.bf16.msra.mxu1 %v7454_v24  ;;  %v7514_v4 = vld [vmem:[#allocation4 + $0xe8] ss:$16 sps:$4 sm:$0xff]   ;;  %v573_v5 = vld [vmem:[%s9180_s16] sm:$0xf]  ;;  %v574_v6 = vld [vmem:[%s9180_s16 + $0x4] sm:$0x7] }
 0x144   : > { %820 = vmatprep.subr.bf16.mxu0 %v7455_v25  ;;  %863 = vmatprep.subr.bf16.mxu1 %v7457_v26  ;;  %v7519_v7 = vld [vmem:[#allocation4 + $0x204] ss:$16 sps:$4 sm:$0xff]   ;;  %v7522_v8 = vld [vmem:[#allocation4 + $0x20c] ss:$16 sps:$4 sm:$0xff]   ;;  %v6454_v9 = vcombine.low %v573_v5, %v574_v6  ;;  %v7517_v10 = vld [vmem:[#allocation4 + $0x200] ss:$16 sps:$4 sm:$0xff]  }
 0x145   : > { %v7520_v11 = vld [vmem:[#allocation4 + $0x208] ss:$16 sps:$4 sm:$0xff]   ;;  %v7527_v12 = vld [vmem:[#allocation4 + $0x224] ss:$16 sps:$4 sm:$0xff]   ;;  %v7530_v13 = vld [vmem:[#allocation4 + $0x22c] ss:$16 sps:$4 sm:$0xff]  }
 0x146   : > { %v7525_v14 = vld [vmem:[#allocation4 + $0x220] ss:$16 sps:$4 sm:$0xff]   ;;  %v7528_v15 = vld [vmem:[#allocation4 + $0x228] ss:$16 sps:$4 sm:$0xff]   ;;  %v7533_v16 = vld [vmem:[#allocation4 + $0x244] ss:$16 sps:$4 sm:$0xff]  }
 0x147   : > { %821 = vmatpush1.bf16.msra.mxu0 %v7459_v27  ;;  %864 = vmatpush1.bf16.msra.mxu1 %v7460_v28  ;;  %v7536_v17 = vld [vmem:[#allocation4 + $0x24c] ss:$16 sps:$4 sm:$0xff]   ;;  %v7531_v18 = vld [vmem:[#allocation4 + $0x240] ss:$16 sps:$4 sm:$0xff]   ;;  %v7534_v19 = vld [vmem:[#allocation4 + $0x248] ss:$16 sps:$4 sm:$0xff]  }
 0x148   : > { %822 = vmatprep.subr.bf16.mxu0 %v7461_v29  ;;  %865 = vmatprep.subr.bf16.mxu1 %v7463_v30  ;;  %v7539_v20 = vld [vmem:[#allocation4 + $0x264] ss:$16 sps:$4 sm:$0xff]   ;;  %v7542_v21 = vld [vmem:[#allocation4 + $0x26c] ss:$16 sps:$4 sm:$0xff]   ;;  %v7537_v22 = vld [vmem:[#allocation4 + $0x260] ss:$16 sps:$4 sm:$0xff]  }
 0x149   : > { %v7540_v23 = vld [vmem:[#allocation4 + $0x268] ss:$16 sps:$4 sm:$0xff]   ;;  %v7545_v24 = vld [vmem:[#allocation4 + $0x284] ss:$16 sps:$4 sm:$0xff]   ;;  %v7548_v25 = vld [vmem:[#allocation4 + $0x28c] ss:$16 sps:$4 sm:$0xff]  }
 0x14a   : > { %v9187_v26 = vld [vmem:[%s9180_s16 + $0x4] sm:$0xf]  ;;  %v7543_v27 = vld [vmem:[#allocation4 + $0x280] ss:$16 sps:$4 sm:$0xff]   ;;  %v7546_v28 = vld [vmem:[#allocation4 + $0x288] ss:$16 sps:$4 sm:$0xff]  }
 0x14b   : > { %823 = vmatpush1.bf16.msra.mxu0 %v7465_v31  ;;  %866 = vmatpush1.bf16.msra.mxu1 %v7466_v32  ;;  %v7551_v29 = vld [vmem:[#allocation4 + $0x2a4] ss:$16 sps:$4 sm:$0xff]   ;;  %v7554_v30 = vld [vmem:[#allocation4 + $0x2ac] ss:$16 sps:$4 sm:$0xff]   ;;  %v6487_v31 = vcombine.low %v573_v5, %v9187_v26  ;;  %v7549_v32 = vld [vmem:[#allocation4 + $0x2a0] ss:$16 sps:$4 sm:$0xff]  }
 0x14c   : > { %1060 = vmatprep.subr.bf16.mxu0 %v7469_v33  ;;  %1103 = vmatprep.subr.bf16.mxu1 %v7472_v36  ;;  %v7552_v33 = vld [vmem:[#allocation4 + $0x2a8] ss:$16 sps:$4 sm:$0xff]   ;;  %v7557_v35 = vld [vmem:[#allocation4 + $0x2c4] ss:$16 sps:$4 sm:$0xff]   ;;  %v7560_v36 = vld [vmem:[#allocation4 + $0x2cc] ss:$16 sps:$4 sm:$0xff]  }
 0x14d   : > { %v1445_v5 = vld [vmem:[%s9162_s5 + $0x4] sm:$0xf]  ;;  %v7591_v6 = vld [vmem:[#allocation4 + $0x380] ss:$16 sps:$4 sm:$0xff]   ;;  %s7003_s29 = sshll.u32 %s8874_s25, 4  ;;  %s556_s23 = scalar_lea.vmem [#allocation21], %s555_s28 }
 0x14e   : > { %841 = vmatmul.mubr.bf16.vlgmr.msra.gmra.mrb[0].mxu0 %v9169_v38  ;;  %884 = vmatmul.mubr.bf16.vlgmr.msra.gmra.mrb[0].mxu1 %v9169_v38  ;;  %s6228_s9 = sshll.u32 %s556_s23, 4  ;;  %s9339_s26 = scalar_lea.hbm %s9393_s12, %s7003_s29  ;;  %s9341_s9 = int_to_ptr.vmem [resolvable:$true] %s6228_s9 }
 0x14f   : > { %1061 = vmatpush1.bf16.msra.mxu0 %v7467_v37  ;;  %1104 = vmatpush1.bf16.msra.mxu1 %v7470_v39  ;;  %v1186_v37 = vshll.u32 %v6487_v31, 16  ;;  %v7555_v39 = vld [vmem:[#allocation4 + $0x2c0] ss:$16 sps:$4 sm:$0xff]   ;;  %s6216_s27 = scalar_lea.sflag [#allocation6], %s555_s28  ;;  %s8682_s25 = scalar_lea.vmem %s9341_s9, 16 }
 0x150   : > { %1062 = vmatprep.subr.bf16.mxu0 %v7477_v40  ;;  %1105 = vmatprep.subr.bf16.mxu1 %v7480_v41  ;;  %v7558_v40 = vld [vmem:[#allocation4 + $0x2c8] ss:$16 sps:$4 sm:$0xff]   ;;  %v7563_v41 = vld [vmem:[#allocation4 + $0x2e4] ss:$16 sps:$4 sm:$0xff]   ;;  %p8683_p13 = scmp.ne.s32.totalorder %s9341_s9, %s8682_s25  ;;  %p9435_p1 = scmp.ne.s32.totalorder %s9412_s13, 0 }
 0x151   : > { %1092 = vmatprep.mubr.bf16.mxu0 %v8784_v0  ;;  %1135 = vmatprep.mubr.bf16.mxu1 %v8784_v0  ;;  %s8787_s24 = smov [#allocation21]  }
 0x152   : > { %p8684_p0 = pnand %p8683_p13, %p9435_p1  ;;  %s8686_s7 = sshll.u32 %s8787_s24, 4  ;;  %s8687_s7 = int_to_ptr.vmem [resolvable:$false] %s8686_s7 }
 0x153   : > { %1063 = vmatpush1.bf16.msra.mxu0 %v7475_v42  ;;  %1106 = vmatpush1.bf16.msra.mxu1 %v7478_v43  ;;  %v7566_v42 = vld [vmem:[#allocation4 + $0x2ec] ss:$16 sps:$4 sm:$0xff]   ;;  %v1184_v43 = vshrl.u32 %v6487_v31, 16  ;;  %v7621_v31 = vld [vmem:[#allocation4 + $0x420] ss:$16 sps:$4 sm:$0xff]   ;;  %s8688_s19 = scalar_lea.vmem %s8687_s7, 32  ;;  %p8689_p5 = scmp.lt.s32.totalorder %s9341_s9, %s8687_s7 }
 0x154   : > { %1064 = vmatprep.subr.bf16.mxu0 %v7483_v44  ;;  %1107 = vmatprep.subr.bf16.mxu1 %v7486_v45  ;;  %v1188_v44 = vrot.slane %v1186_v37, 1  ;;  %v7561_v45 = vld [vmem:[#allocation4 + $0x2e0] ss:$16 sps:$4 sm:$0xff]   ;;  %v7630_v37 = vld [vmem:[#allocation4 + $0x448] ss:$16 sps:$4 sm:$0xff]   ;;  %p8685_p6 = pneg %p8684_p0  ;;  %p8690_p9 = scmp.lt.s32.totalorder %s8688_s19, %s8682_s25 }
 0x156   : > { %p8691_p12 = por %p8690_p9, %p8689_p5 }
 0x157   : > { %1065 = vmatpush1.bf16.msra.mxu0 %v7481_v46  ;;  %1108 = vmatpush1.bf16.msra.mxu1 %v7484_v47  ;;  %v7564_v46 = vld [vmem:[#allocation4 + $0x2e8] ss:$16 sps:$4 sm:$0xff]   ;;  %v7569_v47 = vld [vmem:[#allocation4 + $0x304] ss:$16 sps:$4 sm:$0xff]  }
 0x158   : > { %1066 = vmatprep.subr.bf16.mxu0 %v7489_v48  ;;  %1109 = vmatprep.subr.bf16.mxu1 %v7492_v49  ;;  %v7572_v48 = vld [vmem:[#allocation4 + $0x30c] ss:$16 sps:$4 sm:$0xff]   ;;  %v9190_v49 = vor.u32 %v1188_v44, %v1184_v43  ;;  %v7641_v43 = vld [vmem:[#allocation4 + $0x484] ss:$16 sps:$4 sm:$0xff]   ;;  %p8692_p10 = pnand %p8691_p12, %p8685_p6 }
 0x159   : > { %v7644_v44 = vld [vmem:[#allocation4 + $0x48c] ss:$16 sps:$4 sm:$0xff]  }
 0x15b   : > { %1067 = vmatpush1.bf16.msra.mxu0 %v7487_v50  ;;  %1110 = vmatpush1.bf16.msra.mxu1 %v7490_v51  ;;  %v7567_v50 = vld [vmem:[#allocation4 + $0x300] ss:$16 sps:$4 sm:$0xff]   ;;  %v7570_v51 = vld [vmem:[#allocation4 + $0x308] ss:$16 sps:$4 sm:$0xff]  }
 0x15c   : > { %1068 = vmatprep.subr.bf16.mxu0 %v7495_v52  ;;  %1111 = vmatprep.subr.bf16.mxu1 %v7498_v53  ;;  %v7575_v52 = vld [vmem:[#allocation4 + $0x324] ss:$16 sps:$4 sm:$0xff]   ;;  %v7578_v53 = vld [vmem:[#allocation4 + $0x32c] ss:$16 sps:$4 sm:$0xff]  }
 0x15f   : > { %1069 = vmatpush1.bf16.msra.mxu0 %v7493_v54  ;;  %1112 = vmatpush1.bf16.msra.mxu1 %v7496_v55  ;;  %v7573_v54 = vld [vmem:[#allocation4 + $0x320] ss:$16 sps:$4 sm:$0xff]   ;;  %v7576_v55 = vld [vmem:[#allocation4 + $0x328] ss:$16 sps:$4 sm:$0xff]  }
 0x160   : > { %1070 = vmatprep.subr.bf16.mxu0 %v7501_v56  ;;  %1113 = vmatprep.subr.bf16.mxu1 %v7504_v57  ;;  %v7581_v56 = vld [vmem:[#allocation4 + $0x344] ss:$16 sps:$4 sm:$0xff]   ;;  %v7584_v57 = vld [vmem:[#allocation4 + $0x34c] ss:$16 sps:$4 sm:$0xff]  }
 0x163   : > { %1071 = vmatpush1.bf16.msra.mxu0 %v7499_v58  ;;  %1114 = vmatpush1.bf16.msra.mxu1 %v7502_v59  ;;  %v7579_v58 = vld [vmem:[#allocation4 + $0x340] ss:$16 sps:$4 sm:$0xff]   ;;  %v7582_v59 = vld [vmem:[#allocation4 + $0x348] ss:$16 sps:$4 sm:$0xff]  }
 0x164   : > { %1072 = vmatprep.subr.bf16.mxu0 %v7507_v60  ;;  %1115 = vmatprep.subr.bf16.mxu1 %v7510_v61  ;;  %v7587_v60 = vld [vmem:[#allocation4 + $0x364] ss:$16 sps:$4 sm:$0xff]   ;;  %v7590_v61 = vld [vmem:[#allocation4 + $0x36c] ss:$16 sps:$4 sm:$0xff]  }
 0x167   : > { %1073 = vmatpush1.bf16.msra.mxu0 %v7505_v62  ;;  %1116 = vmatpush1.bf16.msra.mxu1 %v7508_v63  ;;  %v7585_v62 = vld [vmem:[#allocation4 + $0x360] ss:$16 sps:$4 sm:$0xff]   ;;  %v7588_v63 = vld [vmem:[#allocation4 + $0x368] ss:$16 sps:$4 sm:$0xff]  }
 0x168   : > { %1074 = vmatprep.subr.bf16.mxu0 %v7513_v1  ;;  %1117 = vmatprep.subr.bf16.mxu1 %v7516_v2  ;;  %v7593_v1 = vld [vmem:[#allocation4 + $0x384] ss:$16 sps:$4 sm:$0xff]   ;;  %v7596_v2 = vld [vmem:[#allocation4 + $0x38c] ss:$16 sps:$4 sm:$0xff]  }
 0x16b   : > { %1075 = vmatpush1.bf16.msra.mxu0 %v7511_v3  ;;  %1118 = vmatpush1.bf16.msra.mxu1 %v7514_v4  ;;  %v9197_v3 = vld [vmem:[%s9180_s16] sm:$0xe] }
 0x16c   : > { %1351 = vmatprep.subr.bf16.mxu0 %v7519_v7  ;;  %1394 = vmatprep.subr.bf16.mxu1 %v7522_v8  ;;  %v6553_v4 = vcombine.low %v9197_v3, %v9187_v26  ;;  %v7594_v7 = vld [vmem:[#allocation4 + $0x388] ss:$16 sps:$4 sm:$0xff]   ;;  %v7599_v8 = vld [vmem:[#allocation4 + $0x3a4] ss:$16 sps:$4 sm:$0xff]   ;;  %v8247_v26 = vld [vmem:[#allocation4 + $0x120] ss:$16 sps:$4 sm:$0xff]  }
 0x16d   : > { %v8248_v3 = vld [vmem:[#allocation4 + $0x128] ss:$16 sps:$4 sm:$0xff]  }
 0x16e   : > { %1093 = vmatmul.mubr.bf16.vlgmr.msra.gmra.mrb[0].mxu0 %v6454_v9  ;;  %1136 = vmatmul.mubr.bf16.vlgmr.msra.gmra.mrb[0].mxu1 %v6454_v9  ;;  %v7602_v9 = vld [vmem:[#allocation4 + $0x3ac] ss:$16 sps:$4 sm:$0xff]  }
 0x16f   : > { %1352 = vmatpush1.bf16.msra.mxu0 %v7517_v10  ;;  %1395 = vmatpush1.bf16.msra.mxu1 %v7520_v11  ;;  %v7597_v10 = vld [vmem:[#allocation4 + $0x3a0] ss:$16 sps:$4 sm:$0xff]   ;;  %v7600_v11 = vld [vmem:[#allocation4 + $0x3a8] ss:$16 sps:$4 sm:$0xff]  }
 0x170   : > { %1353 = vmatprep.subr.bf16.mxu0 %v7527_v12  ;;  %1396 = vmatprep.subr.bf16.mxu1 %v7530_v13  ;;  %v6520_v12 = vcombine.low %v9165_v34, %v1445_v5  ;;  %v7605_v13 = vld [vmem:[#allocation4 + $0x3c4] ss:$16 sps:$4 sm:$0xff]   ;;  %v8246_v5 = vld [vmem:[#allocation4 + $0x12c] ss:$16 sps:$4 sm:$0xff]  }
 0x171   : > { %1383 = vmatprep.mubr.bf16.mxu0 %v8784_v0  ;;  %1426 = vmatprep.mubr.bf16.mxu1 %v8784_v0 }
 0x172   : > { %v1483_v34 = vshrl.u32 %v6520_v12, 16 }
 0x173   : > { %1354 = vmatpush1.bf16.msra.mxu0 %v7525_v14  ;;  %1397 = vmatpush1.bf16.msra.mxu1 %v7528_v15  ;;  %v7608_v14 = vld [vmem:[#allocation4 + $0x3cc] ss:$16 sps:$4 sm:$0xff]   ;;  %v7603_v15 = vld [vmem:[#allocation4 + $0x3c0] ss:$16 sps:$4 sm:$0xff]  }
 0x174   : > { %1355 = vmatprep.subr.bf16.mxu0 %v7533_v16  ;;  %1398 = vmatprep.subr.bf16.mxu1 %v7536_v17  ;;  %v7606_v16 = vld [vmem:[#allocation4 + $0x3c8] ss:$16 sps:$4 sm:$0xff]   ;;  %v7611_v17 = vld [vmem:[#allocation4 + $0x3e4] ss:$16 sps:$4 sm:$0xff]  }
 0x177   : > { %1356 = vmatpush1.bf16.msra.mxu0 %v7531_v18  ;;  %1399 = vmatpush1.bf16.msra.mxu1 %v7534_v19  ;;  %v7614_v18 = vld [vmem:[#allocation4 + $0x3ec] ss:$16 sps:$4 sm:$0xff]   ;;  %v1485_v19 = vshll.u32 %v6520_v12, 16  ;;  %v8256_v12 = vld [vmem:[#allocation4 + $0x168] ss:$16 sps:$4 sm:$0xff]  }
 0x178   : > { %1357 = vmatprep.subr.bf16.mxu0 %v7539_v20  ;;  %1400 = vmatprep.subr.bf16.mxu1 %v7542_v21  ;;  %v7609_v20 = vld [vmem:[#allocation4 + $0x3e0] ss:$16 sps:$4 sm:$0xff]   ;;  %v7612_v21 = vld [vmem:[#allocation4 + $0x3e8] ss:$16 sps:$4 sm:$0xff]  }
 0x17b   : > { %1358 = vmatpush1.bf16.msra.mxu0 %v7537_v22  ;;  %1401 = vmatpush1.bf16.msra.mxu1 %v7540_v23  ;;  %v7617_v22 = vld [vmem:[#allocation4 + $0x404] ss:$16 sps:$4 sm:$0xff]   ;;  %v7620_v23 = vld [vmem:[#allocation4 + $0x40c] ss:$16 sps:$4 sm:$0xff]  }
 0x17c   : > { %1359 = vmatprep.subr.bf16.mxu0 %v7545_v24  ;;  %1402 = vmatprep.subr.bf16.mxu1 %v7548_v25  ;;  %v1487_v24 = vrot.slane %v1485_v19, 1  ;;  %v7615_v25 = vld [vmem:[#allocation4 + $0x400] ss:$16 sps:$4 sm:$0xff]  }
 0x17d   : > { %v8263_v19 = vld [vmem:[#allocation4 + $0x1a0] ss:$16 sps:$4 sm:$0xff]  }
 0x17f   : > { %1360 = vmatpush1.bf16.msra.mxu0 %v7543_v27  ;;  %1403 = vmatpush1.bf16.msra.mxu1 %v7546_v28  ;;  %v7618_v27 = vld [vmem:[#allocation4 + $0x408] ss:$16 sps:$4 sm:$0xff]   ;;  %v9203_v28 = vor.u32 %v1487_v24, %v1483_v34  ;;  %v8269_v24 = vld [vmem:[#allocation4 + $0x1e4] ss:$16 sps:$4 sm:$0xff]  }
 0x180   : > { %1361 = vmatprep.subr.bf16.mxu0 %v7551_v29  ;;  %1404 = vmatprep.subr.bf16.mxu1 %v7554_v30  ;;  %v7623_v29 = vld [vmem:[#allocation4 + $0x424] ss:$16 sps:$4 sm:$0xff]   ;;  %v7626_v30 = vld [vmem:[#allocation4 + $0x42c] ss:$16 sps:$4 sm:$0xff]   ;;  %v8268_v34 = vld [vmem:[#allocation4 + $0x1c8] ss:$16 sps:$4 sm:$0xff]  }
 0x183   : > { %1362 = vmatpush1.bf16.msra.mxu0 %v7549_v32  ;;  %1405 = vmatpush1.bf16.msra.mxu1 %v7552_v33  ;;  %v7624_v32 = vld [vmem:[#allocation4 + $0x428] ss:$16 sps:$4 sm:$0xff]   ;;  %v7629_v33 = vld [vmem:[#allocation4 + $0x444] ss:$16 sps:$4 sm:$0xff]  }
 0x184   : > { %1363 = vmatprep.subr.bf16.mxu0 %v7557_v35  ;;  %1406 = vmatprep.subr.bf16.mxu1 %v7560_v36  ;;  %v7632_v35 = vld [vmem:[#allocation4 + $0x44c] ss:$16 sps:$4 sm:$0xff]   ;;  %v7627_v36 = vld [vmem:[#allocation4 + $0x440] ss:$16 sps:$4 sm:$0xff]  }
 0x187   : > { %1364 = vmatpush1.bf16.msra.mxu0 %v7555_v39  ;;  %1407 = vmatpush1.bf16.msra.mxu1 %v7558_v40  ;;  %v7635_v39 = vld [vmem:[#allocation4 + $0x464] ss:$16 sps:$4 sm:$0xff]   ;;  %v7638_v40 = vld [vmem:[#allocation4 + $0x46c] ss:$16 sps:$4 sm:$0xff]  }
 0x188   : > { %1365 = vmatprep.subr.bf16.mxu0 %v7563_v41  ;;  %1408 = vmatprep.subr.bf16.mxu1 %v7566_v42  ;;  %v7633_v41 = vld [vmem:[#allocation4 + $0x460] ss:$16 sps:$4 sm:$0xff]   ;;  %v7636_v42 = vld [vmem:[#allocation4 + $0x468] ss:$16 sps:$4 sm:$0xff]  }
 0x18b   : > { %1366 = vmatpush1.bf16.msra.mxu0 %v7561_v45  ;;  %1409 = vmatpush1.bf16.msra.mxu1 %v7564_v46  ;;  %v7639_v45 = vld [vmem:[#allocation4 + $0x480] ss:$16 sps:$4 sm:$0xff]   ;;  %v7642_v46 = vld [vmem:[#allocation4 + $0x488] ss:$16 sps:$4 sm:$0xff]  }
 0x18c   : > { %1650 = vmatprep.subr.bf16.mxu0 %v7569_v47  ;;  %1693 = vmatprep.subr.bf16.mxu1 %v7572_v48  ;;  %v7647_v47 = vld [vmem:[#allocation4 + $0x4a4] ss:$16 sps:$4 sm:$0xff]   ;;  %v7650_v48 = vld [vmem:[#allocation4 + $0x4ac] ss:$16 sps:$4 sm:$0xff]  }
 0x18e   : > { %1384 = vmatmul.mubr.bf16.vlgmr.msra.gmra.mrb[0].mxu0 %v9190_v49  ;;  %1427 = vmatmul.mubr.bf16.vlgmr.msra.gmra.mrb[0].mxu1 %v9190_v49 }
 0x18f   : > { %1651 = vmatpush1.bf16.msra.mxu0 %v7567_v50  ;;  %1694 = vmatpush1.bf16.msra.mxu1 %v7570_v51  ;;  %v7645_v50 = vld [vmem:[#allocation4 + $0x4a0] ss:$16 sps:$4 sm:$0xff]   ;;  %v7648_v51 = vld [vmem:[#allocation4 + $0x4a8] ss:$16 sps:$4 sm:$0xff]  }
 0x190   : > { %1652 = vmatprep.subr.bf16.mxu0 %v7575_v52  ;;  %1695 = vmatprep.subr.bf16.mxu1 %v7578_v53  ;;  %v7653_v52 = vld [vmem:[#allocation4 + $0x4c4] ss:$16 sps:$4 sm:$0xff]   ;;  %v7656_v53 = vld [vmem:[#allocation4 + $0x4cc] ss:$16 sps:$4 sm:$0xff]  }
 0x191   : > { %1682 = vmatprep.mubr.bf16.mxu0 %v8784_v0  ;;  %1725 = vmatprep.mubr.bf16.mxu1 %v8784_v0 }
 0x193   : > { %1653 = vmatpush1.bf16.msra.mxu0 %v7573_v54  ;;  %1696 = vmatpush1.bf16.msra.mxu1 %v7576_v55  ;;  %v7651_v54 = vld [vmem:[#allocation4 + $0x4c0] ss:$16 sps:$4 sm:$0xff]   ;;  %v7654_v55 = vld [vmem:[#allocation4 + $0x4c8] ss:$16 sps:$4 sm:$0xff]  }
 0x194   : > { %1654 = vmatprep.subr.bf16.mxu0 %v7581_v56  ;;  %1697 = vmatprep.subr.bf16.mxu1 %v7584_v57  ;;  %v7659_v56 = vld [vmem:[#allocation4 + $0x4e4] ss:$16 sps:$4 sm:$0xff]   ;;  %v7662_v57 = vld [vmem:[#allocation4 + $0x4ec] ss:$16 sps:$4 sm:$0xff]  }
 0x197   : > { %1655 = vmatpush1.bf16.msra.mxu0 %v7579_v58  ;;  %1698 = vmatpush1.bf16.msra.mxu1 %v7582_v59  ;;  %v7657_v58 = vld [vmem:[#allocation4 + $0x4e0] ss:$16 sps:$4 sm:$0xff]   ;;  %v7660_v59 = vld [vmem:[#allocation4 + $0x4e8] ss:$16 sps:$4 sm:$0xff]  }
 0x198   : > { %1656 = vmatprep.subr.bf16.mxu0 %v7587_v60  ;;  %1699 = vmatprep.subr.bf16.mxu1 %v7590_v61  ;;  %v9212_v60 = vrot.slane %v6553_v4, 1  ;;  %v8241_v61 = vld [vmem:[#allocation4 + $0x104] ss:$16 sps:$4 sm:$0xff]  }
 0x199   : > { %v8249_v4 = vld [vmem:[#allocation4 + $0x144] ss:$16 sps:$4 sm:$0xff]  }
 0x19b   : > { %1657 = vmatpush1.bf16.msra.mxu0 %v7585_v62  ;;  %1700 = vmatpush1.bf16.msra.mxu1 %v7588_v63  ;;  %v8242_v62 = vld [vmem:[#allocation4 + $0x10c] ss:$16 sps:$4 sm:$0xff]   ;;  %v8243_v63 = vld [vmem:[#allocation4 + $0x100] ss:$16 sps:$4 sm:$0xff]  }
 0x19c   : > { %1658 = vmatprep.subr.bf16.mxu0 %v7593_v1  ;;  %1701 = vmatprep.subr.bf16.mxu1 %v7596_v2  ;;  %v8244_v1 = vld [vmem:[#allocation4 + $0x108] ss:$16 sps:$4 sm:$0xff]   ;;  %v8245_v2 = vld [vmem:[#allocation4 + $0x124] ss:$16 sps:$4 sm:$0xff]  }
 0x19f   : > { %1659 = vmatpush1.bf16.msra.mxu0 %v7591_v6  ;;  %1702 = vmatpush1.bf16.msra.mxu1 %v7594_v7  ;;  %v8250_v6 = vld [vmem:[#allocation4 + $0x14c] ss:$16 sps:$4 sm:$0xff]   ;;  %v8251_v7 = vld [vmem:[#allocation4 + $0x140] ss:$16 sps:$4 sm:$0xff]  }
 0x1a0   : > { %1660 = vmatprep.subr.bf16.mxu0 %v7599_v8  ;;  %1703 = vmatprep.subr.bf16.mxu1 %v7602_v9  ;;  %v8252_v8 = vld [vmem:[#allocation4 + $0x148] ss:$16 sps:$4 sm:$0xff]   ;;  %v8253_v9 = vld [vmem:[#allocation4 + $0x164] ss:$16 sps:$4 sm:$0xff]  }
 0x1a3   : > { %1661 = vmatpush1.bf16.msra.mxu0 %v7597_v10  ;;  %1704 = vmatpush1.bf16.msra.mxu1 %v7600_v11  ;;  %v8254_v10 = vld [vmem:[#allocation4 + $0x16c] ss:$16 sps:$4 sm:$0xff]   ;;  %v8255_v11 = vld [vmem:[#allocation4 + $0x160] ss:$16 sps:$4 sm:$0xff]  }
 0x1a4   : > { %1662 = vmatprep.subr.bf16.mxu0 %v7605_v13  ;;  %1705 = vmatprep.subr.bf16.mxu1 %v7608_v14  ;;  %v8257_v13 = vld [vmem:[#allocation4 + $0x184] ss:$16 sps:$4 sm:$0xff]   ;;  %v8258_v14 = vld [vmem:[#allocation4 + $0x18c] ss:$16 sps:$4 sm:$0xff]  }
 0x1a7   : > { %1663 = vmatpush1.bf16.msra.mxu0 %v7603_v15  ;;  %1706 = vmatpush1.bf16.msra.mxu1 %v7606_v16  ;;  %v8259_v15 = vld [vmem:[#allocation4 + $0x180] ss:$16 sps:$4 sm:$0xff]   ;;  %v8260_v16 = vld [vmem:[#allocation4 + $0x188] ss:$16 sps:$4 sm:$0xff]  }
 0x1a8   : > { %1664 = vmatprep.subr.bf16.mxu0 %v7611_v17  ;;  %1707 = vmatprep.subr.bf16.mxu1 %v7614_v18  ;;  %v8261_v17 = vld [vmem:[#allocation4 + $0x1a4] ss:$16 sps:$4 sm:$0xff]   ;;  %v8262_v18 = vld [vmem:[#allocation4 + $0x1ac] ss:$16 sps:$4 sm:$0xff]  }
 0x1ab   : > { %1665 = vmatpush1.bf16.msra.mxu0 %v7609_v20  ;;  %1708 = vmatpush1.bf16.msra.mxu1 %v7612_v21  ;;  %v8264_v20 = vld [vmem:[#allocation4 + $0x1a8] ss:$16 sps:$4 sm:$0xff]   ;;  %v8265_v21 = vld [vmem:[#allocation4 + $0x1c4] ss:$16 sps:$4 sm:$0xff]  }
 0x1ac   : > { %1943 = vmatprep.subr.bf16.mxu0 %v7617_v22  ;;  %1986 = vmatprep.subr.bf16.mxu1 %v7620_v23  ;;  %v8266_v22 = vld [vmem:[#allocation4 + $0x1cc] ss:$16 sps:$4 sm:$0xff]   ;;  %v8267_v23 = vld [vmem:[#allocation4 + $0x1c0] ss:$16 sps:$4 sm:$0xff]  }
 0x1ae   : > { %1683 = vmatmul.mubr.bf16.vlgmr.msra.gmra.mrb[0].mxu0 %v9203_v28  ;;  %1726 = vmatmul.mubr.bf16.vlgmr.msra.gmra.mrb[0].mxu1 %v9203_v28 }
 0x1af   : > { %1944 = vmatpush1.bf16.msra.mxu0 %v7615_v25  ;;  %1987 = vmatpush1.bf16.msra.mxu1 %v7618_v27  ;;  %v8270_v25 = vld [vmem:[#allocation4 + $0x1ec] ss:$16 sps:$4 sm:$0xff]   ;;  %v8271_v27 = vld [vmem:[#allocation4 + $0x1e0] ss:$16 sps:$4 sm:$0xff]  }
 0x1b0   : > { %1945 = vmatprep.subr.bf16.mxu0 %v7623_v29  ;;  %1988 = vmatprep.subr.bf16.mxu1 %v7626_v30  ;;  %v8272_v29 = vld [vmem:[#allocation4 + $0x1e8] ss:$16 sps:$4 sm:$0xff]   ;;  %v8273_v30 = vld [vmem:[#allocation4 + $0x4] ss:$16 sps:$4 sm:$0xff]  }
 0x1b1   : > { %1975 = vmatprep.mubr.bf16.mxu0 %v8784_v0  ;;  %2018 = vmatprep.mubr.bf16.mxu1 %v8784_v0 }
 0x1b3   : > { %1946 = vmatpush1.bf16.msra.mxu0 %v7621_v31  ;;  %1989 = vmatpush1.bf16.msra.mxu1 %v7624_v32  ;;  %v8274_v31 = vld [vmem:[#allocation4 + $0xc] ss:$16 sps:$4 sm:$0xff]   ;;  %v8275_v32 = vld [vmem:[#allocation4] ss:$16 sps:$4 sm:$0xff]  }
 0x1b4   : > { %1947 = vmatprep.subr.bf16.mxu0 %v7629_v33  ;;  %1990 = vmatprep.subr.bf16.mxu1 %v7632_v35  ;;  %v8276_v33 = vld [vmem:[#allocation4 + $0x8] ss:$16 sps:$4 sm:$0xff]   ;;  %v8277_v35 = vld [vmem:[#allocation4 + $0x24] ss:$16 sps:$4 sm:$0xff]  }
 0x1b7   : > { %1948 = vmatpush1.bf16.msra.mxu0 %v7627_v36  ;;  %1991 = vmatpush1.bf16.msra.mxu1 %v7630_v37  ;;  %v8278_v36 = vld [vmem:[#allocation4 + $0x2c] ss:$16 sps:$4 sm:$0xff]   ;;  %v8279_v37 = vld [vmem:[#allocation4 + $0x20] ss:$16 sps:$4 sm:$0xff]  }
 0x1b8   : > { %1949 = vmatprep.subr.bf16.mxu0 %v7635_v39  ;;  %1992 = vmatprep.subr.bf16.mxu1 %v7638_v40  ;;  %v8280_v39 = vld [vmem:[#allocation4 + $0x28] ss:$16 sps:$4 sm:$0xff]   ;;  %v8281_v40 = vld [vmem:[#allocation4 + $0x44] ss:$16 sps:$4 sm:$0xff]  }
 0x1bb   : > { %1950 = vmatpush1.bf16.msra.mxu0 %v7633_v41  ;;  %1993 = vmatpush1.bf16.msra.mxu1 %v7636_v42  ;;  %v8282_v41 = vld [vmem:[#allocation4 + $0x4c] ss:$16 sps:$4 sm:$0xff]   ;;  %v8284_v42 = vld [vmem:[#allocation4 + $0x48] ss:$16 sps:$4 sm:$0xff]  }
 0x1bc   : > { %1951 = vmatprep.subr.bf16.mxu0 %v7641_v43  ;;  %1994 = vmatprep.subr.bf16.mxu1 %v7644_v44  ;;  %v8285_v43 = vld [vmem:[#allocation4 + $0x64] ss:$16 sps:$4 sm:$0xff]   ;;  %v8286_v44 = vld [vmem:[#allocation4 + $0x6c] ss:$16 sps:$4 sm:$0xff]  }
 0x1bf   : > { %1952 = vmatpush1.bf16.msra.mxu0 %v7639_v45  ;;  %1995 = vmatpush1.bf16.msra.mxu1 %v7642_v46  ;;  %v8287_v45 = vld [vmem:[#allocation4 + $0x60] ss:$16 sps:$4 sm:$0xff]   ;;  %v8288_v46 = vld [vmem:[#allocation4 + $0x68] ss:$16 sps:$4 sm:$0xff]  }
 0x1c0   : > { %1953 = vmatprep.subr.bf16.mxu0 %v7647_v47  ;;  %1996 = vmatprep.subr.bf16.mxu1 %v7650_v48  ;;  %v8289_v47 = vld [vmem:[#allocation4 + $0x84] ss:$16 sps:$4 sm:$0xff]   ;;  %v8290_v48 = vld [vmem:[#allocation4 + $0x8c] ss:$16 sps:$4 sm:$0xff]  }
 0x1c3   : > { %1954 = vmatpush1.bf16.msra.mxu0 %v7645_v50  ;;  %1997 = vmatpush1.bf16.msra.mxu1 %v7648_v51  ;;  %v8291_v50 = vld [vmem:[#allocation4 + $0x80] ss:$16 sps:$4 sm:$0xff]   ;;  %v8292_v51 = vld [vmem:[#allocation4 + $0x88] ss:$16 sps:$4 sm:$0xff]  }
 0x1c4   : > { %1955 = vmatprep.subr.bf16.mxu0 %v7653_v52  ;;  %1998 = vmatprep.subr.bf16.mxu1 %v7656_v53  ;;  %v8293_v52 = vld [vmem:[#allocation4 + $0xa4] ss:$16 sps:$4 sm:$0xff]   ;;  %v8294_v53 = vld [vmem:[#allocation4 + $0xac] ss:$16 sps:$4 sm:$0xff]  }
 0x1c7   : > { %1956 = vmatpush1.bf16.msra.mxu0 %v7651_v54  ;;  %1999 = vmatpush1.bf16.msra.mxu1 %v7654_v55  ;;  %v8295_v54 = vld [vmem:[#allocation4 + $0xa0] ss:$16 sps:$4 sm:$0xff]   ;;  %v8296_v55 = vld [vmem:[#allocation4 + $0xa8] ss:$16 sps:$4 sm:$0xff]  }
 0x1c8   : > { %1957 = vmatprep.subr.bf16.mxu0 %v7659_v56  ;;  %2000 = vmatprep.subr.bf16.mxu1 %v7662_v57  ;;  %v8297_v56 = vld [vmem:[#allocation4 + $0xc4] ss:$16 sps:$4 sm:$0xff]   ;;  %v8298_v57 = vld [vmem:[#allocation4 + $0xcc] ss:$16 sps:$4 sm:$0xff]  }
 0x1cb   : > { %1958 = vmatpush1.bf16.msra.mxu0 %v7657_v58  ;;  %2001 = vmatpush1.bf16.msra.mxu1 %v7660_v59  ;;  %v8299_v58 = vld [vmem:[#allocation4 + $0xc0] ss:$16 sps:$4 sm:$0xff]   ;;  %v8300_v59 = vld [vmem:[#allocation4 + $0xc8] ss:$16 sps:$4 sm:$0xff]  }
 0x1cc   : > { %2078 = vmatprep.subr.bf16.mxu0 %v8241_v61  ;;  %2121 = vmatprep.subr.bf16.mxu1 %v8242_v62  ;;  %v8301_v61 = vld [vmem:[#allocation4 + $0xe4] ss:$16 sps:$4 sm:$0xff]   ;;  %v8302_v62 = vld [vmem:[#allocation4 + $0xec] ss:$16 sps:$4 sm:$0xff]  }
 0x1ce   : > { %1976 = vmatmul.mubr.bf16.vlgmr.msra.gmra.mrb[0].mxu0 %v9212_v60  ;;  %2019 = vmatmul.mubr.bf16.vlgmr.msra.gmra.mrb[0].mxu1 %v9212_v60 }
 0x1cf   : > { %2079 = vmatpush1.bf16.msra.mxu0 %v8243_v63  ;;  %2122 = vmatpush1.bf16.msra.mxu1 %v8244_v1  ;;  %v8303_v63 = vld [vmem:[#allocation4 + $0xe0] ss:$16 sps:$4 sm:$0xff]   ;;  %v8304_v1 = vld [vmem:[#allocation4 + $0xe8] ss:$16 sps:$4 sm:$0xff]  }
 0x1d0   : > { %2080 = vmatprep.subr.bf16.mxu0 %v8245_v2  ;;  %2123 = vmatprep.subr.bf16.mxu1 %v8246_v5  ;;  %v8305_v2 = vld [vmem:[#allocation4 + $0x204] ss:$16 sps:$4 sm:$0xff]   ;;  %v8306_v5 = vld [vmem:[#allocation4 + $0x20c] ss:$16 sps:$4 sm:$0xff]  }
 0x1d1   : > { %2110 = vmatprep.mubr.bf16.mxu0 %v8784_v0  ;;  %2153 = vmatprep.mubr.bf16.mxu1 %v8784_v0 }
 0x1d3   : > { %2081 = vmatpush1.bf16.msra.mxu0 %v8247_v26  ;;  %2124 = vmatpush1.bf16.msra.mxu1 %v8248_v3  ;;  %v8307_v26 = vld [vmem:[#allocation4 + $0x200] ss:$16 sps:$4 sm:$0xff]   ;;  %v8308_v3 = vld [vmem:[#allocation4 + $0x208] ss:$16 sps:$4 sm:$0xff]  }
 0x1d4   : > { %2082 = vmatprep.subr.bf16.mxu0 %v8249_v4  ;;  %2125 = vmatprep.subr.bf16.mxu1 %v8250_v6  ;;  %v8309_v4 = vld [vmem:[#allocation4 + $0x224] ss:$16 sps:$4 sm:$0xff]   ;;  %v8310_v6 = vld [vmem:[#allocation4 + $0x22c] ss:$16 sps:$4 sm:$0xff]  }
 0x1d7   : > { %2083 = vmatpush1.bf16.msra.mxu0 %v8251_v7  ;;  %2126 = vmatpush1.bf16.msra.mxu1 %v8252_v8  ;;  %v8311_v7 = vld [vmem:[#allocation4 + $0x220] ss:$16 sps:$4 sm:$0xff]   ;;  %v8312_v8 = vld [vmem:[#allocation4 + $0x228] ss:$16 sps:$4 sm:$0xff]  }
 0x1d8   : > { %2084 = vmatprep.subr.bf16.mxu0 %v8253_v9  ;;  %2127 = vmatprep.subr.bf16.mxu1 %v8254_v10  ;;  %v8313_v9 = vld [vmem:[#allocation4 + $0x244] ss:$16 sps:$4 sm:$0xff]   ;;  %v8314_v10 = vld [vmem:[#allocation4 + $0x24c] ss:$16 sps:$4 sm:$0xff]  }
 0x1db   : > { %2085 = vmatpush1.bf16.msra.mxu0 %v8255_v11  ;;  %2128 = vmatpush1.bf16.msra.mxu1 %v8256_v12  ;;  %v8316_v11 = vld [vmem:[#allocation4 + $0x248] ss:$16 sps:$4 sm:$0xff]   ;;  %v8317_v12 = vld [vmem:[#allocation4 + $0x264] ss:$16 sps:$4 sm:$0xff]  }
 0x1dc   : > { %2086 = vmatprep.subr.bf16.mxu0 %v8257_v13  ;;  %2129 = vmatprep.subr.bf16.mxu1 %v8258_v14  ;;  %v8318_v13 = vld [vmem:[#allocation4 + $0x26c] ss:$16 sps:$4 sm:$0xff]   ;;  %v8319_v14 = vld [vmem:[#allocation4 + $0x260] ss:$16 sps:$4 sm:$0xff]  }
 0x1df   : > { %2087 = vmatpush1.bf16.msra.mxu0 %v8259_v15  ;;  %2130 = vmatpush1.bf16.msra.mxu1 %v8260_v16  ;;  %v8320_v15 = vld [vmem:[#allocation4 + $0x268] ss:$16 sps:$4 sm:$0xff]   ;;  %v8321_v16 = vld [vmem:[#allocation4 + $0x284] ss:$16 sps:$4 sm:$0xff]  }
 0x1e0   : > { %2088 = vmatprep.subr.bf16.mxu0 %v8261_v17  ;;  %2131 = vmatprep.subr.bf16.mxu1 %v8262_v18  ;;  %v8322_v17 = vld [vmem:[#allocation4 + $0x28c] ss:$16 sps:$4 sm:$0xff]   ;;  %v8323_v18 = vld [vmem:[#allocation4 + $0x280] ss:$16 sps:$4 sm:$0xff]  }
 0x1e3   : > { %2089 = vmatpush1.bf16.msra.mxu0 %v8263_v19  ;;  %2132 = vmatpush1.bf16.msra.mxu1 %v8264_v20  ;;  %v8324_v19 = vld [vmem:[#allocation4 + $0x288] ss:$16 sps:$4 sm:$0xff]   ;;  %v8325_v20 = vld [vmem:[#allocation4 + $0x2a4] ss:$16 sps:$4 sm:$0xff]  }
 0x1e4   : > { %2090 = vmatprep.subr.bf16.mxu0 %v8265_v21  ;;  %2133 = vmatprep.subr.bf16.mxu1 %v8266_v22  ;;  %v8326_v21 = vld [vmem:[#allocation4 + $0x2ac] ss:$16 sps:$4 sm:$0xff]   ;;  %v8327_v22 = vld [vmem:[#allocation4 + $0x2a0] ss:$16 sps:$4 sm:$0xff]  }
 0x1e7   : > { %2091 = vmatpush1.bf16.msra.mxu0 %v8267_v23  ;;  %2134 = vmatpush1.bf16.msra.mxu1 %v8268_v34  ;;  %v8328_v23 = vld [vmem:[#allocation4 + $0x2a8] ss:$16 sps:$4 sm:$0xff]   ;;  %v8329_v34 = vld [vmem:[#allocation4 + $0x2c4] ss:$16 sps:$4 sm:$0xff]  }
 0x1e8   : > { %2092 = vmatprep.subr.bf16.mxu0 %v8269_v24  ;;  %2135 = vmatprep.subr.bf16.mxu1 %v8270_v25  ;;  %v8330_v24 = vld [vmem:[#allocation4 + $0x2cc] ss:$16 sps:$4 sm:$0xff]   ;;  %v8331_v25 = vld [vmem:[#allocation4 + $0x2c0] ss:$16 sps:$4 sm:$0xff]  }
 0x1eb   : > { %2093 = vmatpush1.bf16.msra.mxu0 %v8271_v27  ;;  %2136 = vmatpush1.bf16.msra.mxu1 %v8272_v29  ;;  %v8332_v27 = vld [vmem:[#allocation4 + $0x2c8] ss:$16 sps:$4 sm:$0xff]   ;;  %v8333_v29 = vld [vmem:[#allocation4 + $0x2e4] ss:$16 sps:$4 sm:$0xff]  }
 0x1ec   : > { %2164 = vmatprep.subr.bf16.mxu0 %v8273_v30  ;;  %2207 = vmatprep.subr.bf16.mxu1 %v8274_v31  ;;  %v8334_v30 = vld [vmem:[#allocation4 + $0x2ec] ss:$16 sps:$4 sm:$0xff]   ;;  %v8335_v31 = vld [vmem:[#allocation4 + $0x2e0] ss:$16 sps:$4 sm:$0xff]  }
 0x1ee   : > { %2111 = vmatmul.mubr.bf16.vlgmr.msra.gmra.mrb[4].mxu0 %v9190_v49  ;;  %2154 = vmatmul.mubr.bf16.vlgmr.msra.gmra.mrb[4].mxu1 %v9190_v49  ;;  %v8283_v49 = vld [vmem:[#allocation4 + $0x40] ss:$16 sps:$4 sm:$0xff]  }
 0x1ef   : > { %2165 = vmatpush1.bf16.msra.mxu0 %v8275_v32  ;;  %2208 = vmatpush1.bf16.msra.mxu1 %v8276_v33  ;;  %v8336_v32 = vld [vmem:[#allocation4 + $0x2e8] ss:$16 sps:$4 sm:$0xff]   ;;  %v8337_v33 = vld [vmem:[#allocation4 + $0x304] ss:$16 sps:$4 sm:$0xff]  }
 0x1f0   : > { %2166 = vmatprep.subr.bf16.mxu0 %v8277_v35  ;;  %2209 = vmatprep.subr.bf16.mxu1 %v8278_v36  ;;  %v8338_v35 = vld [vmem:[#allocation4 + $0x30c] ss:$16 sps:$4 sm:$0xff]   ;;  %v8339_v36 = vld [vmem:[#allocation4 + $0x300] ss:$16 sps:$4 sm:$0xff]  }
 0x1f1   : > { %2196 = vmatprep.mubr.bf16.mxu0 %v8784_v0  ;;  %2239 = vmatprep.mubr.bf16.mxu1 %v8784_v0 }
 0x1f3   : > { %2167 = vmatpush1.bf16.msra.mxu0 %v8279_v37  ;;  %2210 = vmatpush1.bf16.msra.mxu1 %v8280_v39  ;;  %v8340_v37 = vld [vmem:[#allocation4 + $0x308] ss:$16 sps:$4 sm:$0xff]   ;;  %v8341_v39 = vld [vmem:[#allocation4 + $0x324] ss:$16 sps:$4 sm:$0xff]  }
 0x1f4   : > { %2168 = vmatprep.subr.bf16.mxu0 %v8281_v40  ;;  %2211 = vmatprep.subr.bf16.mxu1 %v8282_v41  ;;  %v8342_v40 = vld [vmem:[#allocation4 + $0x32c] ss:$16 sps:$4 sm:$0xff]   ;;  %v8343_v41 = vld [vmem:[#allocation4 + $0x320] ss:$16 sps:$4 sm:$0xff]  }
 0x1f7   : > { %2169 = vmatpush1.bf16.msra.mxu0 %v8283_v49  ;;  %2212 = vmatpush1.bf16.msra.mxu1 %v8284_v42  ;;  %v8344_v49 = vld [vmem:[#allocation4 + $0x328] ss:$16 sps:$4 sm:$0xff]   ;;  %v8345_v42 = vld [vmem:[#allocation4 + $0x344] ss:$16 sps:$4 sm:$0xff]  }
 0x1f8   : > { %2170 = vmatprep.subr.bf16.mxu0 %v8285_v43  ;;  %2213 = vmatprep.subr.bf16.mxu1 %v8286_v44  ;;  %v8346_v43 = vld [vmem:[#allocation4 + $0x34c] ss:$16 sps:$4 sm:$0xff]   ;;  %v8348_v44 = vld [vmem:[#allocation4 + $0x348] ss:$16 sps:$4 sm:$0xff]  }
 0x1fb   : > { %2171 = vmatpush1.bf16.msra.mxu0 %v8287_v45  ;;  %2214 = vmatpush1.bf16.msra.mxu1 %v8288_v46  ;;  %v8349_v45 = vld [vmem:[#allocation4 + $0x364] ss:$16 sps:$4 sm:$0xff]   ;;  %v8350_v46 = vld [vmem:[#allocation4 + $0x36c] ss:$16 sps:$4 sm:$0xff]  }
 0x1fc   : > { %2172 = vmatprep.subr.bf16.mxu0 %v8289_v47  ;;  %2215 = vmatprep.subr.bf16.mxu1 %v8290_v48  ;;  %v8351_v47 = vld [vmem:[#allocation4 + $0x360] ss:$16 sps:$4 sm:$0xff]   ;;  %v8352_v48 = vld [vmem:[#allocation4 + $0x368] ss:$16 sps:$4 sm:$0xff]  }
 0x1ff   : > { %2173 = vmatpush1.bf16.msra.mxu0 %v8291_v50  ;;  %2216 = vmatpush1.bf16.msra.mxu1 %v8292_v51  ;;  %v8353_v50 = vld [vmem:[#allocation4 + $0x384] ss:$16 sps:$4 sm:$0xff]   ;;  %v8354_v51 = vld [vmem:[#allocation4 + $0x38c] ss:$16 sps:$4 sm:$0xff]  }
 0x200   : > { %2174 = vmatprep.subr.bf16.mxu0 %v8293_v52  ;;  %2217 = vmatprep.subr.bf16.mxu1 %v8294_v53  ;;  %v8355_v52 = vld [vmem:[#allocation4 + $0x380] ss:$16 sps:$4 sm:$0xff]   ;;  %v8356_v53 = vld [vmem:[#allocation4 + $0x388] ss:$16 sps:$4 sm:$0xff]  }
 0x203   : > { %2175 = vmatpush1.bf16.msra.mxu0 %v8295_v54  ;;  %2218 = vmatpush1.bf16.msra.mxu1 %v8296_v55  ;;  %v8357_v54 = vld [vmem:[#allocation4 + $0x3a4] ss:$16 sps:$4 sm:$0xff]   ;;  %v8358_v55 = vld [vmem:[#allocation4 + $0x3ac] ss:$16 sps:$4 sm:$0xff]  }
 0x204   : > { %2176 = vmatprep.subr.bf16.mxu0 %v8297_v56  ;;  %2219 = vmatprep.subr.bf16.mxu1 %v8298_v57  ;;  %v8359_v56 = vld [vmem:[#allocation4 + $0x3a0] ss:$16 sps:$4 sm:$0xff]   ;;  %v8360_v57 = vld [vmem:[#allocation4 + $0x3a8] ss:$16 sps:$4 sm:$0xff]  }
 0x207   : > { %2177 = vmatpush1.bf16.msra.mxu0 %v8299_v58  ;;  %2220 = vmatpush1.bf16.msra.mxu1 %v8300_v59  ;;  %v8361_v58 = vld [vmem:[#allocation4 + $0x3c4] ss:$16 sps:$4 sm:$0xff]   ;;  %v8362_v59 = vld [vmem:[#allocation4 + $0x3cc] ss:$16 sps:$4 sm:$0xff]  }
 0x208   : > { %2178 = vmatprep.subr.bf16.mxu0 %v8301_v61  ;;  %2221 = vmatprep.subr.bf16.mxu1 %v8302_v62  ;;  %v8363_v61 = vld [vmem:[#allocation4 + $0x3c0] ss:$16 sps:$4 sm:$0xff]   ;;  %v8364_v62 = vld [vmem:[#allocation4 + $0x3c8] ss:$16 sps:$4 sm:$0xff]  }
 0x20b   : > { %2179 = vmatpush1.bf16.msra.mxu0 %v8303_v63  ;;  %2222 = vmatpush1.bf16.msra.mxu1 %v8304_v1  ;;  %v8365_v63 = vld [vmem:[#allocation4 + $0x3e4] ss:$16 sps:$4 sm:$0xff]   ;;  %v8366_v1 = vld [vmem:[#allocation4 + $0x3ec] ss:$16 sps:$4 sm:$0xff]  }
 0x20c   : > { %2250 = vmatprep.subr.bf16.mxu0 %v8305_v2  ;;  %2293 = vmatprep.subr.bf16.mxu1 %v8306_v5  ;;  %v8367_v2 = vld [vmem:[#allocation4 + $0x3e0] ss:$16 sps:$4 sm:$0xff]   ;;  %v8368_v5 = vld [vmem:[#allocation4 + $0x3e8] ss:$16 sps:$4 sm:$0xff]  }
 0x20e   : > { %2197 = vmatmul.mubr.bf16.vlgmr.msra.gmra.mrb[4].mxu0 %v9169_v38  ;;  %2240 = vmatmul.mubr.bf16.vlgmr.msra.gmra.mrb[4].mxu1 %v9169_v38  ;;  %v8315_v38 = vld [vmem:[#allocation4 + $0x240] ss:$16 sps:$4 sm:$0xff]  }
 0x20f   : > { %2251 = vmatpush1.bf16.msra.mxu0 %v8307_v26  ;;  %2294 = vmatpush1.bf16.msra.mxu1 %v8308_v3  ;;  %v8369_v26 = vld [vmem:[#allocation4 + $0x404] ss:$16 sps:$4 sm:$0xff]   ;;  %v8370_v3 = vld [vmem:[#allocation4 + $0x40c] ss:$16 sps:$4 sm:$0xff]  }
 0x210   : > { %2252 = vmatprep.subr.bf16.mxu0 %v8309_v4  ;;  %2295 = vmatprep.subr.bf16.mxu1 %v8310_v6  ;;  %v8371_v4 = vld [vmem:[#allocation4 + $0x400] ss:$16 sps:$4 sm:$0xff]   ;;  %v8372_v6 = vld [vmem:[#allocation4 + $0x408] ss:$16 sps:$4 sm:$0xff]  }
 0x211   : > { %2282 = vmatprep.mubr.bf16.mxu0 %v8784_v0  ;;  %2325 = vmatprep.mubr.bf16.mxu1 %v8784_v0 }
 0x213   : > { %2253 = vmatpush1.bf16.msra.mxu0 %v8311_v7  ;;  %2296 = vmatpush1.bf16.msra.mxu1 %v8312_v8  ;;  %v8373_v7 = vld [vmem:[#allocation4 + $0x424] ss:$16 sps:$4 sm:$0xff]   ;;  %v8374_v8 = vld [vmem:[#allocation4 + $0x42c] ss:$16 sps:$4 sm:$0xff]  }
 0x214   : > { %2254 = vmatprep.subr.bf16.mxu0 %v8313_v9  ;;  %2297 = vmatprep.subr.bf16.mxu1 %v8314_v10  ;;  %v8375_v9 = vld [vmem:[#allocation4 + $0x420] ss:$16 sps:$4 sm:$0xff]   ;;  %v8376_v10 = vld [vmem:[#allocation4 + $0x428] ss:$16 sps:$4 sm:$0xff]  }
 0x217   : > { %2255 = vmatpush1.bf16.msra.mxu0 %v8315_v38  ;;  %2298 = vmatpush1.bf16.msra.mxu1 %v8316_v11  ;;  %v8377_v38 = vld [vmem:[#allocation4 + $0x444] ss:$16 sps:$4 sm:$0xff]   ;;  %v8378_v11 = vld [vmem:[#allocation4 + $0x44c] ss:$16 sps:$4 sm:$0xff]  }
 0x218   : > { %2256 = vmatprep.subr.bf16.mxu0 %v8317_v12  ;;  %2299 = vmatprep.subr.bf16.mxu1 %v8318_v13  ;;  %v8380_v12 = vld [vmem:[#allocation4 + $0x448] ss:$16 sps:$4 sm:$0xff]   ;;  %v8381_v13 = vld [vmem:[#allocation4 + $0x464] ss:$16 sps:$4 sm:$0xff]  }
 0x21b   : > { %2257 = vmatpush1.bf16.msra.mxu0 %v8319_v14  ;;  %2300 = vmatpush1.bf16.msra.mxu1 %v8320_v15  ;;  %v8382_v14 = vld [vmem:[#allocation4 + $0x46c] ss:$16 sps:$4 sm:$0xff]   ;;  %v8383_v15 = vld [vmem:[#allocation4 + $0x460] ss:$16 sps:$4 sm:$0xff]  }
 0x21c   : > { %2258 = vmatprep.subr.bf16.mxu0 %v8321_v16  ;;  %2301 = vmatprep.subr.bf16.mxu1 %v8322_v17  ;;  %v8384_v16 = vld [vmem:[#allocation4 + $0x468] ss:$16 sps:$4 sm:$0xff]   ;;  %v8386_v17 = vld [vmem:[#allocation4 + $0x48c] ss:$16 sps:$4 sm:$0xff]  }
 0x21f   : > { %2259 = vmatpush1.bf16.msra.mxu0 %v8323_v18  ;;  %2302 = vmatpush1.bf16.msra.mxu1 %v8324_v19  ;;  %v8387_v18 = vld [vmem:[#allocation4 + $0x480] ss:$16 sps:$4 sm:$0xff]   ;;  %v8388_v19 = vld [vmem:[#allocation4 + $0x488] ss:$16 sps:$4 sm:$0xff]  }
 0x220   : > { %2260 = vmatprep.subr.bf16.mxu0 %v8325_v20  ;;  %2303 = vmatprep.subr.bf16.mxu1 %v8326_v21  ;;  %v8389_v20 = vld [vmem:[#allocation4 + $0x4a4] ss:$16 sps:$4 sm:$0xff]   ;;  %v8390_v21 = vld [vmem:[#allocation4 + $0x4ac] ss:$16 sps:$4 sm:$0xff]  }
 0x223   : > { %2261 = vmatpush1.bf16.msra.mxu0 %v8327_v22  ;;  %2304 = vmatpush1.bf16.msra.mxu1 %v8328_v23  ;;  %v8391_v22 = vld [vmem:[#allocation4 + $0x4a0] ss:$16 sps:$4 sm:$0xff]   ;;  %v8392_v23 = vld [vmem:[#allocation4 + $0x4a8] ss:$16 sps:$4 sm:$0xff]  }
 0x224   : > { %2262 = vmatprep.subr.bf16.mxu0 %v8329_v34  ;;  %2305 = vmatprep.subr.bf16.mxu1 %v8330_v24  ;;  %v2438_v34 = vld [vmem:[%s9162_s5] sm:$0xe]  ;;  %v8393_v24 = vld [vmem:[#allocation4 + $0x4c4] ss:$16 sps:$4 sm:$0xff]  }
 0x227   : > { %2263 = vmatpush1.bf16.msra.mxu0 %v8331_v25  ;;  %2306 = vmatpush1.bf16.msra.mxu1 %v8332_v27  ;;  %v8394_v25 = vld [vmem:[#allocation4 + $0x4cc] ss:$16 sps:$4 sm:$0xff]   ;;  %v8395_v27 = vld [vmem:[%s9162_s5 + $0x4] sm:$0xf] }
 0x228   : > { %2264 = vmatprep.subr.bf16.mxu0 %v8333_v29  ;;  %2307 = vmatprep.subr.bf16.mxu1 %v8334_v30  ;;  %v6586_v29 = vcombine.low %v2438_v34, %v8395_v27  ;;  %v8396_v30 = vld [vmem:[#allocation4 + $0x4c0] ss:$16 sps:$4 sm:$0xff]  }
 0x22b   : > { %2265 = vmatpush1.bf16.msra.mxu0 %v8335_v31  ;;  %2308 = vmatpush1.bf16.msra.mxu1 %v8336_v32  ;;  %v8397_v31 = vld [vmem:[#allocation4 + $0x4c8] ss:$16 sps:$4 sm:$0xff]   ;;  %v8398_v32 = vld [vmem:[#allocation4 + $0x4e4] ss:$16 sps:$4 sm:$0xff]  }
 0x22c   : > { %2344 = vmatprep.subr.bf16.mxu0 %v8337_v33  ;;  %2387 = vmatprep.subr.bf16.mxu1 %v8338_v35  ;;  %v8399_v33 = vld [vmem:[#allocation4 + $0x4ec] ss:$16 sps:$4 sm:$0xff]   ;;  %v7667_v35 = vld [vmem:[#allocation9 + $0x204] ss:$16 sps:$4 sm:$0xff]  }
 0x22e   : > { %2283 = vmatmul.mubr.bf16.vlgmr.msra.gmra.mrb[4].mxu0 %v9203_v28  ;;  %2326 = vmatmul.mubr.bf16.vlgmr.msra.gmra.mrb[4].mxu1 %v9203_v28  ;;  %v8347_v28 = vld [vmem:[#allocation4 + $0x340] ss:$16 sps:$4 sm:$0xff]  }
 0x22f   : > { %2345 = vmatpush1.bf16.msra.mxu0 %v8339_v36  ;;  %2388 = vmatpush1.bf16.msra.mxu1 %v8340_v37  ;;  %v7670_v36 = vld [vmem:[#allocation9 + $0x20c] ss:$16 sps:$4 sm:$0xff]   ;;  %v2442_v37 = vrot.slane %v6586_v29, 1 }
 0x230   : > { %2346 = vmatprep.subr.bf16.mxu0 %v8341_v39  ;;  %2389 = vmatprep.subr.bf16.mxu1 %v8342_v40  ;;  %v8400_v39 = vld [vmem:[#allocation4 + $0x4e0] ss:$16 sps:$4 sm:$0xff]   ;;  %v8401_v40 = vld [vmem:[#allocation4 + $0x4e8] ss:$16 sps:$4 sm:$0xff]  }
 0x231   : > { %2376 = vmatprep.mubr.bf16.mxu0 %v8784_v0  ;;  %2419 = vmatprep.mubr.bf16.mxu1 %v8784_v0 }
 0x233   : > { %2347 = vmatpush1.bf16.msra.mxu0 %v8343_v41  ;;  %2390 = vmatpush1.bf16.msra.mxu1 %v8344_v49  ;;  %v7665_v41 = vld [vmem:[#allocation9 + $0x200] ss:$16 sps:$4 sm:$0xff]   ;;  %v7668_v49 = vld [vmem:[#allocation9 + $0x208] ss:$16 sps:$4 sm:$0xff]  }
 0x234   : > { %2348 = vmatprep.subr.bf16.mxu0 %v8345_v42  ;;  %2391 = vmatprep.subr.bf16.mxu1 %v8346_v43  ;;  %v7673_v42 = vld [vmem:[#allocation9 + $0x224] ss:$16 sps:$4 sm:$0xff]   ;;  %v7676_v43 = vld [vmem:[#allocation9 + $0x22c] ss:$16 sps:$4 sm:$0xff]  }
 0x237   : > { %2349 = vmatpush1.bf16.msra.mxu0 %v8347_v28  ;;  %2392 = vmatpush1.bf16.msra.mxu1 %v8348_v44  ;;  %v7671_v28 = vld [vmem:[#allocation9 + $0x220] ss:$16 sps:$4 sm:$0xff]   ;;  %v7674_v44 = vld [vmem:[#allocation9 + $0x228] ss:$16 sps:$4 sm:$0xff]  }
 0x238   : > { %2350 = vmatprep.subr.bf16.mxu0 %v8349_v45  ;;  %2393 = vmatprep.subr.bf16.mxu1 %v8350_v46  ;;  %v7679_v45 = vld [vmem:[#allocation9 + $0x244] ss:$16 sps:$4 sm:$0xff]   ;;  %v7682_v46 = vld [vmem:[#allocation9 + $0x24c] ss:$16 sps:$4 sm:$0xff]  }
 0x23b   : > { %2351 = vmatpush1.bf16.msra.mxu0 %v8351_v47  ;;  %2394 = vmatpush1.bf16.msra.mxu1 %v8352_v48  ;;  %v7677_v47 = vld [vmem:[#allocation9 + $0x240] ss:$16 sps:$4 sm:$0xff]   ;;  %v7680_v48 = vld [vmem:[#allocation9 + $0x248] ss:$16 sps:$4 sm:$0xff]  }
 0x23c   : > { %2352 = vmatprep.subr.bf16.mxu0 %v8353_v50  ;;  %2395 = vmatprep.subr.bf16.mxu1 %v8354_v51  ;;  %v7685_v50 = vld [vmem:[#allocation9 + $0x264] ss:$16 sps:$4 sm:$0xff]   ;;  %v7688_v51 = vld [vmem:[#allocation9 + $0x26c] ss:$16 sps:$4 sm:$0xff]  }
 0x23f   : > { %2353 = vmatpush1.bf16.msra.mxu0 %v8355_v52  ;;  %2396 = vmatpush1.bf16.msra.mxu1 %v8356_v53  ;;  %v7683_v52 = vld [vmem:[#allocation9 + $0x260] ss:$16 sps:$4 sm:$0xff]   ;;  %v7686_v53 = vld [vmem:[#allocation9 + $0x268] ss:$16 sps:$4 sm:$0xff]  }
 0x240   : > { %2354 = vmatprep.subr.bf16.mxu0 %v8357_v54  ;;  %2397 = vmatprep.subr.bf16.mxu1 %v8358_v55  ;;  %v7691_v54 = vld [vmem:[#allocation9 + $0x284] ss:$16 sps:$4 sm:$0xff]   ;;  %v7694_v55 = vld [vmem:[#allocation9 + $0x28c] ss:$16 sps:$4 sm:$0xff]  }
 0x243   : > { %2355 = vmatpush1.bf16.msra.mxu0 %v8359_v56  ;;  %2398 = vmatpush1.bf16.msra.mxu1 %v8360_v57  ;;  %v7689_v56 = vld [vmem:[#allocation9 + $0x280] ss:$16 sps:$4 sm:$0xff]   ;;  %v7692_v57 = vld [vmem:[#allocation9 + $0x288] ss:$16 sps:$4 sm:$0xff]  }
 0x244   : > { %2356 = vmatprep.subr.bf16.mxu0 %v8361_v58  ;;  %2399 = vmatprep.subr.bf16.mxu1 %v8362_v59  ;;  %v7697_v58 = vld [vmem:[#allocation9 + $0x2a4] ss:$16 sps:$4 sm:$0xff]   ;;  %v7700_v59 = vld [vmem:[#allocation9 + $0x2ac] ss:$16 sps:$4 sm:$0xff]  }
 0x247   : > { %2357 = vmatpush1.bf16.msra.mxu0 %v8363_v61  ;;  %2400 = vmatpush1.bf16.msra.mxu1 %v8364_v62  ;;  %v7695_v61 = vld [vmem:[#allocation9 + $0x2a0] ss:$16 sps:$4 sm:$0xff]   ;;  %v7698_v62 = vld [vmem:[#allocation9 + $0x2a8] ss:$16 sps:$4 sm:$0xff]  }
 0x248   : > { %2358 = vmatprep.subr.bf16.mxu0 %v8365_v63  ;;  %2401 = vmatprep.subr.bf16.mxu1 %v8366_v1  ;;  %v7703_v63 = vld [vmem:[#allocation9 + $0x2c4] ss:$16 sps:$4 sm:$0xff]   ;;  %v7706_v1 = vld [vmem:[#allocation9 + $0x2cc] ss:$16 sps:$4 sm:$0xff]  }
 0x24b   : > { %2359 = vmatpush1.bf16.msra.mxu0 %v8367_v2  ;;  %2402 = vmatpush1.bf16.msra.mxu1 %v8368_v5  ;;  %v7701_v2 = vld [vmem:[#allocation9 + $0x2c0] ss:$16 sps:$4 sm:$0xff]   ;;  %v7704_v5 = vld [vmem:[#allocation9 + $0x2c8] ss:$16 sps:$4 sm:$0xff]  }
 0x24c   : > { %2444 = vmatprep.subr.bf16.mxu0 %v8369_v26  ;;  %2487 = vmatprep.subr.bf16.mxu1 %v8370_v3  ;;  %v7709_v26 = vld [vmem:[#allocation9 + $0x2e4] ss:$16 sps:$4 sm:$0xff]   ;;  %v7712_v3 = vld [vmem:[#allocation9 + $0x2ec] ss:$16 sps:$4 sm:$0xff]  }
 0x24e   : > { %2377 = vmatmul.mubr.bf16.vlgmr.msra.gmra.mrb[4].mxu0 %v9212_v60  ;;  %2420 = vmatmul.mubr.bf16.vlgmr.msra.gmra.mrb[4].mxu1 %v9212_v60  ;;  %v8379_v60 = vld [vmem:[#allocation4 + $0x440] ss:$16 sps:$4 sm:$0xff]  }
 0x24f   : > { %2445 = vmatpush1.bf16.msra.mxu0 %v8371_v4  ;;  %2488 = vmatpush1.bf16.msra.mxu1 %v8372_v6  ;;  %v7707_v4 = vld [vmem:[#allocation9 + $0x2e0] ss:$16 sps:$4 sm:$0xff]   ;;  %v7710_v6 = vld [vmem:[#allocation9 + $0x2e8] ss:$16 sps:$4 sm:$0xff]  }
 0x250   : > { %2446 = vmatprep.subr.bf16.mxu0 %v8373_v7  ;;  %2489 = vmatprep.subr.bf16.mxu1 %v8374_v8  ;;  %v7715_v7 = vld [vmem:[#allocation9 + $0x304] ss:$16 sps:$4 sm:$0xff]   ;;  %v7718_v8 = vld [vmem:[#allocation9 + $0x30c] ss:$16 sps:$4 sm:$0xff]  }
 0x251   : > { %2476 = vmatprep.mubr.bf16.mxu0 %v8784_v0  ;;  %2519 = vmatprep.mubr.bf16.mxu1 %v8784_v0  ;;  %v8385_v0 = vld [vmem:[#allocation4 + $0x484] ss:$16 sps:$4 sm:$0xff]  }
 0x253   : > { %2447 = vmatpush1.bf16.msra.mxu0 %v8375_v9  ;;  %2490 = vmatpush1.bf16.msra.mxu1 %v8376_v10  ;;  %v7713_v9 = vld [vmem:[#allocation9 + $0x300] ss:$16 sps:$4 sm:$0xff]   ;;  %v7716_v10 = vld [vmem:[#allocation9 + $0x308] ss:$16 sps:$4 sm:$0xff]  }
 0x254   : > { %2448 = vmatprep.subr.bf16.mxu0 %v8377_v38  ;;  %2491 = vmatprep.subr.bf16.mxu1 %v8378_v11  ;;  %v2038_v38 = vlaneseq }
 0x256   : > { %v9236_v11 = vshrl.u32 %v2038_v38, 7  ;;  %v7760_v38 = vld [vmem:[#allocation9 + $0x3ec] ss:$16 sps:$4 sm:$0xff]  }
 0x257   : > { %2449 = vmatpush1.bf16.msra.mxu0 %v8379_v60  ;;  %2492 = vmatpush1.bf16.msra.mxu1 %v8380_v12 }
 0x258   : > { %2450 = vmatprep.subr.bf16.mxu0 %v8381_v13  ;;  %2493 = vmatprep.subr.bf16.mxu1 %v8382_v14  ;;  %v9239_v60 = vsub.s32 0, %v9236_v11  ;;  %v2048_v12 = vsub.s32 2, %v9236_v11  ;;  %v568_v13 = vld [vmem:[#allocation7] sm:$0xf]  ;;  %v9243_v14 = vsub.s32 1, %v9236_v11 }
 0x25b   : > { %2451 = vmatpush1.bf16.msra.mxu0 %v8383_v15  ;;  %2494 = vmatpush1.bf16.msra.mxu1 %v8384_v16  ;;  %v2052_v15 = vsub.s32 3, %v9236_v11  ;;  %v9247_v16 = vrot.slane %v568_v13, %v9239_v60 }
 0x25c   : > { %2452 = vmatprep.subr.bf16.mxu0 %v8385_v0  ;;  %2495 = vmatprep.subr.bf16.mxu1 %v8386_v17  ;;  %v9251_v0 = vrot.slane %v568_v13, %v2048_v12  ;;  %v9254_v17 = vrot.slane %v568_v13, %v9243_v14 }
 0x25f   : > { %2453 = vmatpush1.bf16.msra.mxu0 %v8387_v18  ;;  %2496 = vmatpush1.bf16.msra.mxu1 %v8388_v19  ;;  %v9258_v18 = vrot.slane %v568_v13, %v2052_v15  ;;  %v7755_v13 = vld [vmem:[#allocation9 + $0x3e0] ss:$16 sps:$4 sm:$0xff]  }
 0x260   : > { %2454 = vmatprep.subr.bf16.mxu0 %v8389_v20  ;;  %2497 = vmatprep.subr.bf16.mxu1 %v8390_v21 }
 0x263   : > { %2455 = vmatpush1.bf16.msra.mxu0 %v8391_v22  ;;  %2498 = vmatpush1.bf16.msra.mxu1 %v8392_v23 }
 0x264   : > { %2456 = vmatprep.subr.bf16.mxu0 %v8393_v24  ;;  %2499 = vmatprep.subr.bf16.mxu1 %v8394_v25 }
 0x267   : > { %2457 = vmatpush1.bf16.msra.mxu0 %v8396_v30  ;;  %2500 = vmatpush1.bf16.msra.mxu1 %v8397_v31 }
 0x268   : > { %2458 = vmatprep.subr.bf16.mxu0 %v8398_v32  ;;  %2501 = vmatprep.subr.bf16.mxu1 %v8399_v33 }
 0x26b   : > { %2459 = vmatpush1.bf16.msra.mxu0 %v8400_v39  ;;  %2502 = vmatpush1.bf16.msra.mxu1 %v8401_v40 }
 0x26c   : > { %3043 = vmatprep.subr.bf16.mxu0 %v7667_v35  ;;  %3086 = vmatprep.subr.bf16.mxu1 %v7670_v36 }
 0x26e   : > { %2477 = vmatmul.mubr.bf16.vlgmr.msra.gmra.mrb[4].mxu0 %v2442_v37  ;;  %2520 = vmatmul.mubr.bf16.vlgmr.msra.gmra.mrb[4].mxu1 %v2442_v37 }
 0x26f   : > { %3044 = vmatpush1.bf16.msra.mxu0 %v7665_v41  ;;  %3087 = vmatpush1.bf16.msra.mxu1 %v7668_v49 }
 0x270   : > { %3045 = vmatprep.subr.bf16.mxu0 %v7673_v42  ;;  %3088 = vmatprep.subr.bf16.mxu1 %v7676_v43 }
 0x273   : > { %3046 = vmatpush1.bf16.msra.mxu0 %v7671_v28  ;;  %3089 = vmatpush1.bf16.msra.mxu1 %v7674_v44 }
 0x274   : > { %3047 = vmatprep.subr.bf16.mxu0 %v7679_v45  ;;  %3090 = vmatprep.subr.bf16.mxu1 %v7682_v46 }
 0x277   : > { %3048 = vmatpush1.bf16.msra.mxu0 %v7677_v47  ;;  %3091 = vmatpush1.bf16.msra.mxu1 %v7680_v48  ;;  %v7721_v48 = vld [vmem:[#allocation9 + $0x324] ss:$16 sps:$4 sm:$0xff]  }
 0x278   : > { %3049 = vmatprep.subr.bf16.mxu0 %v7685_v50  ;;  %3092 = vmatprep.subr.bf16.mxu1 %v7688_v51  ;;  %v7724_v50 = vld [vmem:[#allocation9 + $0x32c] ss:$16 sps:$4 sm:$0xff]   ;;  %v7719_v51 = vld [vmem:[#allocation9 + $0x320] ss:$16 sps:$4 sm:$0xff]  }
 0x27b   : > { %3050 = vmatpush1.bf16.msra.mxu0 %v7683_v52  ;;  %3093 = vmatpush1.bf16.msra.mxu1 %v7686_v53  ;;  %v7722_v52 = vld [vmem:[#allocation9 + $0x328] ss:$16 sps:$4 sm:$0xff]   ;;  %v7727_v53 = vld [vmem:[#allocation9 + $0x344] ss:$16 sps:$4 sm:$0xff]  }
 0x27c   : > { %3051 = vmatprep.subr.bf16.mxu0 %v7691_v54  ;;  %3094 = vmatprep.subr.bf16.mxu1 %v7694_v55  ;;  %v7730_v54 = vld [vmem:[#allocation9 + $0x34c] ss:$16 sps:$4 sm:$0xff]   ;;  %v7725_v55 = vld [vmem:[#allocation9 + $0x340] ss:$16 sps:$4 sm:$0xff]  }
 0x27f   : > { %3052 = vmatpush1.bf16.msra.mxu0 %v7689_v56  ;;  %3095 = vmatpush1.bf16.msra.mxu1 %v7692_v57  ;;  %v7728_v56 = vld [vmem:[#allocation9 + $0x348] ss:$16 sps:$4 sm:$0xff]   ;;  %v7733_v57 = vld [vmem:[#allocation9 + $0x364] ss:$16 sps:$4 sm:$0xff]  }
 0x280   : > { %3053 = vmatprep.subr.bf16.mxu0 %v7697_v58  ;;  %3096 = vmatprep.subr.bf16.mxu1 %v7700_v59  ;;  %v7736_v58 = vld [vmem:[#allocation9 + $0x36c] ss:$16 sps:$4 sm:$0xff]   ;;  %v7731_v59 = vld [vmem:[#allocation9 + $0x360] ss:$16 sps:$4 sm:$0xff]  }
 0x283   : > { %3054 = vmatpush1.bf16.msra.mxu0 %v7695_v61  ;;  %3097 = vmatpush1.bf16.msra.mxu1 %v7698_v62  ;;  %v7734_v61 = vld [vmem:[#allocation9 + $0x368] ss:$16 sps:$4 sm:$0xff]   ;;  %v7739_v62 = vld [vmem:[#allocation9 + $0x384] ss:$16 sps:$4 sm:$0xff]  }
 0x284   : > { %3055 = vmatprep.subr.bf16.mxu0 %v7703_v63  ;;  %3098 = vmatprep.subr.bf16.mxu1 %v7706_v1  ;;  %v7742_v63 = vld [vmem:[#allocation9 + $0x38c] ss:$16 sps:$4 sm:$0xff]   ;;  %v7737_v1 = vld [vmem:[#allocation9 + $0x380] ss:$16 sps:$4 sm:$0xff]  }
 0x287   : > { %3056 = vmatpush1.bf16.msra.mxu0 %v7701_v2  ;;  %3099 = vmatpush1.bf16.msra.mxu1 %v7704_v5  ;;  %v7740_v2 = vld [vmem:[#allocation9 + $0x388] ss:$16 sps:$4 sm:$0xff]   ;;  %v7745_v5 = vld [vmem:[#allocation9 + $0x3a4] ss:$16 sps:$4 sm:$0xff]  }
 0x288   : > { %3057 = vmatprep.subr.bf16.mxu0 %v7709_v26  ;;  %3100 = vmatprep.subr.bf16.mxu1 %v7712_v3  ;;  %v7743_v26 = vld [vmem:[#allocation9 + $0x3a0] ss:$16 sps:$4 sm:$0xff]   ;;  %v7746_v3 = vld [vmem:[#allocation9 + $0x3a8] ss:$16 sps:$4 sm:$0xff]  }
 0x28b   : > { %3058 = vmatpush1.bf16.msra.mxu0 %v7707_v4  ;;  %3101 = vmatpush1.bf16.msra.mxu1 %v7710_v6  ;;  %v7748_v4 = vld [vmem:[#allocation9 + $0x3ac] ss:$16 sps:$4 sm:$0xff]   ;;  %v7751_v6 = vld [vmem:[#allocation9 + $0x3c4] ss:$16 sps:$4 sm:$0xff]  }
 0x28c   : > { %3059 = vmatprep.subr.bf16.mxu0 %v7715_v7  ;;  %3102 = vmatprep.subr.bf16.mxu1 %v7718_v8  ;;  %v7754_v7 = vld [vmem:[#allocation9 + $0x3cc] ss:$16 sps:$4 sm:$0xff]   ;;  %v7749_v8 = vld [vmem:[#allocation9 + $0x3c0] ss:$16 sps:$4 sm:$0xff]  }
 0x28f   : > { %3060 = vmatpush1.bf16.msra.mxu0 %v7713_v9  ;;  %3103 = vmatpush1.bf16.msra.mxu1 %v7716_v10  ;;  %v7752_v9 = vld [vmem:[#allocation9 + $0x3c8] ss:$16 sps:$4 sm:$0xff]   ;;  %v7757_v10 = vld [vmem:[#allocation9 + $0x3e4] ss:$16 sps:$4 sm:$0xff]  }
 0x290   : > { %3061 = vmatprep.subr.bf16.mxu0 %v7721_v48  ;;  %3104 = vmatprep.subr.bf16.mxu1 %v7724_v50 }
 0x293   : > { %3062 = vmatpush1.bf16.msra.mxu0 %v7719_v51  ;;  %3105 = vmatpush1.bf16.msra.mxu1 %v7722_v52 }
 0x294   : > { %3063 = vmatprep.subr.bf16.mxu0 %v7727_v53  ;;  %3106 = vmatprep.subr.bf16.mxu1 %v7730_v54 }
 0x297   : > { %3064 = vmatpush1.bf16.msra.mxu0 %v7725_v55  ;;  %3107 = vmatpush1.bf16.msra.mxu1 %v7728_v56 }
 0x298   : > { %3065 = vmatprep.subr.bf16.mxu0 %v7733_v57  ;;  %3108 = vmatprep.subr.bf16.mxu1 %v7736_v58 }
 0x29b   : > { %3066 = vmatpush1.bf16.msra.mxu0 %v7731_v59  ;;  %3109 = vmatpush1.bf16.msra.mxu1 %v7734_v61 }
 0x29c   : > { %3067 = vmatprep.subr.bf16.mxu0 %v7739_v62  ;;  %3110 = vmatprep.subr.bf16.mxu1 %v7742_v63 }
 0x29f   : > { %3068 = vmatpush1.bf16.msra.mxu0 %v7737_v1  ;;  %3111 = vmatpush1.bf16.msra.mxu1 %v7740_v2 }
 0x2a0   : > { %3069 = vmatprep.subr.bf16.mxu0 %v7745_v5  ;;  %3112 = vmatprep.subr.bf16.mxu1 %v7748_v4 }
 0x2a1   : > { %v1977_v19 = vpop.f32.mrb[0].mxu0  ;;  %v2020_v20 = vpop.f32.mrb[0].mxu1 }
 0x2a2   : > { %v2058_v21 = vadd.f32 %v9247_v16, %v1977_v19  ;;  %v2060_v22 = vadd.f32 %v9251_v0, %v2020_v20  ;;  %v1979_v23 = vpop.f32.mrb[1].mxu0  ;;  %v2022_v34 = vpop.f32.mrb[1].mxu1  ;;  %v7758_v19 = vld [vmem:[#allocation9 + $0x3e8] ss:$16 sps:$4 sm:$0xff]   ;;  %v7763_v20 = vld [vmem:[#allocation9 + $0x4] ss:$16 sps:$4 sm:$0xff]  }
 0x2a3   : > { %v2059_v24 = vadd.f32 %v9254_v17, %v1979_v23  ;;  %v2061_v25 = vadd.f32 %v9258_v18, %v2022_v34  ;;  %v1981_v27 = vpop.f32.mrb[2].mxu0  ;;  %v2024_v29 = vpop.f32.mrb[2].mxu1  ;;  %3070 = vmatpush1.bf16.msra.mxu0 %v7743_v26  ;;  %3113 = vmatpush1.bf16.msra.mxu1 %v7746_v3  ;;  %v7761_v3 = vld [vmem:[#allocation9] ss:$16 sps:$4 sm:$0xff]  }
 0x2a4   : > { %v2066_v30 = vmax.f32 %v2058_v21, 0.0  ;;  %v2068_v31 = vmax.f32 %v2060_v22, 0.0  ;;  %v2062_v32 = vadd.f32 %v9247_v16, %v1981_v27  ;;  %v2064_v33 = vadd.f32 %v9251_v0, %v2024_v29  ;;  %v1983_v35 = vpop.f32.mrb[3].mxu0  ;;  %v2026_v36 = vpop.f32.mrb[3].mxu1  ;;  %3071 = vmatprep.subr.bf16.mxu0 %v7751_v6  ;;  %3114 = vmatprep.subr.bf16.mxu1 %v7754_v7  ;;  %v7766_v21 = vld [vmem:[#allocation9 + $0xc] ss:$16 sps:$4 sm:$0xff]  }
 0x2a5   : > { %v2067_v37 = vmax.f32 %v2059_v24, 0.0  ;;  %v2069_v39 = vmax.f32 %v2061_v25, 0.0  ;;  %v2063_v40 = vadd.f32 %v9254_v17, %v1983_v35  ;;  %v2065_v41 = vadd.f32 %v9258_v18, %v2026_v36  ;;  %v7772_v7 = vld [vmem:[#allocation9 + $0x2c] ss:$16 sps:$4 sm:$0xff]  }
 0x2a6   : > { %v9268_v49 = vmax.f32 %v2066_v30, %v2068_v31  ;;  %v2070_v42 = vmax.f32 %v2062_v32, 0.0  ;;  %v2072_v43 = vmax.f32 %v2064_v33, 0.0 }
 0x2a7   : > { %v9270_v28 = vmax.f32 %v2067_v37, %v2069_v39  ;;  %v2071_v44 = vmax.f32 %v2063_v40, 0.0  ;;  %v2073_v45 = vmax.f32 %v2065_v41, 0.0  ;;  %3072 = vmatpush1.bf16.msra.mxu0 %v7749_v8  ;;  %3115 = vmatpush1.bf16.msra.mxu1 %v7752_v9  ;;  %v7767_v9 = vld [vmem:[#allocation9 + $0x20] ss:$16 sps:$4 sm:$0xff]  }
 0x2a8   : > { %v9272_v46 = vmax.f32 %v2070_v42, %v2072_v43  ;;  %3073 = vmatprep.subr.bf16.mxu0 %v7757_v10  ;;  %3116 = vmatprep.subr.bf16.mxu1 %v7760_v38  ;;  %v7770_v10 = vld [vmem:[#allocation9 + $0x28] ss:$16 sps:$4 sm:$0xff]   ;;  %v7775_v38 = vld [vmem:[#allocation9 + $0x44] ss:$16 sps:$4 sm:$0xff]  }
 0x2a9   : > { %v9274_v47 = vmax.f32 %v2071_v44, %v2073_v45 }
 0x2ab   : > { %3074 = vmatpush1.bf16.msra.mxu0 %v7755_v13  ;;  %3117 = vmatpush1.bf16.msra.mxu1 %v7758_v19  ;;  %v7778_v13 = vld [vmem:[#allocation9 + $0x4c] ss:$16 sps:$4 sm:$0xff]   ;;  %v7773_v19 = vld [vmem:[#allocation9 + $0x40] ss:$16 sps:$4 sm:$0xff]  }
 0x2ac   : > { %3449 = vmatprep.subr.bf16.mxu0 %v7763_v20  ;;  %3492 = vmatprep.subr.bf16.mxu1 %v7766_v21  ;;  %v7776_v20 = vld [vmem:[#allocation9 + $0x48] ss:$16 sps:$4 sm:$0xff]   ;;  %v7781_v21 = vld [vmem:[#allocation9 + $0x64] ss:$16 sps:$4 sm:$0xff]  }
 0x341   : > { %v2478_v22 = vpop.f32.mrb[4].mxu0  ;;  %v2521_v23 = vpop.f32.mrb[4].mxu1 }
 0x342   : > { %v2538_v34 = vadd.f32 %v2478_v22, %v9247_v16  ;;  %v2540_v24 = vadd.f32 %v2521_v23, %v9251_v0  ;;  %v2480_v25 = vpop.f32.mrb[5].mxu0  ;;  %v2523_v27 = vpop.f32.mrb[5].mxu1  ;;  %v7784_v22 = vld [vmem:[#allocation9 + $0x6c] ss:$16 sps:$4 sm:$0xff]   ;;  %v7779_v23 = vld [vmem:[#allocation9 + $0x60] ss:$16 sps:$4 sm:$0xff]  }
 0x343   : > { %v2539_v29 = vadd.f32 %v2480_v25, %v9254_v17  ;;  %v2541_v30 = vadd.f32 %v2523_v27, %v9258_v18  ;;  %v2482_v31 = vpop.f32.mrb[6].mxu0  ;;  %v2525_v32 = vpop.f32.mrb[6].mxu1  ;;  %v7790_v25 = vld [vmem:[#allocation9 + $0x8c] ss:$16 sps:$4 sm:$0xff]   ;;  %v7785_v27 = vld [vmem:[#allocation9 + $0x80] ss:$16 sps:$4 sm:$0xff]  }
 0x344   : > { %v2546_v33 = vmax.f32 %v2538_v34, 0.0  ;;  %v2548_v35 = vmax.f32 %v2540_v24, 0.0  ;;  %v2542_v36 = vadd.f32 %v2482_v31, %v9247_v16  ;;  %v2544_v37 = vadd.f32 %v2525_v32, %v9251_v0  ;;  %v2484_v39 = vpop.f32.mrb[7].mxu0  ;;  %v2527_v40 = vpop.f32.mrb[7].mxu1  ;;  %v7782_v34 = vld [vmem:[#allocation9 + $0x68] ss:$16 sps:$4 sm:$0xff]  }
 0x345   : > { %v2547_v41 = vmax.f32 %v2539_v29, 0.0  ;;  %v2549_v42 = vmax.f32 %v2541_v30, 0.0  ;;  %v2543_v43 = vadd.f32 %v2484_v39, %v9254_v17  ;;  %v2545_v44 = vadd.f32 %v2527_v40, %v9258_v18  ;;  %v7787_v24 = vld [vmem:[#allocation9 + $0x84] ss:$16 sps:$4 sm:$0xff]   ;;  %v7788_v29 = vld [vmem:[#allocation9 + $0x88] ss:$16 sps:$4 sm:$0xff]  }
 0x346   : > { %v2554_v45 = vmax.f32 %v2546_v33, %v2548_v35  ;;  %v2550_v48 = vmax.f32 %v2542_v36, 0.0  ;;  %v2552_v50 = vmax.f32 %v2544_v37, 0.0  ;;  %v7793_v30 = vld [vmem:[#allocation9 + $0xa4] ss:$16 sps:$4 sm:$0xff]   ;;  %v7796_v31 = vld [vmem:[#allocation9 + $0xac] ss:$16 sps:$4 sm:$0xff]  }
 0x347   : > { %v2555_v51 = vmax.f32 %v2547_v41, %v2549_v42  ;;  %v2551_v52 = vmax.f32 %v2543_v43, 0.0  ;;  %v2553_v53 = vmax.f32 %v2545_v44, 0.0  ;;  %v7791_v32 = vld [vmem:[#allocation9 + $0xa0] ss:$16 sps:$4 sm:$0xff]   ;;  %v7794_v33 = vld [vmem:[#allocation9 + $0xa8] ss:$16 sps:$4 sm:$0xff]  }
 0x348   : > { %v9285_v54 = vmax.f32 %v9268_v49, %v2554_v45  ;;  %v2556_v16 = vmax.f32 %v2550_v48, %v2552_v50  ;;  %v7799_v35 = vld [vmem:[#allocation9 + $0xc4] ss:$16 sps:$4 sm:$0xff]   ;;  %v7802_v36 = vld [vmem:[#allocation9 + $0xcc] ss:$16 sps:$4 sm:$0xff]   ;;  %v7797_v37 = vld [vmem:[#allocation9 + $0xc0] ss:$16 sps:$4 sm:$0xff]  }
 0x349   : > { %v2559_v0 = vmax.f32 %v9270_v28, %v2555_v51  ;;  %v2557_v55 = vmax.f32 %v2551_v52, %v2553_v53  ;;  %v7800_v39 = vld [vmem:[#allocation9 + $0xc8] ss:$16 sps:$4 sm:$0xff]   ;;  %v7805_v40 = vld [vmem:[#allocation9 + $0xe4] ss:$16 sps:$4 sm:$0xff]   ;;  %v7808_v41 = vld [vmem:[#allocation9 + $0xec] ss:$16 sps:$4 sm:$0xff]  }
 0x34a   : > { %2562 = vst [vmem:[#allocation2] sm:$0xff] %v9285_v54  ;;  %v2560_v56 = vmax.f32 %v9272_v46, %v2556_v16  ;;  %v7764_v46 = vld [vmem:[#allocation9 + $0x8] ss:$16 sps:$4 sm:$0xff]   ;;  %v7803_v42 = vld [vmem:[#allocation9 + $0xe0] ss:$16 sps:$4 sm:$0xff]  }
 0x34b   : > { %2563 = vst [vmem:[#allocation2 + $0x8] sm:$0xff] %v2559_v0  ;;  %v2561_v17 = vmax.f32 %v9274_v47, %v2557_v55  ;;  %v7769_v47 = vld [vmem:[#allocation9 + $0x24] ss:$16 sps:$4 sm:$0xff]   ;;  %v7806_v43 = vld [vmem:[#allocation9 + $0xe8] ss:$16 sps:$4 sm:$0xff]  }
 0x34c   : > { %2564 = vst [vmem:[#allocation2 + $0x10] sm:$0x3f] %v2560_v56  ;;  %v7811_v44 = vld [vmem:[#allocation9 + $0x104] ss:$16 sps:$4 sm:$0xff]   ;;  %v7814_v45 = vld [vmem:[#allocation9 + $0x10c] ss:$16 sps:$4 sm:$0xff]  }
 0x34d   : > { %2565 = vst [vmem:[#allocation2 + $0x18] sm:$0x3f] %v2561_v17  ;;  %v7809_v48 = vld [vmem:[#allocation9 + $0x100] ss:$16 sps:$4 sm:$0xff]   ;;  %v7812_v50 = vld [vmem:[#allocation9 + $0x108] ss:$16 sps:$4 sm:$0xff]  }
 0x34e   : > { %v7817_v51 = vld [vmem:[#allocation9 + $0x124] ss:$16 sps:$4 sm:$0xff]   ;;  %v7820_v52 = vld [vmem:[#allocation9 + $0x12c] ss:$16 sps:$4 sm:$0xff]   ;;  %v7815_v53 = vld [vmem:[#allocation9 + $0x120] ss:$16 sps:$4 sm:$0xff]  }
 0x34f   : > { %v7818_v16 = vld [vmem:[#allocation9 + $0x128] ss:$16 sps:$4 sm:$0xff]   ;;  %v7826_v55 = vld [vmem:[#allocation9 + $0x14c] ss:$16 sps:$4 sm:$0xff]   ;;  %v7821_v56 = vld [vmem:[#allocation9 + $0x140] ss:$16 sps:$4 sm:$0xff]  }
 0x350   : > { %v7824_v17 = vld [vmem:[#allocation9 + $0x148] ss:$16 sps:$4 sm:$0xff]  }
 0x351   : > { %v2636_v18 = vld [vmem:[#allocation2] sm:$0xfe] }
 0x352   : > { %v2637_v58 = vld [vmem:[#allocation2 + $0x8] sm:$0xfe] }
 0x353   : > { %v2638_v57 = vld [vmem:[#allocation2 + $0x10] sm:$0x7] }
 0x354   : > { %v2639_v59 = vld [vmem:[#allocation2 + $0x18] sm:$0x7]  ;;  %v2640_v61 = vpack.c.bf16 %v2638_v57, %v2636_v18  ;;  %v7832_v57 = vld [vmem:[#allocation9 + $0x16c] ss:$16 sps:$4 sm:$0xff]  }
 0x355   : > { %v2641_v49 = vpack.c.bf16 %v2639_v59, %v2637_v58  ;;  %v2569_v4 = vld [vmem:[#allocation2 + $0x18] sm:$0x3]  ;;  %v7827_v58 = vld [vmem:[#allocation9 + $0x160] ss:$16 sps:$4 sm:$0xff]   ;;  %v7830_v59 = vld [vmem:[#allocation9 + $0x168] ss:$16 sps:$4 sm:$0xff]  }
 0x356   : > { %v2710_v62 = vshll.u32 %v2640_v61, 16  ;;  %v2708_v5 = vshrl.u32 %v2640_v61, 16  ;;  %v2571_v8 = vpack.c.bf16 %v2569_v4, %v2559_v0  ;;  %v7823_v0 = vld [vmem:[#allocation9 + $0x144] ss:$16 sps:$4 sm:$0xff]   ;;  %v7848_v4 = vld [vmem:[#allocation9 + $0x1c8] ss:$16 sps:$4 sm:$0xff]  }
 0x357   : > { %v2717_v63 = vshll.u32 %v2641_v49, 16  ;;  %v2715_v28 = vshrl.u32 %v2641_v49, 16  ;;  %v7829_v18 = vld [vmem:[#allocation9 + $0x164] ss:$16 sps:$4 sm:$0xff]   ;;  %v7838_v49 = vld [vmem:[#allocation9 + $0x18c] ss:$16 sps:$4 sm:$0xff]  }
 0x358   : > { %v2712_v1 = vrot.slane %v2710_v62, 1  ;;  %v7835_v61 = vld [vmem:[#allocation9 + $0x184] ss:$16 sps:$4 sm:$0xff]   ;;  %v7833_v62 = vld [vmem:[#allocation9 + $0x180] ss:$16 sps:$4 sm:$0xff]  }
 0x359   : > { %v2719_v2 = vrot.slane %v2717_v63, 1  ;;  %v7836_v63 = vld [vmem:[#allocation9 + $0x188] ss:$16 sps:$4 sm:$0xff]  }
 0x35a   : > { %v2713_v6 = vor.u32 %v2712_v1, %v2708_v5  ;;  %v7841_v1 = vld [vmem:[#allocation9 + $0x1a4] ss:$16 sps:$4 sm:$0xff]   ;;  %v7842_v5 = vld [vmem:[#allocation9 + $0x1a8] ss:$16 sps:$4 sm:$0xff]  }
 0x35b   : > { %v2720_v26 = vor.u32 %v2719_v2, %v2715_v28  ;;  %v7844_v28 = vld [vmem:[#allocation9 + $0x1ac] ss:$16 sps:$4 sm:$0xff]   ;;  %v7839_v2 = vld [vmem:[#allocation9 + $0x1a0] ss:$16 sps:$4 sm:$0xff]  }
 0x35d   : > { %3075 = vmatprep.mubr.bf16.mxu0 %v2720_v26  ;;  %3118 = vmatprep.mubr.bf16.mxu1 %v2720_v26  ;;  %v7847_v26 = vld [vmem:[#allocation9 + $0x1c4] ss:$16 sps:$4 sm:$0xff]  }
 0x35e   : > { %3076 = vmatmul.mubr.bf16.vlgmr.msra.gmra.mrb[8].mxu0 %v2713_v6  ;;  %3119 = vmatmul.mubr.bf16.vlgmr.msra.gmra.mrb[8].mxu1 %v2713_v6  ;;  %v7853_v6 = vld [vmem:[#allocation9 + $0x1e4] ss:$16 sps:$4 sm:$0xff]  }
 0x35f   : > { %3450 = vmatpush1.bf16.msra.mxu0 %v7761_v3  ;;  %3493 = vmatpush1.bf16.msra.mxu1 %v7764_v46  ;;  %v7850_v3 = vld [vmem:[#allocation9 + $0x1cc] ss:$16 sps:$4 sm:$0xff]   ;;  %v7845_v46 = vld [vmem:[#allocation9 + $0x1c0] ss:$16 sps:$4 sm:$0xff]  }
 0x360   : > { %3481 = vmatprep.mubr.bf16.mxu0 %v2571_v8  ;;  %3524 = vmatprep.mubr.bf16.mxu1 %v2571_v8  ;;  %v7851_v8 = vld [vmem:[#allocation9 + $0x1e0] ss:$16 sps:$4 sm:$0xff]  }
 0x361   : > { %3451 = vmatprep.subr.bf16.mxu0 %v7769_v47  ;;  %3494 = vmatprep.subr.bf16.mxu1 %v7772_v7  ;;  %v7856_v47 = vld [vmem:[#allocation9 + $0x1ec] ss:$16 sps:$4 sm:$0xff]   ;;  %v3538_v7 = vld [vmem:[#allocation2 + $0x18] sm:$0xf] }
 0x363   : > { %3452 = vmatpush1.bf16.msra.mxu0 %v7767_v9  ;;  %3495 = vmatpush1.bf16.msra.mxu1 %v7770_v10  ;;  %v7854_v9 = vld [vmem:[#allocation9 + $0x1e8] ss:$16 sps:$4 sm:$0xff]   ;;  %v7859_v10 = vld [vmem:[#allocation9 + $0x404] ss:$16 sps:$4 sm:$0xff]  }
 0x364   : > { %3453 = vmatprep.subr.bf16.mxu0 %v7775_v38  ;;  %3496 = vmatprep.subr.bf16.mxu1 %v7778_v13  ;;  %v7862_v38 = vld [vmem:[#allocation9 + $0x40c] ss:$16 sps:$4 sm:$0xff]   ;;  %v3536_v13 = vld [vmem:[#allocation2 + $0x8] sm:$0xfc] }
 0x367   : > { %3454 = vmatpush1.bf16.msra.mxu0 %v7773_v19  ;;  %3497 = vmatpush1.bf16.msra.mxu1 %v7776_v20  ;;  %v2568_v19 = vld [vmem:[#allocation2 + $0x10] sm:$0x3]  ;;  %v3540_v20 = vpack.c.bf16 %v3538_v7, %v3536_v13  ;;  %v7932_v7 = vld [vmem:[#allocation9 + $0x588] ss:$16 sps:$4 sm:$0xff]  }
 0x368   : > { %3455 = vmatprep.subr.bf16.mxu0 %v7781_v21  ;;  %3498 = vmatprep.subr.bf16.mxu1 %v7784_v22  ;;  %v7857_v21 = vld [vmem:[#allocation9 + $0x400] ss:$16 sps:$4 sm:$0xff]   ;;  %v2570_v22 = vpack.c.bf16 %v2568_v19, %v9285_v54  ;;  %v7938_v13 = vld [vmem:[#allocation9 + $0x5a8] ss:$16 sps:$4 sm:$0xff]   ;;  %v7943_v19 = vld [vmem:[#allocation9 + $0x5c4] ss:$16 sps:$4 sm:$0xff]  }
 0x369   : > { %v7869_v54 = vld [vmem:[#allocation9 + $0x440] ss:$16 sps:$4 sm:$0xff]  }
 0x36b   : > { %3456 = vmatpush1.bf16.msra.mxu0 %v7779_v23  ;;  %3499 = vmatpush1.bf16.msra.mxu1 %v7782_v34  ;;  %v7860_v23 = vld [vmem:[#allocation9 + $0x408] ss:$16 sps:$4 sm:$0xff]   ;;  %v3609_v34 = vrot.slane %v3540_v20, 1  ;;  %v7946_v20 = vld [vmem:[#allocation9 + $0x5cc] ss:$16 sps:$4 sm:$0xff]  }
 0x36c   : > { %3457 = vmatprep.subr.bf16.mxu0 %v7787_v24  ;;  %3500 = vmatprep.subr.bf16.mxu1 %v7790_v25  ;;  %v7865_v24 = vld [vmem:[#allocation9 + $0x424] ss:$16 sps:$4 sm:$0xff]   ;;  %v7868_v25 = vld [vmem:[#allocation9 + $0x42c] ss:$16 sps:$4 sm:$0xff]  }
 0x36f   : > { %3458 = vmatpush1.bf16.msra.mxu0 %v7785_v27  ;;  %3501 = vmatpush1.bf16.msra.mxu1 %v7788_v29  ;;  %v7863_v27 = vld [vmem:[#allocation9 + $0x420] ss:$16 sps:$4 sm:$0xff]   ;;  %v7866_v29 = vld [vmem:[#allocation9 + $0x428] ss:$16 sps:$4 sm:$0xff]  }
 0x370   : > { %3459 = vmatprep.subr.bf16.mxu0 %v7793_v30  ;;  %3502 = vmatprep.subr.bf16.mxu1 %v7796_v31  ;;  %v7871_v30 = vld [vmem:[#allocation9 + $0x444] ss:$16 sps:$4 sm:$0xff]   ;;  %v7874_v31 = vld [vmem:[#allocation9 + $0x44c] ss:$16 sps:$4 sm:$0xff]  }
 0x373   : > { %3460 = vmatpush1.bf16.msra.mxu0 %v7791_v32  ;;  %3503 = vmatpush1.bf16.msra.mxu1 %v7794_v33  ;;  %v7872_v32 = vld [vmem:[#allocation9 + $0x448] ss:$16 sps:$4 sm:$0xff]   ;;  %v7877_v33 = vld [vmem:[#allocation9 + $0x464] ss:$16 sps:$4 sm:$0xff]  }
 0x374   : > { %3461 = vmatprep.subr.bf16.mxu0 %v7799_v35  ;;  %3504 = vmatprep.subr.bf16.mxu1 %v7802_v36  ;;  %v7880_v35 = vld [vmem:[#allocation9 + $0x46c] ss:$16 sps:$4 sm:$0xff]   ;;  %v7875_v36 = vld [vmem:[#allocation9 + $0x460] ss:$16 sps:$4 sm:$0xff]  }
 0x377   : > { %3462 = vmatpush1.bf16.msra.mxu0 %v7797_v37  ;;  %3505 = vmatpush1.bf16.msra.mxu1 %v7800_v39  ;;  %v7878_v37 = vld [vmem:[#allocation9 + $0x468] ss:$16 sps:$4 sm:$0xff]   ;;  %v7883_v39 = vld [vmem:[#allocation9 + $0x484] ss:$16 sps:$4 sm:$0xff]  }
 0x378   : > { %3463 = vmatprep.subr.bf16.mxu0 %v7805_v40  ;;  %3506 = vmatprep.subr.bf16.mxu1 %v7808_v41  ;;  %v7886_v40 = vld [vmem:[#allocation9 + $0x48c] ss:$16 sps:$4 sm:$0xff]   ;;  %v7881_v41 = vld [vmem:[#allocation9 + $0x480] ss:$16 sps:$4 sm:$0xff]  }
 0x37b   : > { %3464 = vmatpush1.bf16.msra.mxu0 %v7803_v42  ;;  %3507 = vmatpush1.bf16.msra.mxu1 %v7806_v43  ;;  %v7884_v42 = vld [vmem:[#allocation9 + $0x488] ss:$16 sps:$4 sm:$0xff]   ;;  %v7889_v43 = vld [vmem:[#allocation9 + $0x4a4] ss:$16 sps:$4 sm:$0xff]  }
 0x37c   : > { %3465 = vmatprep.subr.bf16.mxu0 %v7811_v44  ;;  %3508 = vmatprep.subr.bf16.mxu1 %v7814_v45  ;;  %v7892_v44 = vld [vmem:[#allocation9 + $0x4ac] ss:$16 sps:$4 sm:$0xff]   ;;  %v7887_v45 = vld [vmem:[#allocation9 + $0x4a0] ss:$16 sps:$4 sm:$0xff]  }
 0x37f   : > { %3466 = vmatpush1.bf16.msra.mxu0 %v7809_v48  ;;  %3509 = vmatpush1.bf16.msra.mxu1 %v7812_v50  ;;  %v7890_v48 = vld [vmem:[#allocation9 + $0x4a8] ss:$16 sps:$4 sm:$0xff]   ;;  %v7895_v50 = vld [vmem:[#allocation9 + $0x4c4] ss:$16 sps:$4 sm:$0xff]  }
 0x380   : > { %3467 = vmatprep.subr.bf16.mxu0 %v7817_v51  ;;  %3510 = vmatprep.subr.bf16.mxu1 %v7820_v52  ;;  %v7898_v51 = vld [vmem:[#allocation9 + $0x4cc] ss:$16 sps:$4 sm:$0xff]   ;;  %v7893_v52 = vld [vmem:[#allocation9 + $0x4c0] ss:$16 sps:$4 sm:$0xff]  }
 0x383   : > { %3468 = vmatpush1.bf16.msra.mxu0 %v7815_v53  ;;  %3511 = vmatpush1.bf16.msra.mxu1 %v7818_v16  ;;  %v7896_v53 = vld [vmem:[#allocation9 + $0x4c8] ss:$16 sps:$4 sm:$0xff]   ;;  %v7901_v16 = vld [vmem:[#allocation9 + $0x4e4] ss:$16 sps:$4 sm:$0xff]  }
 0x384   : > { %3469 = vmatprep.subr.bf16.mxu0 %v7823_v0  ;;  %3512 = vmatprep.subr.bf16.mxu1 %v7826_v55  ;;  %v7904_v0 = vld [vmem:[#allocation9 + $0x4ec] ss:$16 sps:$4 sm:$0xff]   ;;  %v7899_v55 = vld [vmem:[#allocation9 + $0x4e0] ss:$16 sps:$4 sm:$0xff]  }
 0x387   : > { %3470 = vmatpush1.bf16.msra.mxu0 %v7821_v56  ;;  %3513 = vmatpush1.bf16.msra.mxu1 %v7824_v17  ;;  %v7902_v56 = vld [vmem:[#allocation9 + $0x4e8] ss:$16 sps:$4 sm:$0xff]   ;;  %v7907_v17 = vld [vmem:[#allocation9 + $0x504] ss:$16 sps:$4 sm:$0xff]  }
 0x388   : > { %3471 = vmatprep.subr.bf16.mxu0 %v7829_v18  ;;  %3514 = vmatprep.subr.bf16.mxu1 %v7832_v57  ;;  %v7910_v18 = vld [vmem:[#allocation9 + $0x50c] ss:$16 sps:$4 sm:$0xff]   ;;  %v7905_v57 = vld [vmem:[#allocation9 + $0x500] ss:$16 sps:$4 sm:$0xff]  }
 0x38b   : > { %3472 = vmatpush1.bf16.msra.mxu0 %v7827_v58  ;;  %3515 = vmatpush1.bf16.msra.mxu1 %v7830_v59  ;;  %v7908_v58 = vld [vmem:[#allocation9 + $0x508] ss:$16 sps:$4 sm:$0xff]   ;;  %v7913_v59 = vld [vmem:[#allocation9 + $0x524] ss:$16 sps:$4 sm:$0xff]  }
 0x38c   : > { %3473 = vmatprep.subr.bf16.mxu0 %v7835_v61  ;;  %3516 = vmatprep.subr.bf16.mxu1 %v7838_v49  ;;  %v7916_v61 = vld [vmem:[#allocation9 + $0x52c] ss:$16 sps:$4 sm:$0xff]   ;;  %v7911_v49 = vld [vmem:[#allocation9 + $0x520] ss:$16 sps:$4 sm:$0xff]  }
 0x38f   : > { %3474 = vmatpush1.bf16.msra.mxu0 %v7833_v62  ;;  %3517 = vmatpush1.bf16.msra.mxu1 %v7836_v63  ;;  %v7914_v62 = vld [vmem:[#allocation9 + $0x528] ss:$16 sps:$4 sm:$0xff]   ;;  %v7919_v63 = vld [vmem:[#allocation9 + $0x544] ss:$16 sps:$4 sm:$0xff]  }
 0x390   : > { %3475 = vmatprep.subr.bf16.mxu0 %v7841_v1  ;;  %3518 = vmatprep.subr.bf16.mxu1 %v7844_v28  ;;  %v7922_v1 = vld [vmem:[#allocation9 + $0x54c] ss:$16 sps:$4 sm:$0xff]   ;;  %v7917_v28 = vld [vmem:[#allocation9 + $0x540] ss:$16 sps:$4 sm:$0xff]  }
 0x393   : > { %3476 = vmatpush1.bf16.msra.mxu0 %v7839_v2  ;;  %3519 = vmatpush1.bf16.msra.mxu1 %v7842_v5  ;;  %v7920_v2 = vld [vmem:[#allocation9 + $0x548] ss:$16 sps:$4 sm:$0xff]   ;;  %v7925_v5 = vld [vmem:[#allocation9 + $0x564] ss:$16 sps:$4 sm:$0xff]  }
 0x394   : > { %3477 = vmatprep.subr.bf16.mxu0 %v7847_v26  ;;  %3520 = vmatprep.subr.bf16.mxu1 %v7850_v3  ;;  %v7928_v26 = vld [vmem:[#allocation9 + $0x56c] ss:$16 sps:$4 sm:$0xff]   ;;  %v7923_v3 = vld [vmem:[#allocation9 + $0x560] ss:$16 sps:$4 sm:$0xff]  }
 0x397   : > { %3478 = vmatpush1.bf16.msra.mxu0 %v7845_v46  ;;  %3521 = vmatpush1.bf16.msra.mxu1 %v7848_v4  ;;  %v7926_v46 = vld [vmem:[#allocation9 + $0x568] ss:$16 sps:$4 sm:$0xff]   ;;  %v7931_v4 = vld [vmem:[#allocation9 + $0x584] ss:$16 sps:$4 sm:$0xff]  }
 0x398   : > { %3479 = vmatprep.subr.bf16.mxu0 %v7853_v6  ;;  %3522 = vmatprep.subr.bf16.mxu1 %v7856_v47  ;;  %v7934_v6 = vld [vmem:[#allocation9 + $0x58c] ss:$16 sps:$4 sm:$0xff]   ;;  %v7929_v47 = vld [vmem:[#allocation9 + $0x580] ss:$16 sps:$4 sm:$0xff]  }
 0x39b   : > { %3480 = vmatpush1.bf16.msra.mxu0 %v7851_v8  ;;  %3523 = vmatpush1.bf16.msra.mxu1 %v7854_v9  ;;  %v7937_v8 = vld [vmem:[#allocation9 + $0x5a4] ss:$16 sps:$4 sm:$0xff]   ;;  %v7940_v9 = vld [vmem:[#allocation9 + $0x5ac] ss:$16 sps:$4 sm:$0xff]  }
 0x39c   : > { %3932 = vmatprep.subr.bf16.mxu0 %v7859_v10  ;;  %3975 = vmatprep.subr.bf16.mxu1 %v7862_v38  ;;  %v7935_v10 = vld [vmem:[#allocation9 + $0x5a0] ss:$16 sps:$4 sm:$0xff]   ;;  %v4029_v38 = vld [vmem:[#allocation2 + $0x18] sm:$0x1f] }
 0x39e   : > { %3482 = vmatmul.mubr.bf16.vlgmr.msra.gmra.mrb[8].mxu0 %v2570_v22  ;;  %3525 = vmatmul.mubr.bf16.vlgmr.msra.gmra.mrb[8].mxu1 %v2570_v22 }
 0x39f   : > { %3933 = vmatpush1.bf16.msra.mxu0 %v7857_v21  ;;  %3964 = vmatprep.mubr.bf16.mxu0 %v3609_v34  ;;  %v4027_v21 = vld [vmem:[#allocation2 + $0x8] sm:$0xf8] }
 0x3a0   : > { %3976 = vmatpush1.bf16.msra.mxu1 %v7860_v23  ;;  %4007 = vmatprep.mubr.bf16.mxu1 %v3609_v34  ;;  %v4031_v22 = vpack.c.bf16 %v4029_v38, %v4027_v21  ;;  %v7941_v23 = vld [vmem:[#allocation9 + $0x5c0] ss:$16 sps:$4 sm:$0xff]   ;;  %v7944_v34 = vld [vmem:[#allocation9 + $0x5c8] ss:$16 sps:$4 sm:$0xff]  }
 0x3a1   : > { %3934 = vmatprep.subr.bf16.mxu0 %v7865_v24  ;;  %3977 = vmatprep.subr.bf16.mxu1 %v7868_v25  ;;  %v7949_v24 = vld [vmem:[#allocation9 + $0x5e4] ss:$16 sps:$4 sm:$0xff]   ;;  %v7952_v25 = vld [vmem:[#allocation9 + $0x5ec] ss:$16 sps:$4 sm:$0xff]   ;;  %v8007_v38 = vld [vmem:[#allocation9 + $0x720] ss:$16 sps:$4 sm:$0xff]  }
 0x3a2   : > { %v8013_v21 = vld [vmem:[#allocation9 + $0x740] ss:$16 sps:$4 sm:$0xff]  }
 0x3a3   : > { %3935 = vmatpush1.bf16.msra.mxu0 %v7863_v27  ;;  %v3537_v27 = vld [vmem:[#allocation2 + $0x10] sm:$0xf] }
 0x3a4   : > { %3978 = vmatpush1.bf16.msra.mxu1 %v7866_v29  ;;  %3936 = vmatprep.subr.bf16.mxu0 %v7871_v30  ;;  %v4106_v29 = vshrl.u32 %v4031_v22, 16  ;;  %v4109_v30 = vshll.u32 %v4031_v22, 16  ;;  %v8016_v22 = vld [vmem:[#allocation9 + $0x748] ss:$16 sps:$4 sm:$0xff]  }
 0x3a5   : > { %3979 = vmatprep.subr.bf16.mxu1 %v7874_v31  ;;  %v7947_v31 = vld [vmem:[#allocation9 + $0x5e0] ss:$16 sps:$4 sm:$0xff]  }
 0x3a7   : > { %3937 = vmatpush1.bf16.msra.mxu0 %v7869_v54  ;;  %v3535_v54 = vld [vmem:[#allocation2] sm:$0xfc] }
 0x3a8   : > { %3980 = vmatpush1.bf16.msra.mxu1 %v7872_v32  ;;  %3938 = vmatprep.subr.bf16.mxu0 %v7877_v33  ;;  %v7950_v32 = vld [vmem:[#allocation9 + $0x5e8] ss:$16 sps:$4 sm:$0xff]   ;;  %v3539_v33 = vpack.c.bf16 %v3537_v27, %v3535_v54  ;;  %v8027_v27 = vld [vmem:[#allocation9 + $0x784] ss:$16 sps:$4 sm:$0xff]  }
 0x3a9   : > { %3981 = vmatprep.subr.bf16.mxu1 %v7880_v35  ;;  %v7955_v35 = vld [vmem:[#allocation9 + $0x604] ss:$16 sps:$4 sm:$0xff]  }
 0x3aa   : > { %v8033_v54 = vld [vmem:[#allocation9 + $0x7a4] ss:$16 sps:$4 sm:$0xff]  }
 0x3ab   : > { %3939 = vmatpush1.bf16.msra.mxu0 %v7875_v36  ;;  %v7958_v36 = vld [vmem:[#allocation9 + $0x60c] ss:$16 sps:$4 sm:$0xff]  }
 0x3ac   : > { %3982 = vmatpush1.bf16.msra.mxu1 %v7878_v37  ;;  %3940 = vmatprep.subr.bf16.mxu0 %v7883_v39  ;;  %v4108_v37 = vrot.slane %v4106_v29, 1  ;;  %v4111_v39 = vrot.slane %v4109_v30, 2  ;;  %v8030_v29 = vld [vmem:[#allocation9 + $0x78c] ss:$16 sps:$4 sm:$0xff]   ;;  %v8025_v30 = vld [vmem:[#allocation9 + $0x780] ss:$16 sps:$4 sm:$0xff]  }
 0x3ad   : > { %3983 = vmatprep.subr.bf16.mxu1 %v7886_v40  ;;  %v7953_v40 = vld [vmem:[#allocation9 + $0x600] ss:$16 sps:$4 sm:$0xff]  }
 0x3af   : > { %3941 = vmatpush1.bf16.msra.mxu0 %v7881_v41  ;;  %v3608_v41 = vrot.slane %v3539_v33, 1  ;;  %v4028_v33 = vld [vmem:[#allocation2 + $0x10] sm:$0x1f] }
 0x3b0   : > { %3984 = vmatpush1.bf16.msra.mxu1 %v7884_v42  ;;  %3942 = vmatprep.subr.bf16.mxu0 %v7889_v43  ;;  %v7956_v42 = vld [vmem:[#allocation9 + $0x608] ss:$16 sps:$4 sm:$0xff]   ;;  %v7961_v43 = vld [vmem:[#allocation9 + $0x624] ss:$16 sps:$4 sm:$0xff]  }
 0x3b1   : > { %3985 = vmatprep.subr.bf16.mxu1 %v7892_v44  ;;  %v4112_v44 = vor.u32 %v4111_v39, %v4108_v37  ;;  %v8034_v37 = vld [vmem:[#allocation9 + $0x7a8] ss:$16 sps:$4 sm:$0xff]   ;;  %v8039_v39 = vld [vmem:[#allocation9 + $0x7c4] ss:$16 sps:$4 sm:$0xff]  }
 0x3b3   : > { %3943 = vmatpush1.bf16.msra.mxu0 %v7887_v45  ;;  %v7964_v45 = vld [vmem:[#allocation9 + $0x62c] ss:$16 sps:$4 sm:$0xff]  }
 0x3b4   : > { %3986 = vmatpush1.bf16.msra.mxu1 %v7890_v48  ;;  %3944 = vmatprep.subr.bf16.mxu0 %v7895_v50  ;;  %v7959_v48 = vld [vmem:[#allocation9 + $0x620] ss:$16 sps:$4 sm:$0xff]   ;;  %v7962_v50 = vld [vmem:[#allocation9 + $0x628] ss:$16 sps:$4 sm:$0xff]  }
 0x3b5   : > { %3987 = vmatprep.subr.bf16.mxu1 %v7898_v51  ;;  %v7967_v51 = vld [vmem:[#allocation9 + $0x644] ss:$16 sps:$4 sm:$0xff]  }
 0x3b7   : > { %3945 = vmatpush1.bf16.msra.mxu0 %v7893_v52  ;;  %v7970_v52 = vld [vmem:[#allocation9 + $0x64c] ss:$16 sps:$4 sm:$0xff]  }
 0x3b8   : > { %3988 = vmatpush1.bf16.msra.mxu1 %v7896_v53  ;;  %3946 = vmatprep.subr.bf16.mxu0 %v7901_v16  ;;  %v7965_v53 = vld [vmem:[#allocation9 + $0x640] ss:$16 sps:$4 sm:$0xff]   ;;  %v7968_v16 = vld [vmem:[#allocation9 + $0x648] ss:$16 sps:$4 sm:$0xff]  }
 0x3b9   : > { %3989 = vmatprep.subr.bf16.mxu1 %v7904_v0  ;;  %v7973_v0 = vld [vmem:[#allocation9 + $0x664] ss:$16 sps:$4 sm:$0xff]  }
 0x3bb   : > { %3947 = vmatpush1.bf16.msra.mxu0 %v7899_v55  ;;  %v7976_v55 = vld [vmem:[#allocation9 + $0x66c] ss:$16 sps:$4 sm:$0xff]  }
 0x3bc   : > { %3990 = vmatpush1.bf16.msra.mxu1 %v7902_v56  ;;  %3948 = vmatprep.subr.bf16.mxu0 %v7907_v17  ;;  %v7971_v56 = vld [vmem:[#allocation9 + $0x660] ss:$16 sps:$4 sm:$0xff]   ;;  %v7974_v17 = vld [vmem:[#allocation9 + $0x668] ss:$16 sps:$4 sm:$0xff]  }
 0x3bd   : > { %3991 = vmatprep.subr.bf16.mxu1 %v7910_v18  ;;  %v7979_v18 = vld [vmem:[#allocation9 + $0x684] ss:$16 sps:$4 sm:$0xff]  }
 0x3bf   : > { %3949 = vmatpush1.bf16.msra.mxu0 %v7905_v57  ;;  %v7982_v57 = vld [vmem:[#allocation9 + $0x68c] ss:$16 sps:$4 sm:$0xff]  }
 0x3c0   : > { %3992 = vmatpush1.bf16.msra.mxu1 %v7908_v58  ;;  %3950 = vmatprep.subr.bf16.mxu0 %v7913_v59  ;;  %v7977_v58 = vld [vmem:[#allocation9 + $0x680] ss:$16 sps:$4 sm:$0xff]   ;;  %v7980_v59 = vld [vmem:[#allocation9 + $0x688] ss:$16 sps:$4 sm:$0xff]  }
 0x3c1   : > { %3993 = vmatprep.subr.bf16.mxu1 %v7916_v61  ;;  %v7985_v61 = vld [vmem:[#allocation9 + $0x6a4] ss:$16 sps:$4 sm:$0xff]  }
 0x3c3   : > { %3951 = vmatpush1.bf16.msra.mxu0 %v7911_v49  ;;  %v7988_v49 = vld [vmem:[#allocation9 + $0x6ac] ss:$16 sps:$4 sm:$0xff]  }
 0x3c4   : > { %3994 = vmatpush1.bf16.msra.mxu1 %v7914_v62  ;;  %3952 = vmatprep.subr.bf16.mxu0 %v7919_v63  ;;  %v7983_v62 = vld [vmem:[#allocation9 + $0x6a0] ss:$16 sps:$4 sm:$0xff]   ;;  %v7986_v63 = vld [vmem:[#allocation9 + $0x6a8] ss:$16 sps:$4 sm:$0xff]  }
 0x3c5   : > { %3995 = vmatprep.subr.bf16.mxu1 %v7922_v1  ;;  %v7991_v1 = vld [vmem:[#allocation9 + $0x6c4] ss:$16 sps:$4 sm:$0xff]  }
 0x3c7   : > { %3953 = vmatpush1.bf16.msra.mxu0 %v7917_v28  ;;  %v7994_v28 = vld [vmem:[#allocation9 + $0x6cc] ss:$16 sps:$4 sm:$0xff]  }
 0x3c8   : > { %3996 = vmatpush1.bf16.msra.mxu1 %v7920_v2  ;;  %3954 = vmatprep.subr.bf16.mxu0 %v7925_v5  ;;  %v7989_v2 = vld [vmem:[#allocation9 + $0x6c0] ss:$16 sps:$4 sm:$0xff]   ;;  %v7992_v5 = vld [vmem:[#allocation9 + $0x6c8] ss:$16 sps:$4 sm:$0xff]  }
 0x3c9   : > { %3997 = vmatprep.subr.bf16.mxu1 %v7928_v26  ;;  %v7997_v26 = vld [vmem:[#allocation9 + $0x6e4] ss:$16 sps:$4 sm:$0xff]  }
 0x3cb   : > { %3955 = vmatpush1.bf16.msra.mxu0 %v7923_v3  ;;  %v8000_v3 = vld [vmem:[#allocation9 + $0x6ec] ss:$16 sps:$4 sm:$0xff]  }
 0x3cc   : > { %3998 = vmatpush1.bf16.msra.mxu1 %v7926_v46  ;;  %3956 = vmatprep.subr.bf16.mxu0 %v7931_v4  ;;  %v7995_v46 = vld [vmem:[#allocation9 + $0x6e0] ss:$16 sps:$4 sm:$0xff]   ;;  %v7998_v4 = vld [vmem:[#allocation9 + $0x6e8] ss:$16 sps:$4 sm:$0xff]  }
 0x3cd   : > { %3999 = vmatprep.subr.bf16.mxu1 %v7934_v6  ;;  %v8003_v6 = vld [vmem:[#allocation9 + $0x704] ss:$16 sps:$4 sm:$0xff]  }
 0x3cf   : > { %3957 = vmatpush1.bf16.msra.mxu0 %v7929_v47  ;;  %v8006_v47 = vld [vmem:[#allocation9 + $0x70c] ss:$16 sps:$4 sm:$0xff]  }
 0x3d0   : > { %4000 = vmatpush1.bf16.msra.mxu1 %v7932_v7  ;;  %3958 = vmatprep.subr.bf16.mxu0 %v7937_v8  ;;  %v8001_v7 = vld [vmem:[#allocation9 + $0x700] ss:$16 sps:$4 sm:$0xff]   ;;  %v8004_v8 = vld [vmem:[#allocation9 + $0x708] ss:$16 sps:$4 sm:$0xff]  }
 0x3d1   : > { %4001 = vmatprep.subr.bf16.mxu1 %v7940_v9  ;;  %v8009_v9 = vld [vmem:[#allocation9 + $0x724] ss:$16 sps:$4 sm:$0xff]  }
 0x3d3   : > { %3959 = vmatpush1.bf16.msra.mxu0 %v7935_v10  ;;  %v8012_v10 = vld [vmem:[#allocation9 + $0x72c] ss:$16 sps:$4 sm:$0xff]  }
 0x3d4   : > { %4002 = vmatpush1.bf16.msra.mxu1 %v7938_v13  ;;  %3960 = vmatprep.subr.bf16.mxu0 %v7943_v19  ;;  %v8010_v13 = vld [vmem:[#allocation9 + $0x728] ss:$16 sps:$4 sm:$0xff]   ;;  %v8015_v19 = vld [vmem:[#allocation9 + $0x744] ss:$16 sps:$4 sm:$0xff]  }
 0x3d5   : > { %4003 = vmatprep.subr.bf16.mxu1 %v7946_v20  ;;  %v8018_v20 = vld [vmem:[#allocation9 + $0x74c] ss:$16 sps:$4 sm:$0xff]  }
 0x3d7   : > { %3961 = vmatpush1.bf16.msra.mxu0 %v7941_v23  ;;  %v8021_v23 = vld [vmem:[#allocation9 + $0x764] ss:$16 sps:$4 sm:$0xff]  }
 0x3d8   : > { %4004 = vmatpush1.bf16.msra.mxu1 %v7944_v34  ;;  %3962 = vmatprep.subr.bf16.mxu0 %v7949_v24  ;;  %v8024_v34 = vld [vmem:[#allocation9 + $0x76c] ss:$16 sps:$4 sm:$0xff]   ;;  %v8019_v24 = vld [vmem:[#allocation9 + $0x760] ss:$16 sps:$4 sm:$0xff]  }
 0x3d9   : > { %4005 = vmatprep.subr.bf16.mxu1 %v7952_v25  ;;  %v8022_v25 = vld [vmem:[#allocation9 + $0x768] ss:$16 sps:$4 sm:$0xff]  }
 0x3db   : > { %3963 = vmatpush1.bf16.msra.mxu0 %v7947_v31  ;;  %v8028_v31 = vld [vmem:[#allocation9 + $0x788] ss:$16 sps:$4 sm:$0xff]  }
 0x3dc   : > { %4006 = vmatpush1.bf16.msra.mxu1 %v7950_v32  ;;  %4435 = vmatprep.subr.bf16.mxu0 %v7955_v35  ;;  %v8036_v32 = vld [vmem:[#allocation9 + $0x7ac] ss:$16 sps:$4 sm:$0xff]   ;;  %v8031_v35 = vld [vmem:[#allocation9 + $0x7a0] ss:$16 sps:$4 sm:$0xff]  }
 0x3dd   : > { %4478 = vmatprep.subr.bf16.mxu1 %v7958_v36  ;;  %v4026_v36 = vld [vmem:[#allocation2] sm:$0xf8] }
 0x3de   : > { %3965 = vmatmul.mubr.bf16.vlgmr.msra.gmra.mrb[8].mxu0 %v3608_v41 }
 0x3df   : > { %4008 = vmatmul.mubr.bf16.vlgmr.msra.gmra.mrb[8].mxu1 %v3608_v41  ;;  %4436 = vmatpush1.bf16.msra.mxu0 %v7953_v40  ;;  %v4030_v40 = vpack.c.bf16 %v4028_v33, %v4026_v36  ;;  %v8042_v41 = vld [vmem:[#allocation9 + $0x7cc] ss:$16 sps:$4 sm:$0xff]   ;;  %v8106_v36 = vld [vmem:[#allocation9 + $0x928] ss:$16 sps:$4 sm:$0xff]  }
 0x3e0   : > { %4467 = vmatprep.mubr.bf16.mxu0 %v4112_v44  ;;  %4479 = vmatpush1.bf16.msra.mxu1 %v7956_v42  ;;  %v8037_v42 = vld [vmem:[#allocation9 + $0x7c0] ss:$16 sps:$4 sm:$0xff]   ;;  %v8108_v33 = vld [vmem:[#allocation9 + $0x92c] ss:$16 sps:$4 sm:$0xff]  }
 0x3e1   : > { %4510 = vmatprep.mubr.bf16.mxu1 %v4112_v44  ;;  %4437 = vmatprep.subr.bf16.mxu0 %v7961_v43  ;;  %v8040_v43 = vld [vmem:[#allocation9 + $0x7c8] ss:$16 sps:$4 sm:$0xff]   ;;  %v8045_v44 = vld [vmem:[#allocation9 + $0x7e4] ss:$16 sps:$4 sm:$0xff]  }
 0x3e2   : > { %4480 = vmatprep.subr.bf16.mxu1 %v7964_v45  ;;  %v4098_v45 = vshrl.u32 %v4030_v40, 16 }
 0x3e3   : > { %4438 = vmatpush1.bf16.msra.mxu0 %v7959_v48  ;;  %v4101_v48 = vshll.u32 %v4030_v40, 16  ;;  %v8109_v40 = vld [vmem:[#allocation9 + $0x940] ss:$16 sps:$4 sm:$0xff]  }
 0x3e4   : > { %4481 = vmatpush1.bf16.msra.mxu1 %v7962_v50  ;;  %4439 = vmatprep.subr.bf16.mxu0 %v7967_v51  ;;  %v8048_v50 = vld [vmem:[#allocation9 + $0x7ec] ss:$16 sps:$4 sm:$0xff]   ;;  %v8043_v51 = vld [vmem:[#allocation9 + $0x7e0] ss:$16 sps:$4 sm:$0xff]  }
 0x3e5   : > { %4482 = vmatprep.subr.bf16.mxu1 %v7970_v52  ;;  %v4532_v52 = vld [vmem:[#allocation2 + $0x18] sm:$0x3f] }
 0x3e7   : > { %4440 = vmatpush1.bf16.msra.mxu0 %v7965_v53  ;;  %v8046_v53 = vld [vmem:[#allocation9 + $0x7e8] ss:$16 sps:$4 sm:$0xff]  }
 0x3e8   : > { %4483 = vmatpush1.bf16.msra.mxu1 %v7968_v16  ;;  %4441 = vmatprep.subr.bf16.mxu0 %v7973_v0  ;;  %v4100_v16 = vrot.slane %v4098_v45, 1  ;;  %v4103_v0 = vrot.slane %v4101_v48, 2  ;;  %v8118_v45 = vld [vmem:[#allocation9 + $0x968] ss:$16 sps:$4 sm:$0xff]   ;;  %v8123_v48 = vld [vmem:[#allocation9 + $0x984] ss:$16 sps:$4 sm:$0xff]  }
 0x3e9   : > { %4484 = vmatprep.subr.bf16.mxu1 %v7976_v55  ;;  %v8051_v55 = vld [vmem:[#allocation9 + $0x804] ss:$16 sps:$4 sm:$0xff]  }
 0x3eb   : > { %4442 = vmatpush1.bf16.msra.mxu0 %v7971_v56  ;;  %v8054_v56 = vld [vmem:[#allocation9 + $0x80c] ss:$16 sps:$4 sm:$0xff]  }
 0x3ec   : > { %4485 = vmatpush1.bf16.msra.mxu1 %v7974_v17  ;;  %4443 = vmatprep.subr.bf16.mxu0 %v7979_v18  ;;  %v4530_v17 = vld [vmem:[#allocation2 + $0x8] sm:$0xf0] }
 0x3ed   : > { %4486 = vmatprep.subr.bf16.mxu1 %v7982_v57  ;;  %v4534_v18 = vpack.c.bf16 %v4532_v52, %v4530_v17  ;;  %v8049_v57 = vld [vmem:[#allocation9 + $0x800] ss:$16 sps:$4 sm:$0xff]   ;;  %v8124_v52 = vld [vmem:[#allocation9 + $0x988] ss:$16 sps:$4 sm:$0xff]   ;;  %v8138_v17 = vld [vmem:[#allocation9 + $0x9cc] ss:$16 sps:$4 sm:$0xff]  }
 0x3ef   : > { %4444 = vmatpush1.bf16.msra.mxu0 %v7977_v58  ;;  %v4104_v58 = vor.u32 %v4103_v0, %v4100_v16  ;;  %v8132_v16 = vld [vmem:[#allocation9 + $0x9ac] ss:$16 sps:$4 sm:$0xff]   ;;  %v8127_v0 = vld [vmem:[#allocation9 + $0x9a0] ss:$16 sps:$4 sm:$0xff]  }
 0x3f0   : > { %4487 = vmatpush1.bf16.msra.mxu1 %v7980_v59  ;;  %4445 = vmatprep.subr.bf16.mxu0 %v7985_v61  ;;  %v8052_v59 = vld [vmem:[#allocation9 + $0x808] ss:$16 sps:$4 sm:$0xff]   ;;  %v8057_v61 = vld [vmem:[#allocation9 + $0x824] ss:$16 sps:$4 sm:$0xff]  }
 0x3f1   : > { %4488 = vmatprep.subr.bf16.mxu1 %v7988_v49  ;;  %v4603_v49 = vrot.slane %v4534_v18, 2  ;;  %v8133_v18 = vld [vmem:[#allocation9 + $0x9c0] ss:$16 sps:$4 sm:$0xff]  }
 0x3f3   : > { %4446 = vmatpush1.bf16.msra.mxu0 %v7983_v62  ;;  %v8060_v62 = vld [vmem:[#allocation9 + $0x82c] ss:$16 sps:$4 sm:$0xff]  }
 0x3f4   : > { %4489 = vmatpush1.bf16.msra.mxu1 %v7986_v63  ;;  %4447 = vmatprep.subr.bf16.mxu0 %v7991_v1  ;;  %v8055_v63 = vld [vmem:[#allocation9 + $0x820] ss:$16 sps:$4 sm:$0xff]   ;;  %v8058_v1 = vld [vmem:[#allocation9 + $0x828] ss:$16 sps:$4 sm:$0xff]  }
 0x3f5   : > { %4490 = vmatprep.subr.bf16.mxu1 %v7994_v28  ;;  %v8063_v28 = vld [vmem:[#allocation9 + $0x844] ss:$16 sps:$4 sm:$0xff]  }
 0x3f7   : > { %4448 = vmatpush1.bf16.msra.mxu0 %v7989_v2  ;;  %v8066_v2 = vld [vmem:[#allocation9 + $0x84c] ss:$16 sps:$4 sm:$0xff]  }
 0x3f8   : > { %4491 = vmatpush1.bf16.msra.mxu1 %v7992_v5  ;;  %4449 = vmatprep.subr.bf16.mxu0 %v7997_v26  ;;  %v8061_v5 = vld [vmem:[#allocation9 + $0x840] ss:$16 sps:$4 sm:$0xff]   ;;  %v8064_v26 = vld [vmem:[#allocation9 + $0x848] ss:$16 sps:$4 sm:$0xff]  }
 0x3f9   : > { %4492 = vmatprep.subr.bf16.mxu1 %v8000_v3  ;;  %v8069_v3 = vld [vmem:[#allocation9 + $0x864] ss:$16 sps:$4 sm:$0xff]  }
 0x3fb   : > { %4450 = vmatpush1.bf16.msra.mxu0 %v7995_v46  ;;  %v8072_v46 = vld [vmem:[#allocation9 + $0x86c] ss:$16 sps:$4 sm:$0xff]  }
 0x3fc   : > { %4493 = vmatpush1.bf16.msra.mxu1 %v7998_v4  ;;  %4451 = vmatprep.subr.bf16.mxu0 %v8003_v6  ;;  %v8067_v4 = vld [vmem:[#allocation9 + $0x860] ss:$16 sps:$4 sm:$0xff]   ;;  %v8070_v6 = vld [vmem:[#allocation9 + $0x868] ss:$16 sps:$4 sm:$0xff]  }
 0x3fd   : > { %4494 = vmatprep.subr.bf16.mxu1 %v8006_v47  ;;  %v8075_v47 = vld [vmem:[#allocation9 + $0x884] ss:$16 sps:$4 sm:$0xff]  }
 0x3ff   : > { %4452 = vmatpush1.bf16.msra.mxu0 %v8001_v7  ;;  %v8078_v7 = vld [vmem:[#allocation9 + $0x88c] ss:$16 sps:$4 sm:$0xff]  }
 0x400   : > { %4495 = vmatpush1.bf16.msra.mxu1 %v8004_v8  ;;  %4453 = vmatprep.subr.bf16.mxu0 %v8009_v9  ;;  %v8073_v8 = vld [vmem:[#allocation9 + $0x880] ss:$16 sps:$4 sm:$0xff]   ;;  %v8076_v9 = vld [vmem:[#allocation9 + $0x888] ss:$16 sps:$4 sm:$0xff]  }
 0x401   : > { %4496 = vmatprep.subr.bf16.mxu1 %v8012_v10  ;;  %v8081_v10 = vld [vmem:[#allocation9 + $0x8a4] ss:$16 sps:$4 sm:$0xff]  }
 0x403   : > { %4454 = vmatpush1.bf16.msra.mxu0 %v8007_v38  ;;  %v8084_v38 = vld [vmem:[#allocation9 + $0x8ac] ss:$16 sps:$4 sm:$0xff]  }
 0x404   : > { %4497 = vmatpush1.bf16.msra.mxu1 %v8010_v13  ;;  %4455 = vmatprep.subr.bf16.mxu0 %v8015_v19  ;;  %v8079_v13 = vld [vmem:[#allocation9 + $0x8a0] ss:$16 sps:$4 sm:$0xff]   ;;  %v8082_v19 = vld [vmem:[#allocation9 + $0x8a8] ss:$16 sps:$4 sm:$0xff]  }
 0x405   : > { %4498 = vmatprep.subr.bf16.mxu1 %v8018_v20  ;;  %v8087_v20 = vld [vmem:[#allocation9 + $0x8c4] ss:$16 sps:$4 sm:$0xff]  }
 0x407   : > { %4456 = vmatpush1.bf16.msra.mxu0 %v8013_v21  ;;  %v8090_v21 = vld [vmem:[#allocation9 + $0x8cc] ss:$16 sps:$4 sm:$0xff]  }
 0x408   : > { %4499 = vmatpush1.bf16.msra.mxu1 %v8016_v22  ;;  %4457 = vmatprep.subr.bf16.mxu0 %v8021_v23  ;;  %v8085_v22 = vld [vmem:[#allocation9 + $0x8c0] ss:$16 sps:$4 sm:$0xff]   ;;  %v8088_v23 = vld [vmem:[#allocation9 + $0x8c8] ss:$16 sps:$4 sm:$0xff]  }
 0x409   : > { %4500 = vmatprep.subr.bf16.mxu1 %v8024_v34  ;;  %v8093_v34 = vld [vmem:[#allocation9 + $0x8e4] ss:$16 sps:$4 sm:$0xff]  }
 0x40b   : > { %4458 = vmatpush1.bf16.msra.mxu0 %v8019_v24  ;;  %v8096_v24 = vld [vmem:[#allocation9 + $0x8ec] ss:$16 sps:$4 sm:$0xff]  }
 0x40c   : > { %4501 = vmatpush1.bf16.msra.mxu1 %v8022_v25  ;;  %4459 = vmatprep.subr.bf16.mxu0 %v8027_v27  ;;  %v8091_v25 = vld [vmem:[#allocation9 + $0x8e0] ss:$16 sps:$4 sm:$0xff]   ;;  %v8094_v27 = vld [vmem:[#allocation9 + $0x8e8] ss:$16 sps:$4 sm:$0xff]  }
 0x40d   : > { %4502 = vmatprep.subr.bf16.mxu1 %v8030_v29  ;;  %v8099_v29 = vld [vmem:[#allocation9 + $0x904] ss:$16 sps:$4 sm:$0xff]  }
 0x40f   : > { %4460 = vmatpush1.bf16.msra.mxu0 %v8025_v30  ;;  %v8102_v30 = vld [vmem:[#allocation9 + $0x90c] ss:$16 sps:$4 sm:$0xff]  }
 0x410   : > { %4503 = vmatpush1.bf16.msra.mxu1 %v8028_v31  ;;  %4461 = vmatprep.subr.bf16.mxu0 %v8033_v54  ;;  %v8097_v31 = vld [vmem:[#allocation9 + $0x900] ss:$16 sps:$4 sm:$0xff]   ;;  %v8100_v54 = vld [vmem:[#allocation9 + $0x908] ss:$16 sps:$4 sm:$0xff]  }
 0x411   : > { %4504 = vmatprep.subr.bf16.mxu1 %v8036_v32  ;;  %v8105_v32 = vld [vmem:[#allocation9 + $0x924] ss:$16 sps:$4 sm:$0xff]  }
 0x413   : > { %4462 = vmatpush1.bf16.msra.mxu0 %v8031_v35  ;;  %v8103_v35 = vld [vmem:[#allocation9 + $0x920] ss:$16 sps:$4 sm:$0xff]  }
 0x414   : > { %4505 = vmatpush1.bf16.msra.mxu1 %v8034_v37  ;;  %4463 = vmatprep.subr.bf16.mxu0 %v8039_v39  ;;  %v8111_v37 = vld [vmem:[#allocation9 + $0x944] ss:$16 sps:$4 sm:$0xff]   ;;  %v8114_v39 = vld [vmem:[#allocation9 + $0x94c] ss:$16 sps:$4 sm:$0xff]  }
 0x415   : > { %4506 = vmatprep.subr.bf16.mxu1 %v8042_v41  ;;  %v8112_v41 = vld [vmem:[#allocation9 + $0x948] ss:$16 sps:$4 sm:$0xff]  }
 0x417   : > { %4464 = vmatpush1.bf16.msra.mxu0 %v8037_v42  ;;  %v8117_v42 = vld [vmem:[#allocation9 + $0x964] ss:$16 sps:$4 sm:$0xff]  }
 0x418   : > { %4507 = vmatpush1.bf16.msra.mxu1 %v8040_v43  ;;  %4465 = vmatprep.subr.bf16.mxu0 %v8045_v44  ;;  %v8120_v43 = vld [vmem:[#allocation9 + $0x96c] ss:$16 sps:$4 sm:$0xff]   ;;  %v8115_v44 = vld [vmem:[#allocation9 + $0x960] ss:$16 sps:$4 sm:$0xff]  }
 0x419   : > { %4508 = vmatprep.subr.bf16.mxu1 %v8048_v50  ;;  %v8126_v50 = vld [vmem:[#allocation9 + $0x98c] ss:$16 sps:$4 sm:$0xff]  }
 0x41b   : > { %4466 = vmatpush1.bf16.msra.mxu0 %v8043_v51  ;;  %v8121_v51 = vld [vmem:[#allocation9 + $0x980] ss:$16 sps:$4 sm:$0xff]  }
 0x41c   : > { %4509 = vmatpush1.bf16.msra.mxu1 %v8046_v53  ;;  %4926 = vmatprep.subr.bf16.mxu0 %v8051_v55  ;;  %v8129_v53 = vld [vmem:[#allocation9 + $0x9a4] ss:$16 sps:$4 sm:$0xff]   ;;  %v8130_v55 = vld [vmem:[#allocation9 + $0x9a8] ss:$16 sps:$4 sm:$0xff]  }
 0x41d   : > { %4969 = vmatprep.subr.bf16.mxu1 %v8054_v56  ;;  %v8135_v56 = vld [vmem:[#allocation9 + $0x9c4] ss:$16 sps:$4 sm:$0xff]  }
 0x41e   : > { %4468 = vmatmul.mubr.bf16.vlgmr.msra.gmra.mrb[8].mxu0 %v4104_v58 }
 0x41f   : > { %4511 = vmatmul.mubr.bf16.vlgmr.msra.gmra.mrb[8].mxu1 %v4104_v58  ;;  %4927 = vmatpush1.bf16.msra.mxu0 %v8049_v57  ;;  %v8136_v57 = vld [vmem:[#allocation9 + $0x9c8] ss:$16 sps:$4 sm:$0xff]   ;;  %v8141_v58 = vld [vmem:[#allocation9 + $0x9e4] ss:$16 sps:$4 sm:$0xff]  }
 0x420   : > { %4958 = vmatprep.mubr.bf16.mxu0 %v4603_v49  ;;  %4970 = vmatpush1.bf16.msra.mxu1 %v8052_v59  ;;  %v8144_v59 = vld [vmem:[#allocation9 + $0x9ec] ss:$16 sps:$4 sm:$0xff]  }
 0x421   : > { %5001 = vmatprep.mubr.bf16.mxu1 %v4603_v49  ;;  %4928 = vmatprep.subr.bf16.mxu0 %v8057_v61  ;;  %v4531_v61 = vld [vmem:[#allocation2 + $0x10] sm:$0x3f] }
 0x422   : > { %4971 = vmatprep.subr.bf16.mxu1 %v8060_v62  ;;  %v8139_v49 = vld [vmem:[#allocation9 + $0x9e0] ss:$16 sps:$4 sm:$0xff]  }
 0x423   : > { %4929 = vmatpush1.bf16.msra.mxu0 %v8055_v63  ;;  %v4529_v62 = vld [vmem:[#allocation2] sm:$0xf0]  ;;  %v8142_v63 = vld [vmem:[#allocation9 + $0x9e8] ss:$16 sps:$4 sm:$0xff]  }
 0x424   : > { %4972 = vmatpush1.bf16.msra.mxu1 %v8058_v1  ;;  %4930 = vmatprep.subr.bf16.mxu0 %v8063_v28  ;;  %v4533_v1 = vpack.c.bf16 %v4531_v61, %v4529_v62  ;;  %v8145_v28 = vld [vmem:[#allocation12 + $0xc0] sm:$0xff]  }
 0x425   : > { %4973 = vmatprep.subr.bf16.mxu1 %v8066_v2  ;;  %v8146_v2 = vld [vmem:[#allocation12 + $0x40] sm:$0xff]  }
 0x427   : > { %4931 = vmatpush1.bf16.msra.mxu0 %v8061_v5  ;;  %v8147_v5 = vld [vmem:[#allocation12 + $0x80] sm:$0xff]  }
 0x428   : > { %4974 = vmatpush1.bf16.msra.mxu1 %v8064_v26  ;;  %4932 = vmatprep.subr.bf16.mxu0 %v8069_v3  ;;  %v4602_v26 = vrot.slane %v4533_v1, 2  ;;  %v8148_v3 = vld [vmem:[#allocation12] sm:$0xff]  }
 0x429   : > { %4975 = vmatprep.subr.bf16.mxu1 %v8072_v46  ;;  %v8149_v46 = vld [vmem:[#allocation12 + $0xc8] sm:$0xff]  }
 0x42b   : > { %4933 = vmatpush1.bf16.msra.mxu0 %v8067_v4  ;;  %v8150_v4 = vld [vmem:[#allocation12 + $0x48] sm:$0xff]  }
 0x42c   : > { %4976 = vmatpush1.bf16.msra.mxu1 %v8070_v6  ;;  %4934 = vmatprep.subr.bf16.mxu0 %v8075_v47  ;;  %v8151_v6 = vld [vmem:[#allocation12 + $0x88] sm:$0xff]  }
 0x42d   : > { %4977 = vmatprep.subr.bf16.mxu1 %v8078_v7  ;;  %v8152_v47 = vld [vmem:[#allocation12 + $0x8] sm:$0xff]   ;;  %v8153_v7 = vld [vmem:[#allocation12 + $0xd0] sm:$0xff]  }
 0x42f   : > { %4935 = vmatpush1.bf16.msra.mxu0 %v8073_v8  ;;  %v8154_v8 = vld [vmem:[#allocation12 + $0x50] sm:$0xff]  }
 0x430   : > { %4978 = vmatpush1.bf16.msra.mxu1 %v8076_v9  ;;  %4936 = vmatprep.subr.bf16.mxu0 %v8081_v10  ;;  %v8155_v9 = vld [vmem:[#allocation12 + $0x90] sm:$0xff]  }
 0x431   : > { %4979 = vmatprep.subr.bf16.mxu1 %v8084_v38  ;;  %v8156_v10 = vld [vmem:[#allocation12 + $0x10] sm:$0xff]   ;;  %v8157_v38 = vld [vmem:[#allocation12 + $0xd8] sm:$0xff]  }
 0x433   : > { %4937 = vmatpush1.bf16.msra.mxu0 %v8079_v13  ;;  %v8158_v13 = vld [vmem:[#allocation12 + $0x58] sm:$0xff]  }
 0x434   : > { %4980 = vmatpush1.bf16.msra.mxu1 %v8082_v19  ;;  %4938 = vmatprep.subr.bf16.mxu0 %v8087_v20  ;;  %v8159_v19 = vld [vmem:[#allocation12 + $0x98] sm:$0xff]  }
 0x435   : > { %4981 = vmatprep.subr.bf16.mxu1 %v8090_v21  ;;  %v8160_v20 = vld [vmem:[#allocation12 + $0x18] sm:$0xff]   ;;  %v8161_v21 = vld [vmem:[#allocation12 + $0xe0] sm:$0xff]  }
 0x437   : > { %4939 = vmatpush1.bf16.msra.mxu0 %v8085_v22  ;;  %v8162_v22 = vld [vmem:[#allocation12 + $0x60] sm:$0xff]  }
 0x438   : > { %4982 = vmatpush1.bf16.msra.mxu1 %v8088_v23  ;;  %4940 = vmatprep.subr.bf16.mxu0 %v8093_v34  ;;  %v8163_v23 = vld [vmem:[#allocation12 + $0xa0] sm:$0xff]  }
 0x439   : > { %4983 = vmatprep.subr.bf16.mxu1 %v8096_v24  ;;  %v8164_v34 = vld [vmem:[#allocation12 + $0x20] sm:$0xff]   ;;  %v8165_v24 = vld [vmem:[#allocation12 + $0xe8] sm:$0xff]  }
 0x43b   : > { %4941 = vmatpush1.bf16.msra.mxu0 %v8091_v25  ;;  %v8166_v25 = vld [vmem:[#allocation12 + $0x68] sm:$0xff]  }
 0x43c   : > { %4984 = vmatpush1.bf16.msra.mxu1 %v8094_v27  ;;  %4942 = vmatprep.subr.bf16.mxu0 %v8099_v29  ;;  %v8167_v27 = vld [vmem:[#allocation12 + $0xa8] sm:$0xff]  }
 0x43d   : > { %4985 = vmatprep.subr.bf16.mxu1 %v8102_v30  ;;  %v8168_v29 = vld [vmem:[#allocation12 + $0x28] sm:$0xff]   ;;  %v8169_v30 = vld [vmem:[#allocation12 + $0xf0] sm:$0xff]  }
 0x43f   : > { %4943 = vmatpush1.bf16.msra.mxu0 %v8097_v31  ;;  %v8170_v31 = vld [vmem:[#allocation12 + $0x70] sm:$0xff]  }
 0x440   : > { %4986 = vmatpush1.bf16.msra.mxu1 %v8100_v54  ;;  %4944 = vmatprep.subr.bf16.mxu0 %v8105_v32  ;;  %v8171_v54 = vld [vmem:[#allocation12 + $0xb0] sm:$0xff]  }
 0x441   : > { %4987 = vmatprep.subr.bf16.mxu1 %v8108_v33  ;;  %v8172_v32 = vld [vmem:[#allocation12 + $0x30] sm:$0xff]   ;;  %v8173_v33 = vld [vmem:[#allocation12 + $0xf8] sm:$0xff]  }
 0x443   : > { %4945 = vmatpush1.bf16.msra.mxu0 %v8103_v35  ;;  %v8174_v35 = vld [vmem:[#allocation12 + $0x78] sm:$0xff]  }
 0x444   : > { %4988 = vmatpush1.bf16.msra.mxu1 %v8106_v36  ;;  %4946 = vmatprep.subr.bf16.mxu0 %v8111_v37  ;;  %v8175_v36 = vld [vmem:[#allocation12 + $0xb8] sm:$0xff]  }
 0x445   : > { %4989 = vmatprep.subr.bf16.mxu1 %v8114_v39  ;;  %v8176_v37 = vld [vmem:[#allocation12 + $0x38] sm:$0xff]   ;;  %v8177_v39 = vld [vmem:[#allocation12 + $0x140] sm:$0xff]  }
 0x447   : > { %4947 = vmatpush1.bf16.msra.mxu0 %v8109_v40  ;;  %v8178_v40 = vld [vmem:[#allocation12 + $0x1c0] sm:$0xff]  }
 0x448   : > { %4990 = vmatpush1.bf16.msra.mxu1 %v8112_v41  ;;  %4948 = vmatprep.subr.bf16.mxu0 %v8117_v42  ;;  %v569_v41 = vld [vmem:[#allocation10] sm:$0xf] }
 0x449   : > { %4991 = vmatprep.subr.bf16.mxu1 %v8120_v43  ;;  %v5024_v42 = vrot.slane %v569_v41, %v9239_v60  ;;  %v5032_v43 = vrot.slane %v569_v41, %v2048_v12 }
 0x44b   : > { %4949 = vmatpush1.bf16.msra.mxu0 %v8115_v44  ;;  %v5028_v44 = vrot.slane %v569_v41, %v9243_v14 }
 0x44c   : > { %4992 = vmatpush1.bf16.msra.mxu1 %v8118_v45  ;;  %4950 = vmatprep.subr.bf16.mxu0 %v8123_v48  ;;  %v5036_v45 = vrot.slane %v569_v41, %v2052_v15  ;;  %v8184_v41 = vld [vmem:[#allocation12 + $0x188] sm:$0xff]  }
 0x44d   : > { %4993 = vmatprep.subr.bf16.mxu1 %v8126_v50 }
 0x44f   : > { %4951 = vmatpush1.bf16.msra.mxu0 %v8121_v51 }
 0x450   : > { %4994 = vmatpush1.bf16.msra.mxu1 %v8124_v52  ;;  %4952 = vmatprep.subr.bf16.mxu0 %v8129_v53 }
 0x451   : > { %4995 = vmatprep.subr.bf16.mxu1 %v8132_v16 }
 0x453   : > { %4953 = vmatpush1.bf16.msra.mxu0 %v8127_v0 }
 0x454   : > { %4996 = vmatpush1.bf16.msra.mxu1 %v8130_v55  ;;  %4954 = vmatprep.subr.bf16.mxu0 %v8135_v56 }
 0x455   : > { %4997 = vmatprep.subr.bf16.mxu1 %v8138_v17 }
 0x457   : > { %4955 = vmatpush1.bf16.msra.mxu0 %v8133_v18 }
 0x458   : > { %4998 = vmatpush1.bf16.msra.mxu1 %v8136_v57  ;;  %4956 = vmatprep.subr.bf16.mxu0 %v8141_v58 }
 0x459   : > { %4999 = vmatprep.subr.bf16.mxu1 %v8144_v59 }
 0x45b   : > { %4957 = vmatpush1.bf16.msra.mxu0 %v8139_v49 }
 0x45c   : > { %5000 = vmatpush1.bf16.msra.mxu1 %v8142_v63  ;;  %7008 = vmatprep.subr.bf16.mxu0 %v8145_v28 }
 0x45d   : > { %7030 = vmatprep.subr.bf16.mxu1 %v8146_v2 }
 0x45e   : > { %4959 = vmatmul.mubr.bf16.vlgmr.msra.gmra.mrb[8].mxu0 %v4602_v26 }
 0x45f   : > { %5002 = vmatmul.mubr.bf16.vlgmr.msra.gmra.mrb[8].mxu1 %v4602_v26  ;;  %7009 = vmatpush3.bf16.msra.mxu0 %v8147_v5 }
 0x460   : > { %7031 = vmatpush3.bf16.msra.mxu1 %v8148_v3  ;;  %7010 = vmatprep.subr.bf16.mxu0 %v8149_v46 }
 0x461   : > { %7032 = vmatprep.subr.bf16.mxu1 %v8150_v4 }
 0x463   : > { %7011 = vmatpush3.bf16.msra.mxu0 %v8151_v6 }
 0x464   : > { %7033 = vmatpush3.bf16.msra.mxu1 %v8152_v47  ;;  %7012 = vmatprep.subr.bf16.mxu0 %v8153_v7 }
 0x465   : > { %7034 = vmatprep.subr.bf16.mxu1 %v8154_v8 }
 0x467   : > { %7013 = vmatpush3.bf16.msra.mxu0 %v8155_v9 }
 0x468   : > { %7035 = vmatpush3.bf16.msra.mxu1 %v8156_v10  ;;  %7014 = vmatprep.subr.bf16.mxu0 %v8157_v38 }
 0x469   : > { %7036 = vmatprep.subr.bf16.mxu1 %v8158_v13 }
 0x46b   : > { %7015 = vmatpush3.bf16.msra.mxu0 %v8159_v19 }
 0x46c   : > { %7037 = vmatpush3.bf16.msra.mxu1 %v8160_v20  ;;  %7016 = vmatprep.subr.bf16.mxu0 %v8161_v21 }
 0x46d   : > { %7038 = vmatprep.subr.bf16.mxu1 %v8162_v22 }
 0x46f   : > { %7017 = vmatpush3.bf16.msra.mxu0 %v8163_v23 }
 0x470   : > { %7039 = vmatpush3.bf16.msra.mxu1 %v8164_v34  ;;  %7018 = vmatprep.subr.bf16.mxu0 %v8165_v24 }
 0x471   : > { %7040 = vmatprep.subr.bf16.mxu1 %v8166_v25 }
 0x473   : > { %7019 = vmatpush3.bf16.msra.mxu0 %v8167_v27 }
 0x474   : > { %7041 = vmatpush3.bf16.msra.mxu1 %v8168_v29  ;;  %7020 = vmatprep.subr.bf16.mxu0 %v8169_v30  ;;  %v8179_v29 = vld [vmem:[#allocation12 + $0x100] sm:$0xff]  }
 0x475   : > { %7042 = vmatprep.subr.bf16.mxu1 %v8170_v31 }
 0x477   : > { %7021 = vmatpush3.bf16.msra.mxu0 %v8171_v54 }
 0x478   : > { %7043 = vmatpush3.bf16.msra.mxu1 %v8172_v32  ;;  %7022 = vmatprep.subr.bf16.mxu0 %v8173_v33  ;;  %v8180_v32 = vld [vmem:[#allocation12 + $0x180] sm:$0xff]  }
 0x479   : > { %7044 = vmatprep.subr.bf16.mxu1 %v8174_v35  ;;  %v8181_v35 = vld [vmem:[#allocation12 + $0x148] sm:$0xff]  }
 0x47b   : > { %7023 = vmatpush3.bf16.msra.mxu0 %v8175_v36 }
 0x47c   : > { %7045 = vmatpush3.bf16.msra.mxu1 %v8176_v37  ;;  %7052 = vmatprep.subr.bf16.mxu0 %v8177_v39  ;;  %v8182_v37 = vld [vmem:[#allocation12 + $0x1c8] sm:$0xff]  }
 0x47d   : > { %7074 = vmatprep.subr.bf16.mxu1 %v8178_v40  ;;  %v8183_v40 = vld [vmem:[#allocation12 + $0x108] sm:$0xff]  }
 0x531   : > { %v4960_v48 = vpop.f32.mrb[8].mxu0 }
 0x532   : > { %v5041_v50 = vadd.f32 %v5024_v42, %v4960_v48  ;;  %v5003_v51 = vpop.f32.mrb[8].mxu1  ;;  %v4962_v52 = vpop.f32.mrb[9].mxu0  ;;  %v8189_v48 = vld [vmem:[#allocation12 + $0x158] sm:$0xff]  }
 0x533   : > { %v5043_v53 = vadd.f32 %v5032_v43, %v5003_v51  ;;  %v5042_v16 = vadd.f32 %v5028_v44, %v4962_v52  ;;  %v5005_v0 = vpop.f32.mrb[9].mxu1  ;;  %v4964_v55 = vpop.f32.mrb[10].mxu0  ;;  %v8191_v51 = vld [vmem:[#allocation12 + $0x118] sm:$0xff]  }
 0x534   : > { %v5049_v56 = vmax.f32 %v5041_v50, 0.0  ;;  %v5044_v17 = vadd.f32 %v5036_v45, %v5005_v0  ;;  %v5045_v18 = vadd.f32 %v5024_v42, %v4964_v55  ;;  %v5007_v57 = vpop.f32.mrb[10].mxu1  ;;  %v4966_v58 = vpop.f32.mrb[11].mxu0  ;;  %v8185_v42 = vld [vmem:[#allocation12 + $0x150] sm:$0xff]   ;;  %v8190_v50 = vld [vmem:[#allocation12 + $0x1d8] sm:$0xff]   ;;  %v8195_v0 = vld [vmem:[#allocation12 + $0x120] sm:$0xff]  }
 0x535   : > { %v5051_v59 = vmax.f32 %v5043_v53, 0.0  ;;  %v5050_v12 = vmax.f32 %v5042_v16, 0.0  ;;  %v5047_v61 = vadd.f32 %v5032_v43, %v5007_v57  ;;  %v5046_v49 = vadd.f32 %v5028_v44, %v4966_v58  ;;  %v5009_v62 = vpop.f32.mrb[11].mxu1  ;;  %v8186_v43 = vld [vmem:[#allocation12 + $0x1d0] sm:$0xff]   ;;  %v8192_v52 = vld [vmem:[#allocation12 + $0x198] sm:$0xff]   ;;  %v8193_v53 = vld [vmem:[#allocation12 + $0x160] sm:$0xff]  }
 0x536   : > { %v5052_v11 = vmax.f32 %v5044_v17, 0.0  ;;  %v5053_v15 = vmax.f32 %v5045_v18, 0.0  ;;  %v5048_v63 = vadd.f32 %v5036_v45, %v5009_v62  ;;  %v8187_v44 = vld [vmem:[#allocation12 + $0x110] sm:$0xff]   ;;  %v8194_v16 = vld [vmem:[#allocation12 + $0x1e0] sm:$0xff]   ;;  %v8198_v17 = vld [vmem:[#allocation12 + $0x1e8] sm:$0xff]  }
 0x537   : > { %v5057_v1 = vmax.f32 %v5049_v56, %v5051_v59  ;;  %v5055_v28 = vmax.f32 %v5047_v61, 0.0  ;;  %v5054_v2 = vmax.f32 %v5046_v49, 0.0  ;;  %v8188_v45 = vld [vmem:[#allocation12 + $0x190] sm:$0xff]   ;;  %v8196_v55 = vld [vmem:[#allocation12 + $0x1a0] sm:$0xff]   ;;  %v8197_v56 = vld [vmem:[#allocation12 + $0x168] sm:$0xff]  }
 0x538   : > { %v5058_v5 = vmax.f32 %v5050_v12, %v5052_v11  ;;  %v5056_v26 = vmax.f32 %v5048_v63, 0.0  ;;  %v8199_v18 = vld [vmem:[#allocation12 + $0x128] sm:$0xff]   ;;  %v8201_v58 = vld [vmem:[#allocation12 + $0x170] sm:$0xff]   ;;  %v8205_v11 = vld [vmem:[#allocation12 + $0x178] sm:$0xff]  }
 0x539   : > { %5061 = vst [vmem:[#allocation3] sm:$0xff] %v5057_v1  ;;  %v5059_v3 = vmax.f32 %v5053_v15, %v5055_v28  ;;  %v8200_v57 = vld [vmem:[#allocation12 + $0x1a8] sm:$0xff]   ;;  %v8202_v59 = vld [vmem:[#allocation12 + $0x1f0] sm:$0xff]   ;;  %v8206_v15 = vld [vmem:[#allocation12 + $0x1f8] sm:$0xff]  }
 0x53a   : > { %5062 = vst [vmem:[#allocation3 + $0x8] sm:$0xff] %v5058_v5  ;;  %v5060_v46 = vmax.f32 %v5054_v2, %v5056_v26  ;;  %v8203_v12 = vld [vmem:[#allocation12 + $0x130] sm:$0xff]   ;;  %v8207_v1 = vld [vmem:[#allocation12 + $0x138] sm:$0xff]   ;;  %v8209_v5 = vld [vmem:[#allocation12 + $0x240] sm:$0xff]  }
 0x53b   : > { %5063 = vst [vmem:[#allocation3 + $0x10] sm:$0x3] %v5059_v3  ;;  %v8204_v62 = vld [vmem:[#allocation12 + $0x1b0] sm:$0xff]   ;;  %v8208_v28 = vld [vmem:[#allocation12 + $0x1b8] sm:$0xff]  }
 0x53c   : > { %5064 = vst [vmem:[#allocation3 + $0x18] sm:$0x3] %v5060_v46  ;;  %v8210_v46 = vld [vmem:[#allocation12 + $0x200] sm:$0xff]  }
 0x541   : > { %v5115_v4 = vld [vmem:[#allocation3 + $0x2] ss:$8 sm:$0x3]  ;;  %v5117_v6 = vld [vmem:[#allocation3 + $0x3] ss:$8 sm:$0x3] }
 0x542   : > { %v5118_v47 = vmax.f32 %v5115_v4, %v5117_v6  ;;  %v5065_v7 = vld [vmem:[#allocation3] ss:$8 sm:$0x3]  ;;  %v5067_v8 = vld [vmem:[#allocation3 + $0x1] ss:$8 sm:$0x3] }
 0x543   : > { %v5068_v9 = vmax.f32 %v5065_v7, %v5067_v8  ;;  %v5438_v10 = vld [vmem:[#allocation3 + $0x4] ss:$8 sm:$0x3]  ;;  %v5440_v38 = vld [vmem:[#allocation3 + $0x5] ss:$8 sm:$0x3] }
 0x544   : > { %v5127_v13 = vrot.slane %v5118_v47, %v9243_v14  ;;  %v5123_v19 = vrot.slane %v5118_v47, %v9239_v60  ;;  %v9300_v20 = vmax.f32 %v5438_v10, %v5440_v38  ;;  %v5626_v21 = vld [vmem:[#allocation3 + $0x6] ss:$8 sm:$0x3]  ;;  %v5628_v22 = vld [vmem:[#allocation3 + $0x7] ss:$8 sm:$0x3] }
 0x545   : > { %v5077_v23 = vrot.slane %v5068_v9, %v9243_v14  ;;  %v5073_v34 = vrot.slane %v5068_v9, %v9239_v60  ;;  %v9304_v24 = vmax.f32 %v5626_v21, %v5628_v22  ;;  %v5814_v61 = vld [vmem:[#allocation3 + $0x10] ss:$8 sm:$0x3]  ;;  %v5816_v49 = vld [vmem:[#allocation3 + $0x11] ss:$8 sm:$0x3] }
 0x546   : > { %v5131_v25 = vpack.c.bf16 %v5127_v13, %v5127_v13  ;;  %v5130_v27 = vpack.c.bf16 %v5123_v19, %v5123_v19  ;;  %v5450_v30 = vrot.slane %v9300_v20, %v9243_v14  ;;  %v5817_v63 = vmax.f32 %v5814_v61, %v5816_v49  ;;  %v8211_v6 = vld [vmem:[#allocation12 + $0x248] sm:$0xff]   ;;  %v8213_v9 = vld [vmem:[#allocation12 + $0x250] sm:$0xff]   ;;  %v8215_v38 = vld [vmem:[#allocation12 + $0x258] sm:$0xff]  }
 0x547   : > { %v5081_v31 = vpack.c.bf16 %v5077_v23, %v5077_v23  ;;  %v5080_v54 = vpack.c.bf16 %v5073_v34, %v5073_v34  ;;  %v5638_v33 = vrot.slane %v9304_v24, %v9243_v14  ;;  %v5446_v2 = vrot.slane %v9300_v20, %v9239_v60  ;;  %v8212_v8 = vld [vmem:[#allocation12 + $0x208] sm:$0xff]   ;;  %v8214_v10 = vld [vmem:[#allocation12 + $0x210] sm:$0xff]   ;;  %v8217_v13 = vld [vmem:[#allocation12 + $0x260] sm:$0xff]  }
 0x548   : > { %5293 = vmatprep.mubr.bf16.mxu0 %v5131_v25  ;;  %v5454_v36 = vpack.c.bf16 %v5450_v30, %v5450_v30  ;;  %v5634_v26 = vrot.slane %v9304_v24, %v9239_v60  ;;  %v5826_v3 = vrot.slane %v5817_v63, %v9243_v14  ;;  %v8216_v14 = vld [vmem:[#allocation12 + $0x218] sm:$0xff]   ;;  %v8218_v19 = vld [vmem:[#allocation12 + $0x220] sm:$0xff]   ;;  %v8219_v20 = vld [vmem:[#allocation12 + $0x268] sm:$0xff]   ;;  %v5822_v25 = vrot.slane %v5817_v63, %v9239_v60 }
 0x549   : > { %5429 = vmatprep.mubr.bf16.mxu1 %v5081_v31  ;;  %5294 = vmatmul.mubr.bf16.vlgmr.msra.gmra.mrb[12].mxu0 %v5130_v27  ;;  %v5642_v39 = vpack.c.bf16 %v5638_v33, %v5638_v33  ;;  %v5453_v4 = vpack.c.bf16 %v5446_v2, %v5446_v2  ;;  %v8220_v21 = vld [vmem:[#allocation12 + $0x228] sm:$0xff]   ;;  %v8221_v22 = vld [vmem:[#allocation12 + $0x270] sm:$0xff]   ;;  %v8223_v34 = vld [vmem:[#allocation12 + $0x278] sm:$0xff]   ;;  %v8785_v30 = vmov 0.0  }
 0x54a   : > { %5430 = vmatmul.mubr.bf16.vlgmr.msra.gmra.mrb[12].mxu1 %v5080_v54  ;;  %7053 = vmatpush3.bf16.msra.mxu0 %v8179_v29  ;;  %v5641_v47 = vpack.c.bf16 %v5634_v26, %v5634_v26  ;;  %v5830_v7 = vpack.c.bf16 %v5826_v3, %v5826_v3  ;;  %v8222_v23 = vld [vmem:[#allocation12 + $0x230] sm:$0xff]   ;;  %v8224_v24 = vld [vmem:[#allocation12 + $0x238] sm:$0xff]   ;;  %v5829_v27 = vpack.c.bf16 %v5822_v25, %v5822_v25  ;;  %v8225_v29 = vld [vmem:[#allocation15] sm:$0xff]  }
 0x54b   : > { %7075 = vmatpush3.bf16.msra.mxu1 %v8180_v32  ;;  %5616 = vmatprep.mubr.bf16.mxu0 %v5454_v36  ;;  %v8226_v31 = vld [vmem:[#allocation15 + $0x8] sm:$0xff]   ;;  %v8227_v54 = vld [vmem:[#allocation15 + $0x10] sm:$0xff]   ;;  %v8228_v32 = vld [vmem:[#allocation15 + $0x18] sm:$0xff]  }
 0x54c   : > { %5804 = vmatprep.mubr.bf16.mxu1 %v5642_v39  ;;  %7054 = vmatprep.subr.bf16.mxu0 %v8181_v35  ;;  %v8229_v60 = vld [vmem:[#allocation15 + $0x20] sm:$0xff]   ;;  %v8230_v33 = vld [vmem:[#allocation15 + $0x28] sm:$0xff]   ;;  %v8231_v35 = vld [vmem:[#allocation15 + $0x30] sm:$0xff]  }
 0x54d   : > { %7076 = vmatprep.subr.bf16.mxu1 %v8182_v37  ;;  %v8232_v36 = vld [vmem:[#allocation15 + $0x38] sm:$0xff]   ;;  %v8233_v37 = vld [vmem:[#allocation18] sm:$0xff]   ;;  %v8234_v39 = vld [vmem:[#allocation18 + $0x8] sm:$0xff]  }
 0x54e   : > { %7055 = vmatpush3.bf16.msra.mxu0 %v8183_v40  ;;  %v8235_v40 = vld [vmem:[#allocation18 + $0x10] sm:$0xff]   ;;  %v570_v26 = vld [vmem:[#allocation13] sm:$0x1] }
 0x54f   : > { %7077 = vmatpush3.bf16.msra.mxu1 %v8184_v41  ;;  %7056 = vmatprep.subr.bf16.mxu0 %v8185_v42  ;;  %v8236_v41 = vld [vmem:[#allocation18 + $0x18] sm:$0xff]   ;;  %v8237_v42 = vld [vmem:[#allocation18 + $0x20] sm:$0xff]  }
 0x550   : > { %7078 = vmatprep.subr.bf16.mxu1 %v8186_v43  ;;  %v8238_v43 = vld [vmem:[#allocation18 + $0x28] sm:$0xff]  }
 0x552   : > { %7057 = vmatpush3.bf16.msra.mxu0 %v8187_v44 }
 0x553   : > { %7079 = vmatpush3.bf16.msra.mxu1 %v8188_v45  ;;  %7058 = vmatprep.subr.bf16.mxu0 %v8189_v48 }
 0x554   : > { %7080 = vmatprep.subr.bf16.mxu1 %v8190_v50 }
 0x556   : > { %7059 = vmatpush3.bf16.msra.mxu0 %v8191_v51 }
 0x557   : > { %7081 = vmatpush3.bf16.msra.mxu1 %v8192_v52  ;;  %7060 = vmatprep.subr.bf16.mxu0 %v8193_v53 }
 0x558   : > { %7082 = vmatprep.subr.bf16.mxu1 %v8194_v16 }
 0x55a   : > { %7061 = vmatpush3.bf16.msra.mxu0 %v8195_v0 }
 0x55b   : > { %7083 = vmatpush3.bf16.msra.mxu1 %v8196_v55  ;;  %7062 = vmatprep.subr.bf16.mxu0 %v8197_v56 }
 0x55c   : > { %7084 = vmatprep.subr.bf16.mxu1 %v8198_v17 }
 0x55e   : > { %7063 = vmatpush3.bf16.msra.mxu0 %v8199_v18 }
 0x55f   : > { %7085 = vmatpush3.bf16.msra.mxu1 %v8200_v57  ;;  %7064 = vmatprep.subr.bf16.mxu0 %v8201_v58 }
 0x560   : > { %7086 = vmatprep.subr.bf16.mxu1 %v8202_v59 }
 0x562   : > { %7065 = vmatpush3.bf16.msra.mxu0 %v8203_v12 }
 0x563   : > { %7087 = vmatpush3.bf16.msra.mxu1 %v8204_v62  ;;  %7066 = vmatprep.subr.bf16.mxu0 %v8205_v11 }
 0x564   : > { %7088 = vmatprep.subr.bf16.mxu1 %v8206_v15 }
 0x566   : > { %7067 = vmatpush3.bf16.msra.mxu0 %v8207_v1 }
 0x567   : > { %7089 = vmatpush3.bf16.msra.mxu1 %v8208_v28  ;;  %7096 = vmatprep.subr.bf16.mxu0 %v8209_v5 }
 0x568   : > { %7136 = vmatprep.subr.bf16.mxu1 %v8785_v30 }
 0x569   : > { %5617 = vmatmul.mubr.bf16.vlgmr.msra.gmra.mrb[16].mxu0 %v5453_v4 }
 0x56a   : > { %5805 = vmatmul.mubr.bf16.vlgmr.msra.gmra.mrb[16].mxu1 %v5641_v47  ;;  %7097 = vmatpush3.bf16.msra.mxu0 %v8210_v46 }
 0x56b   : > { %5992 = vmatprep.mubr.bf16.mxu0 %v5830_v7  ;;  %7098 = vmatprep.subr.bf16.mxu0 %v8211_v6  ;;  %v8239_v7 = vld [vmem:[#allocation18 + $0x30] sm:$0xff]  }
 0x56c   : > { %7137 = vmatpush3.bf16.msra.mxu1 %v8225_v29  ;;  %7152 = vmatprep.mubr.msk.bf16.mxu1 %vm8786_vm0, %v8785_v30 }
 0x56d   : > { %7138 = vmatprep.subr.bf16.mxu1 %v8785_v30 }
 0x56e   : > { %7099 = vmatpush3.bf16.msra.mxu0 %v8212_v8  ;;  %v8240_v8 = vld [vmem:[#allocation18 + $0x38] sm:$0xff]  }
 0x56f   : > { %7100 = vmatprep.subr.bf16.mxu0 %v8213_v9  ;;  %v571_v9 = vld [vmem:[#allocation16] sm:$0x1] }
 0x570   : > { %7139 = vmatpush3.bf16.msra.mxu1 %v8226_v31 }
 0x571   : > { %7140 = vmatprep.subr.bf16.mxu1 %v8785_v30 }
 0x572   : > { %7101 = vmatpush3.bf16.msra.mxu0 %v8214_v10 }
 0x573   : > { %7102 = vmatprep.subr.bf16.mxu0 %v8215_v38 }
 0x574   : > { %7141 = vmatpush3.bf16.msra.mxu1 %v8227_v54 }
 0x575   : > { %7142 = vmatprep.subr.bf16.mxu1 %v8785_v30 }
 0x576   : > { %7103 = vmatpush3.bf16.msra.mxu0 %v8216_v14 }
 0x577   : > { %7104 = vmatprep.subr.bf16.mxu0 %v8217_v13 }
 0x578   : > { %7143 = vmatpush3.bf16.msra.mxu1 %v8228_v32 }
 0x579   : > { %7144 = vmatprep.subr.bf16.mxu1 %v8785_v30 }
 0x57a   : > { %7105 = vmatpush3.bf16.msra.mxu0 %v8218_v19 }
 0x57b   : > { %7106 = vmatprep.subr.bf16.mxu0 %v8219_v20 }
 0x57c   : > { %7145 = vmatpush3.bf16.msra.mxu1 %v8229_v60 }
 0x57d   : > { %7146 = vmatprep.subr.bf16.mxu1 %v8785_v30 }
 0x57e   : > { %7107 = vmatpush3.bf16.msra.mxu0 %v8220_v21 }
 0x57f   : > { %7108 = vmatprep.subr.bf16.mxu0 %v8221_v22  ;;  %v572_v22 = vld [vmem:[#allocation19] sm:$0x1] }
 0x580   : > { %7147 = vmatpush3.bf16.msra.mxu1 %v8230_v33 }
 0x581   : > { %7148 = vmatprep.subr.bf16.mxu1 %v8785_v30 }
 0x582   : > { %7109 = vmatpush3.bf16.msra.mxu0 %v8222_v23 }
 0x583   : > { %7110 = vmatprep.subr.bf16.mxu0 %v8223_v34 }
 0x584   : > { %7149 = vmatpush3.bf16.msra.mxu1 %v8231_v35 }
 0x585   : > { %7150 = vmatprep.subr.bf16.mxu1 %v8785_v30 }
 0x586   : > { %7111 = vmatpush3.bf16.msra.mxu0 %v8224_v24 }
 0x587   : > { %7156 = vmatprep.subr.bf16.mxu0 %v8785_v30 }
 0x588   : > { %7151 = vmatpush3.bf16.msra.mxu1 %v8232_v36 }
 0x589   : > { %5993 = vmatmul.mubr.bf16.vlgmr.msra.gmra.mrb[20].mxu0 %v5829_v27 }
 0x58a   : > { %7172 = vmatprep.mubr.msk.bf16.mxu0 %vm8786_vm0, %v8785_v30  ;;  %7157 = vmatpush3.bf16.msra.mxu0 %v8233_v37 }
 0x58b   : > { %7158 = vmatprep.subr.bf16.mxu0 %v8785_v30 }
 0x58e   : > { %7159 = vmatpush3.bf16.msra.mxu0 %v8234_v39 }
 0x58f   : > { %7160 = vmatprep.subr.bf16.mxu0 %v8785_v30 }
 0x592   : > { %7161 = vmatpush3.bf16.msra.mxu0 %v8235_v40 }
 0x593   : > { %7162 = vmatprep.subr.bf16.mxu0 %v8785_v30 }
 0x596   : > { %7163 = vmatpush3.bf16.msra.mxu0 %v8236_v41 }
 0x597   : > { %7164 = vmatprep.subr.bf16.mxu0 %v8785_v30 }
 0x59a   : > { %7165 = vmatpush3.bf16.msra.mxu0 %v8237_v42 }
 0x59b   : > { %7166 = vmatprep.subr.bf16.mxu0 %v8785_v30 }
 0x59e   : > { %7167 = vmatpush3.bf16.msra.mxu0 %v8238_v43 }
 0x59f   : > { %7168 = vmatprep.subr.bf16.mxu0 %v8785_v30 }
 0x5a2   : > { %7169 = vmatpush3.bf16.msra.mxu0 %v8239_v7 }
 0x5a3   : > { %7170 = vmatprep.subr.bf16.mxu0 %v8785_v30 }
 0x5a6   : > { %7171 = vmatpush3.bf16.msra.mxu0 %v8240_v8 }
 0x61c   : > { %v7024_v44 = vpop.f32.mrb[12].mxu0 }
 0x61d   : > { %v7046_v45 = vpop.f32.mrb[12].mxu1  ;;  %v7025_v48 = vpop.f32.mrb[13].mxu0 }
 0x61e   : > { %v7026_v50 = vadd.f32 %v7025_v48, %v7024_v44  ;;  %v7047_v51 = vpop.f32.mrb[13].mxu1  ;;  %v7027_v52 = vpop.f32.mrb[14].mxu0 }
 0x61f   : > { %v7048_v53 = vadd.f32 %v7047_v51, %v7046_v45  ;;  %v7049_v16 = vpop.f32.mrb[14].mxu1  ;;  %v7028_v0 = vpop.f32.mrb[15].mxu0 }
 0x620   : > { %v7050_v55 = vpop.f32.mrb[15].mxu1 }
 0x621   : > { %v5432_v56 = vadd.f32 %v7048_v53, %v7026_v50 }
 0x63c   : > { %v7068_v17 = vpop.f32.mrb[16].mxu0 }
 0x63d   : > { %v7090_v18 = vpop.f32.mrb[16].mxu1  ;;  %v7069_v57 = vpop.f32.mrb[17].mxu0 }
 0x63e   : > { %v7070_v58 = vadd.f32 %v7069_v57, %v7068_v17  ;;  %v7091_v59 = vpop.f32.mrb[17].mxu1  ;;  %v7071_v12 = vpop.f32.mrb[18].mxu0 }
 0x63f   : > { %v7092_v61 = vadd.f32 %v7091_v59, %v7090_v18  ;;  %v7093_v49 = vpop.f32.mrb[18].mxu1  ;;  %v7072_v62 = vpop.f32.mrb[19].mxu0 }
 0x640   : > { %v5624_v11 = vadd.f32 %v7070_v58, %v5432_v56  ;;  %v7094_v15 = vpop.f32.mrb[19].mxu1 }
 0x642   : > { %v5812_v63 = vadd.f32 %v7092_v61, %v5624_v11 }
 0x65c   : > { %v7112_v1 = vpop.f32.mrb[20].mxu0 }
 0x65d   : > { %v7113_v28 = vpop.f32.mrb[21].mxu0 }
 0x65e   : > { %v7114_v2 = vadd.f32 %v7113_v28, %v7112_v1  ;;  %v7115_v5 = vpop.f32.mrb[22].mxu0 }
 0x65f   : > { %v7116_v3 = vpop.f32.mrb[23].mxu0 }
 0x660   : > { %v6000_v46 = vadd.f32 %v7114_v2, %v5812_v63 }
 0x662   : > { %v6001_v4 = vadd.f32 %v6000_v46, %v570_v26 }
 0x664   : > { %v6002_v6 = vmax.f32 %v6001_v4, 0.0 }
 0x666   : > { %v6003_v47 = vpack.c.bf16 %v6002_v6, %v6002_v6 }
 0x668   : > { %7153 = vmatmul.mubr.bf16.vlgmr.msra.gmra.mrb[20].mxu1 %v6003_v47 }
 0x73b   : > { %v6102_v10 = vpop.f32.mrb[20].mxu1 }
 0x73c   : > { %v6103_v38 = vadd.f32 %v6102_v10, %v571_v9  ;;  %v7154_v14 = vpop.f32.mrb[21].mxu1 }
 0x73d   : > { %v6105_v13 = vpop.f32.mrb[22].mxu1 }
 0x73e   : > { %v6108_v19 = vmax.f32 %v6103_v38, 0.0  ;;  %v7155_v20 = vpop.f32.mrb[23].mxu1 }
 0x740   : > { %v6109_v21 = vpack.c.bf16 %v6108_v19, %v6108_v19 }
 0x742   : > { %7173 = vmatmul.mubr.bf16.vlgmr.msra.gmra.mrb[24].mxu0 %v6109_v21 }
 0x815   : > { %v6208_v23 = vpop.f32.mrb[24].mxu0 }
 0x816   : > { %v6209_v34 = vadd.f32 %v6208_v23, %v572_v22  ;;  %v7174_v24 = vpop.f32.mrb[25].mxu0 }
 0x817   : > { %v6211_v25 = vpop.f32.mrb[26].mxu0 }
 0x818   : > { %6214 = vst [vmem:[%s556_s23] sm:$0x1] %v6209_v34  ;;  %v7175_v27 = vpop.f32.mrb[27].mxu0 }
 0x819   : > { %8695 = shalt.err (!%p8692_p10)
}
 0x81a   : > { %s8696_s15 = scalar_lea.hbm %s9339_s26, 16  ;;  %s8700_s17 = scalar_lea.hbm %s9393_s12, 32 }
 0x81b   : > { %p8697_p2 = scmp.ne.s32.totalorder %s9339_s26, %s8696_s15  ;;  %p8701_p7 = scmp.lt.u32.totalorder %s9339_s26, %s9393_s12 }
 0x81c   : > { %p8702_p8 = scmp.lt.u32.totalorder %s8700_s17, %s8696_s15  ;;  %p8704_p13 = scmp.lt.u32.totalorder %s8696_s15, %s9339_s26 }
 0x81d   : > { %p8698_p3 = pnand %p8697_p2, %p9435_p1 }
 0x81e   : > { %p8703_p11 = por %p8702_p8, %p8701_p7 }
 0x81f   : > { %p8699_p4 = pneg %p8698_p3 }
 0x820   : > { %p8705_p0 = por %p8704_p13, %p8703_p11 }
 0x822   : > { %p8706_p6 = pnand %p8705_p0, %p8699_p4 }
 0x824   : > { %8709 = shalt.err (!%p8706_p6)
}
 0x825   : > { %7312 = dma.vmem_to_hbm [thread:$0]  (%p9435_p1), %s9341_s9, 16, %s9339_s26, %s6216_s27  }
 0x826 PF: > { %s9436_s30 = sld [smem:[#allocation31_spill]]  ;;  %s9437_s16 = sld [smem:[#allocation29_spill]] }
 0x827   : > { %s9438_s28 = sld [smem:[#allocation34_spill]] }
 0x82c   : > { %p7369_p5 = scmp.ge.s32.totalorder %s9436_s30, 2  ;;  %s6240_s29 = sand.u32 1, %s9437_s16  }
 0x82d   : > { %p9439_p9 = scmp.ne.s32.totalorder %s9438_s28, 0  ;;  %s6241_s23 = scalar_lea.sflag [#allocation6], %s6240_s29 }
 0x82f   : > { %p7346_p12 = pnand %p7369_p5, %p9439_p9 }
 0x831   : > { %8751 = dma.done.wait (!%p7346_p12), %s6241_s23, 16  }
 0x832   : > { %8753 = vsyncadd (!%p7346_p12), %s6241_s23, 4294967280  ;;  %s9440_s24 = sld [smem:[#allocation32_spill]]  ;;  %s9441_s14 = sld [smem:[#allocation30_spill]] }
 0x833   : > { %s9442_s23 = sld [smem:[#allocation33_spill]]  ;;  %s9443_s21 = smov %s8760_s22 }
 0x838   : > { %p28_p10 = scmp.ge.s32.totalorder %s9440_s24, 4   ;;  %s9444_s22 = smov %s9441_s14 }
 0x83a   :  { %30 = sbr.rel (!%p28_p10) target bundleno = 14 (0xe), region = 168 }
 0x841   :  { %6245 = vsyncpa [#allocation5], 1 }
 0x842   :  { %6247 = vsyncpa [#allocation5 + $0x1], 1 }
 0x843   :  { %6248 = vsyncpa [#allocation8], 1 }
 0x844   :  { %6249 = vsyncpa [#allocation11], 1 }
 0x845   :  { %6250 = vsyncpa [#allocation14], 1 }
 0x846   :  { %6251 = vsyncpa [#allocation17], 1 }
 0x847   :  { %6252 = vsyncpa [#allocation20], 1 }
 0x848   :  { %6253 = vsyncpa [#allocation6], 1 }
 0x849   :  { %6255 = vsyncpa [#allocation6 + $0x1], 1 }

</bundles_post_ra>
